<compile_context>
chip_gen: v7x
topology: tpu7x:2x2x1
jax: 0.10.0
libtpu: 0.0.40
codegen_flags: <defaults>
</compile_context>

<pallas_src>
import math
from functools import partial

import jax
import jax.numpy as jnp
from jax.experimental import pallas as pl
from jax.experimental.pallas import tpu as pltpu

# ---------------- config (small, BERT-like) ----------------
VOCAB = 64
MAX_POS = 16
HIDDEN = 32
NUM_HEADS = 4
HEAD_DIM = HIDDEN // NUM_HEADS
INTER = 64
NUM_LAYERS = 3
LN_EPS = 1e-12  # BERT layer-norm eps

VMEM_SPEC = pl.BlockSpec(memory_space=pltpu.MemorySpace.VMEM)


# ---------------- helpers (all VPU/EUP-friendly) ----------------
def _layernorm(x, g, b):
    mu = jnp.mean(x, axis=-1, keepdims=True)
    var = jnp.mean(jnp.square(x - mu), axis=-1, keepdims=True)
    return (x - mu) * jax.lax.rsqrt(var + LN_EPS) * g + b


def _erf(x):
    # Abramowitz & Stegun 7.1.26 rational approximation, |abs err| < 1.5e-7.
    # Pure VPU ops + one EUP exp -> matches HF BERT's exact erf-GELU to f32
    # precision without relying on a lax.erf lowering.
    a1, a2, a3, a4, a5 = 0.254829592, -0.284496736, 1.421413741, -1.453152027, 1.061405429
    p = 0.3275911
    sgn = jnp.where(x >= 0.0, 1.0, -1.0)
    ax = jnp.abs(x)
    t = 1.0 / (1.0 + p * ax)
    poly = ((((a5 * t + a4) * t + a3) * t + a2) * t + a1) * t
    return sgn * (1.0 - poly * jnp.exp(-ax * ax))


def _gelu_exact(x):
    return 0.5 * x * (1.0 + _erf(x * (1.0 / math.sqrt(2.0))))


# ---------------- fused embedding + 3-layer encoder kernel ----------------
def _encoder_kernel(
    ids_ref, mask_ref,
    word_emb_ref, pos_emb_ref, type_emb_ref,
    emb_ln_g_ref, emb_ln_b_ref,
    wqkv_ref, bqkv_ref, wo_ref, bo_ref,
    ln1_g_ref, ln1_b_ref,
    w1_ref, b1_ref, w2_ref, b2_ref,
    ln2_g_ref, ln2_b_ref,
    o_ref,
    *, batch, seq,
):
    B, S, NH, DH = batch, seq, NUM_HEADS, HEAD_DIM
    BH = B * NH
    R = BH * S                      # rows of the head-major attention layout

    # ---- fused embedding lookup: one-hot gather on the MXU ----
    ids = ids_ref[...]                                                  # [B*S, 1] int32
    vocab_iota = jax.lax.broadcasted_iota(jnp.int32, (B * S, VOCAB), 1)
    onehot = jnp.where(vocab_iota == ids, 1.0, 0.0)                     # [B*S, VOCAB]
    word = jnp.dot(onehot, word_emb_ref[...],
                   preferred_element_type=jnp.float32)                  # [B*S, H]
    pos = jnp.concatenate([pos_emb_ref[0:S, :]] * B, axis=0)            # [B*S, H]
    # TODO(synk): token_type_ids assumed all-zero (segment-0 embedding only).
    emb = word + pos + type_emb_ref[0:1, :]
    h = _layernorm(emb, emb_ln_g_ref[...], emb_ln_b_ref[...])

    # ---- additive attention bias, computed ONCE before the layer loop ----
    # Folds the static block-diagonal (batch, head) isolation mask with the dynamic
    # key-padding bias ((1 - mask) * -10000, exactly as BERT does).
    m = mask_ref[...].astype(jnp.float32)                               # [B, S]
    key_keep = jnp.concatenate(
        [m[b:b + 1, :] for b in range(B) for _ in range(NH)], axis=1)   # [1, R]
    pad_bias = (1.0 - key_keep) * -10000.0                              # [1, R]
    # block membership matrix E[r, blk] = 1 iff row r belongs to (batch, head) block
    # blk; same_block = E @ E^T (avoids integer vector division entirely).
    r_io = jax.lax.broadcasted_iota(jnp.int32, (R, 1), 0)               # [R, 1]
    b_io = jax.lax.broadcasted_iota(jnp.int32, (1, BH), 1) * S          # [1, BH]
    E = jnp.where((r_io >= b_io) & (r_io < b_io + S), 1.0, 0.0)         # [R, BH]
    same_block = jax.lax.dot_general(E, E, (((1,), (1,)), ((), ())),
                                     preferred_element_type=jnp.float32)  # [R, R]
    attn_bias = (1.0 - same_block) * -1e9 + pad_bias                    # [R, R]

    scale = 1.0 / math.sqrt(DH)
    nt_dims = (((1,), (1,)), ((), ()))   # q @ k^T without materializing k^T

    for l in range(NUM_LAYERS):
        # fused QKV projection: one [B*S, H] x [H, 3H] MXU matmul
        qkv = jnp.dot(h, wqkv_ref[l], preferred_element_type=jnp.float32) + bqkv_ref[l]

        # head-major relayout: [B*S, 3H] -> three [B*NH*S, dH] operands so all heads
        # of all batches run in 2 MXU matmuls per layer (static 2-D slices + concats).
        def heads(part):
            return jnp.concatenate(
                [qkv[b * S:(b + 1) * S,
                     part * HIDDEN + hh * DH: part * HIDDEN + (hh + 1) * DH]
                 for b in range(B) for hh in range(NH)], axis=0)
        qh, kh, vh = heads(0), heads(1), heads(2)                        # [R, dH]

        s = jax.lax.dot_general(qh, kh, nt_dims,
                                preferred_element_type=jnp.float32) * scale
        s = s + attn_bias
        s = s - jnp.max(s, axis=-1, keepdims=True)
        p = jnp.exp(s)
        p = p / jnp.sum(p, axis=-1, keepdims=True)          # exact divide (parity)
        ctx_h = jnp.dot(p, vh, preferred_element_type=jnp.float32)       # [R, dH]

        # merge heads back to [B*S, H] entirely in registers (no VMEM scratch)
        ctx = jnp.concatenate(
            [jnp.concatenate(
                [ctx_h[(b * NH + hh) * S:(b * NH + hh + 1) * S, :]
                 for hh in range(NH)], axis=1)
             for b in range(B)], axis=0)

        attn_out = jnp.dot(ctx, wo_ref[l],
                           preferred_element_type=jnp.float32) + bo_ref[l]
        h = _layernorm(attn_out + h, ln1_g_ref[l], ln1_b_ref[l])

        # ---- feed-forward ----
        ffn = jnp.dot(h, w1_ref[l], preferred_element_type=jnp.float32) + b1_ref[l]
        ffn = _gelu_exact(ffn)
        ffn = jnp.dot(ffn, w2_ref[l], preferred_element_type=jnp.float32) + b2_ref[l]
        h = _layernorm(ffn + h, ln2_g_ref[l], ln2_b_ref[l])

    o_ref[...] = h


# ---------------- forward (mirrors TextModel.forward) ----------------
@jax.jit
def text_model_forward(params, input_ids, attention_mask):
    """Returns last_layer_output [B, S, HIDDEN] (== hidden_states[-1])."""
    B, S = input_ids.shape
    ids2d = input_ids.reshape(B * S, 1).astype(jnp.int32)   # metadata-only reshape
    mask = attention_mask.astype(jnp.int32)

    out2d = pl.pallas_call(
        partial(_encoder_kernel, batch=B, seq=S),
        out_shape=jax.ShapeDtypeStruct((B * S, HIDDEN), jnp.float32),
        in_specs=[VMEM_SPEC] * 19,
        out_specs=VMEM_SPEC,
    )(
        ids2d, mask,
        params["word_emb"], params["pos_emb"], params["type_emb"],
        params["emb_ln_g"], params["emb_ln_b"],
        params["wqkv"], params["bqkv"], params["wo"], params["bo"],
        params["ln1_g"], params["ln1_b"],
        params["w1"], params["b1"], params["w2"], params["b2"],
        params["ln2_g"], params["ln2_b"],
    )

    # NOTE: the reference also computes a pooled embedding from hidden_states
    # [1], [2], [-1] through an identity ProjectionLayer; that value is never
    # returned (dead code) and is omitted here per the performance review.
    return out2d.reshape(B, S, HIDDEN)


# ---------------- deterministic parameter init ----------------
def init_params(key):
    keys = iter(jax.random.split(key, 16))

    def nrm(shape):
        return 0.02 * jax.random.normal(next(keys), shape, jnp.float32)

    L = NUM_LAYERS
    return {
        "word_emb": nrm((VOCAB, HIDDEN)),
        "pos_emb": nrm((MAX_POS, HIDDEN)),
        "type_emb": nrm((2, HIDDEN)),
        "emb_ln_g": jnp.ones((1, HIDDEN), jnp.float32),
        "emb_ln_b": jnp.zeros((1, HIDDEN), jnp.float32),
        # per-layer weights stacked on a leading layer axis; Q/K/V fused to 3H
        # (column layout: [q(H) | k(H) | v(H)], heads interleaved inside each part).
        "wqkv": nrm((L, HIDDEN, 3 * HIDDEN)),
        "bqkv": nrm((L, 1, 3 * HIDDEN)),
        "wo": nrm((L, HIDDEN, HIDDEN)),
        "bo": nrm((L, 1, HIDDEN)),
        "ln1_g": jnp.ones((L, 1, HIDDEN), jnp.float32),
        "ln1_b": jnp.zeros((L, 1, HIDDEN), jnp.float32),
        "w1": nrm((L, HIDDEN, INTER)),
        "b1": nrm((L, 1, INTER)),
        "w2": nrm((L, INTER, HIDDEN)),
        "b2": nrm((L, 1, HIDDEN)),
        "ln2_g": jnp.ones((L, 1, HIDDEN), jnp.float32),
        "ln2_b": jnp.zeros((L, 1, HIDDEN), jnp.float32),
    }


if __name__ == "__main__":
    key = jax.random.PRNGKey(0)
    pkey, ikey = jax.random.split(key)

    B, S = 2, 8
    params = init_params(pkey)
    input_ids = jax.random.randint(ikey, (B, S), 0, VOCAB, dtype=jnp.int32)
    attention_mask = jnp.array(
        [[1, 1, 1, 1, 1, 1, 1, 1],
         [1, 1, 1, 1, 1, 0, 0, 0]],
        dtype=jnp.int32,
    )

    out = text_model_forward(params, input_ids, attention_mask)
    out = jax.block_until_ready(out)
    assert out.shape == (B, S, HIDDEN) and out.dtype == jnp.float32
    assert bool(jnp.isfinite(out).all())
    print("KERNEL_OK")
</pallas_src>

<mosaic_0001>
module attributes {stable_mosaic.version = 11 : i64} {
  func.func @_encoder_kernel(%arg0: memref<16x1xi32, #tpu.memory_space<vmem>>, %arg1: memref<2x8xi32, #tpu.memory_space<vmem>>, %arg2: memref<64x32xf32, #tpu.memory_space<vmem>>, %arg3: memref<16x32xf32, #tpu.memory_space<vmem>>, %arg4: memref<2x32xf32, #tpu.memory_space<vmem>>, %arg5: memref<1x32xf32, #tpu.memory_space<vmem>>, %arg6: memref<1x32xf32, #tpu.memory_space<vmem>>, %arg7: memref<3x32x96xf32, #tpu.memory_space<vmem>>, %arg8: memref<3x1x96xf32, #tpu.memory_space<vmem>>, %arg9: memref<3x32x32xf32, #tpu.memory_space<vmem>>, %arg10: memref<3x1x32xf32, #tpu.memory_space<vmem>>, %arg11: memref<3x1x32xf32, #tpu.memory_space<vmem>>, %arg12: memref<3x1x32xf32, #tpu.memory_space<vmem>>, %arg13: memref<3x32x64xf32, #tpu.memory_space<vmem>>, %arg14: memref<3x1x64xf32, #tpu.memory_space<vmem>>, %arg15: memref<3x64x32xf32, #tpu.memory_space<vmem>>, %arg16: memref<3x1x32xf32, #tpu.memory_space<vmem>>, %arg17: memref<3x1x32xf32, #tpu.memory_space<vmem>>, %arg18: memref<3x1x32xf32, #tpu.memory_space<vmem>>, %arg19: memref<16x32xf32, #tpu.memory_space<vmem>>) attributes {dimension_semantics = [], scalar_prefetch = 0 : i64, scratch_operands = 0 : i64, tpu.core_type = #tpu.core_type<tc>} {
    %c0 = arith.constant 0 : index
    %c0_0 = arith.constant 0 : index
    %0 = vector.load %arg0[%c0, %c0_0] : memref<16x1xi32, #tpu.memory_space<vmem>>, vector<16x1xi32>
    %1 = tpu.iota {dimensions = array<i32: 1>} : vector<16x64xi32>
    %2 = vector.broadcast %0 : vector<16x1xi32> to vector<16x64xi32>
    %3 = arith.cmpi eq, %1, %2 : vector<16x64xi32>
    %cst = arith.constant 1.000000e+00 : f32
    %cst_1 = arith.constant 0.000000e+00 : f32
    %4 = vector.broadcast %cst : f32 to vector<16x64xf32>
    %5 = vector.broadcast %cst_1 : f32 to vector<16x64xf32>
    %6 = arith.select %3, %4, %5 : vector<16x64xi1>, vector<16x64xf32>
    %c0_2 = arith.constant 0 : index
    %c0_3 = arith.constant 0 : index
    %7 = vector.load %arg2[%c0_2, %c0_3] : memref<64x32xf32, #tpu.memory_space<vmem>>, vector<64x32xf32>
    %cst_4 = arith.constant dense<0.000000e+00> : vector<16x32xf32>
    %8 = tpu.matmul %6, %7, %cst_4 {dimension_numbers = #tpu.dot_dimension_numbers<[1], [0], [0], [1], [0, 0, 1, 1], [], []>} : vector<16x64xf32>, vector<64x32xf32>, vector<16x32xf32> -> vector<16x32xf32>
    %c0_5 = arith.constant 0 : index
    %c0_6 = arith.constant 0 : index
    %9 = vector.load %arg3[%c0_5, %c0_6] : memref<16x32xf32, #tpu.memory_space<vmem>>, vector<8x32xf32>
    %10 = tpu.concatenate %9, %9 in 0 : vector<8x32xf32>, vector<8x32xf32> -> vector<16x32xf32>
    %11 = arith.addf %8, %10 : vector<16x32xf32>
    %c0_7 = arith.constant 0 : index
    %c0_8 = arith.constant 0 : index
    %12 = vector.load %arg4[%c0_7, %c0_8] : memref<2x32xf32, #tpu.memory_space<vmem>>, vector<1x32xf32>
    %13 = vector.broadcast %12 : vector<1x32xf32> to vector<16x32xf32>
    %14 = arith.addf %11, %13 : vector<16x32xf32>
    %c0_9 = arith.constant 0 : index
    %c0_10 = arith.constant 0 : index
    %15 = vector.load %arg5[%c0_9, %c0_10] : memref<1x32xf32, #tpu.memory_space<vmem>>, vector<1x32xf32>
    %c0_11 = arith.constant 0 : index
    %c0_12 = arith.constant 0 : index
    %16 = vector.load %arg6[%c0_11, %c0_12] : memref<1x32xf32, #tpu.memory_space<vmem>>, vector<1x32xf32>
    %cst_13 = arith.constant dense<0.000000e+00> : vector<16xf32>
    %17 = vector.multi_reduction <add>, %14, %cst_13 [1] : vector<16x32xf32> to vector<16xf32>
    %18 = vector.shape_cast %17 : vector<16xf32> to vector<16x1xf32>
    %cst_14 = arith.constant 3.200000e+01 : f32
    %19 = vector.broadcast %cst_14 : f32 to vector<16x1xf32>
    %20 = arith.divf %18, %19 : vector<16x1xf32>
    %21 = vector.broadcast %20 : vector<16x1xf32> to vector<16x32xf32>
    %22 = arith.subf %14, %21 : vector<16x32xf32>
    %23 = arith.mulf %22, %22 : vector<16x32xf32>
    %cst_15 = arith.constant dense<0.000000e+00> : vector<16xf32>
    %24 = vector.multi_reduction <add>, %23, %cst_15 [1] : vector<16x32xf32> to vector<16xf32>
    %25 = vector.shape_cast %24 : vector<16xf32> to vector<16x1xf32>
    %cst_16 = arith.constant 3.200000e+01 : f32
    %26 = vector.broadcast %cst_16 : f32 to vector<16x1xf32>
    %27 = arith.divf %25, %26 : vector<16x1xf32>
    %28 = vector.broadcast %20 : vector<16x1xf32> to vector<16x32xf32>
    %29 = arith.subf %14, %28 : vector<16x32xf32>
    %cst_17 = arith.constant 9.99999996E-13 : f32
    %30 = vector.broadcast %cst_17 : f32 to vector<16x1xf32>
    %31 = arith.addf %27, %30 : vector<16x1xf32>
    %32 = math.rsqrt %31 : vector<16x1xf32>
    %33 = vector.broadcast %32 : vector<16x1xf32> to vector<16x32xf32>
    %34 = arith.mulf %29, %33 : vector<16x32xf32>
    %35 = vector.broadcast %15 : vector<1x32xf32> to vector<16x32xf32>
    %36 = arith.mulf %34, %35 : vector<16x32xf32>
    %37 = vector.broadcast %16 : vector<1x32xf32> to vector<16x32xf32>
    %38 = arith.addf %36, %37 : vector<16x32xf32>
    %c0_18 = arith.constant 0 : index
    %c0_19 = arith.constant 0 : index
    %39 = vector.load %arg1[%c0_18, %c0_19] : memref<2x8xi32, #tpu.memory_space<vmem>>, vector<2x8xi32>
    %40 = arith.sitofp %39 : vector<2x8xi32> to vector<2x8xf32>
    %41 = vector.extract_strided_slice %40 {offsets = [0, 0], sizes = [1, 8], strides = [1, 1]} : vector<2x8xf32> to vector<1x8xf32>
    %42 = vector.extract_strided_slice %40 {offsets = [0, 0], sizes = [1, 8], strides = [1, 1]} : vector<2x8xf32> to vector<1x8xf32>
    %43 = vector.extract_strided_slice %40 {offsets = [0, 0], sizes = [1, 8], strides = [1, 1]} : vector<2x8xf32> to vector<1x8xf32>
    %44 = vector.extract_strided_slice %40 {offsets = [0, 0], sizes = [1, 8], strides = [1, 1]} : vector<2x8xf32> to vector<1x8xf32>
    %45 = vector.extract_strided_slice %40 {offsets = [1, 0], sizes = [1, 8], strides = [1, 1]} : vector<2x8xf32> to vector<1x8xf32>
    %46 = vector.extract_strided_slice %40 {offsets = [1, 0], sizes = [1, 8], strides = [1, 1]} : vector<2x8xf32> to vector<1x8xf32>
    %47 = vector.extract_strided_slice %40 {offsets = [1, 0], sizes = [1, 8], strides = [1, 1]} : vector<2x8xf32> to vector<1x8xf32>
    %48 = vector.extract_strided_slice %40 {offsets = [1, 0], sizes = [1, 8], strides = [1, 1]} : vector<2x8xf32> to vector<1x8xf32>
    %49 = tpu.concatenate %41, %42, %43, %44, %45, %46, %47, %48 in 1 : vector<1x8xf32>, vector<1x8xf32>, vector<1x8xf32>, vector<1x8xf32>, vector<1x8xf32>, vector<1x8xf32>, vector<1x8xf32>, vector<1x8xf32> -> vector<1x64xf32>
    %cst_20 = arith.constant 1.000000e+00 : f32
    %50 = vector.broadcast %cst_20 : f32 to vector<1x64xf32>
    %51 = arith.subf %50, %49 : vector<1x64xf32>
    %cst_21 = arith.constant -1.000000e+04 : f32
    %52 = vector.broadcast %cst_21 : f32 to vector<1x64xf32>
    %53 = arith.mulf %51, %52 : vector<1x64xf32>
    %54 = tpu.iota {dimensions = array<i32: 0>} : vector<64x1xi32>
    %55 = tpu.iota {dimensions = array<i32: 1>} : vector<1x8xi32>
    %c8_i32 = arith.constant 8 : i32
    %56 = vector.broadcast %c8_i32 : i32 to vector<1x8xi32>
    %57 = arith.muli %55, %56 : vector<1x8xi32>
    %58 = vector.broadcast %54 : vector<64x1xi32> to vector<64x8xi32>
    %59 = vector.broadcast %57 : vector<1x8xi32> to vector<64x8xi32>
    %60 = arith.cmpi sge, %58, %59 : vector<64x8xi32>
    %c8_i32_22 = arith.constant 8 : i32
    %61 = vector.broadcast %c8_i32_22 : i32 to vector<1x8xi32>
    %62 = arith.addi %57, %61 : vector<1x8xi32>
    %63 = vector.broadcast %54 : vector<64x1xi32> to vector<64x8xi32>
    %64 = vector.broadcast %62 : vector<1x8xi32> to vector<64x8xi32>
    %65 = arith.cmpi slt, %63, %64 : vector<64x8xi32>
    %66 = arith.andi %60, %65 : vector<64x8xi1>
    %cst_23 = arith.constant 1.000000e+00 : f32
    %cst_24 = arith.constant 0.000000e+00 : f32
    %67 = vector.broadcast %cst_23 : f32 to vector<64x8xf32>
    %68 = vector.broadcast %cst_24 : f32 to vector<64x8xf32>
    %69 = arith.select %66, %67, %68 : vector<64x8xi1>, vector<64x8xf32>
    %cst_25 = arith.constant dense<0.000000e+00> : vector<64x64xf32>
    %70 = tpu.matmul %69, %69, %cst_25 {dimension_numbers = #tpu.dot_dimension_numbers<[1], [1], [0], [0], [0, 0, 1, 0], [], []>} : vector<64x8xf32>, vector<64x8xf32>, vector<64x64xf32> -> vector<64x64xf32>
    %cst_26 = arith.constant 1.000000e+00 : f32
    %71 = vector.broadcast %cst_26 : f32 to vector<64x64xf32>
    %72 = arith.subf %71, %70 : vector<64x64xf32>
    %cst_27 = arith.constant -1.000000e+09 : f32
    %73 = vector.broadcast %cst_27 : f32 to vector<64x64xf32>
    %74 = arith.mulf %72, %73 : vector<64x64xf32>
    %75 = vector.broadcast %53 : vector<1x64xf32> to vector<64x64xf32>
    %76 = arith.addf %74, %75 : vector<64x64xf32>
    %c0_28 = arith.constant 0 : index
    %c0_29 = arith.constant 0 : index
    %c0_30 = arith.constant 0 : index
    %77 = vector.load %arg7[%c0_28, %c0_29, %c0_30] : memref<3x32x96xf32, #tpu.memory_space<vmem>>, vector<1x32x96xf32>
    %78 = vector.shape_cast %77 : vector<1x32x96xf32> to vector<32x96xf32>
    %cst_31 = arith.constant dense<0.000000e+00> : vector<16x96xf32>
    %79 = tpu.matmul %38, %78, %cst_31 {dimension_numbers = #tpu.dot_dimension_numbers<[1], [0], [0], [1], [0, 0, 1, 1], [], []>} : vector<16x32xf32>, vector<32x96xf32>, vector<16x96xf32> -> vector<16x96xf32>
    %c0_32 = arith.constant 0 : index
    %c0_33 = arith.constant 0 : index
    %c0_34 = arith.constant 0 : index
    %80 = vector.load %arg8[%c0_32, %c0_33, %c0_34] : memref<3x1x96xf32, #tpu.memory_space<vmem>>, vector<1x1x96xf32>
    %81 = vector.shape_cast %80 : vector<1x1x96xf32> to vector<1x96xf32>
    %82 = vector.broadcast %81 : vector<1x96xf32> to vector<16x96xf32>
    %83 = arith.addf %79, %82 : vector<16x96xf32>
    %84 = vector.extract_strided_slice %83 {offsets = [0, 0], sizes = [8, 8], strides = [1, 1]} : vector<16x96xf32> to vector<8x8xf32>
    %85 = vector.extract_strided_slice %83 {offsets = [0, 8], sizes = [8, 8], strides = [1, 1]} : vector<16x96xf32> to vector<8x8xf32>
    %86 = vector.extract_strided_slice %83 {offsets = [0, 16], sizes = [8, 8], strides = [1, 1]} : vector<16x96xf32> to vector<8x8xf32>
    %87 = vector.extract_strided_slice %83 {offsets = [0, 24], sizes = [8, 8], strides = [1, 1]} : vector<16x96xf32> to vector<8x8xf32>
    %88 = vector.extract_strided_slice %83 {offsets = [8, 0], sizes = [8, 8], strides = [1, 1]} : vector<16x96xf32> to vector<8x8xf32>
    %89 = vector.extract_strided_slice %83 {offsets = [8, 8], sizes = [8, 8], strides = [1, 1]} : vector<16x96xf32> to vector<8x8xf32>
    %90 = vector.extract_strided_slice %83 {offsets = [8, 16], sizes = [8, 8], strides = [1, 1]} : vector<16x96xf32> to vector<8x8xf32>
    %91 = vector.extract_strided_slice %83 {offsets = [8, 24], sizes = [8, 8], strides = [1, 1]} : vector<16x96xf32> to vector<8x8xf32>
    %92 = tpu.concatenate %84, %85, %86, %87, %88, %89, %90, %91 in 0 : vector<8x8xf32>, vector<8x8xf32>, vector<8x8xf32>, vector<8x8xf32>, vector<8x8xf32>, vector<8x8xf32>, vector<8x8xf32>, vector<8x8xf32> -> vector<64x8xf32>
    %93 = vector.extract_strided_slice %83 {offsets = [0, 32], sizes = [8, 8], strides = [1, 1]} : vector<16x96xf32> to vector<8x8xf32>
    %94 = vector.extract_strided_slice %83 {offsets = [0, 40], sizes = [8, 8], strides = [1, 1]} : vector<16x96xf32> to vector<8x8xf32>
    %95 = vector.extract_strided_slice %83 {offsets = [0, 48], sizes = [8, 8], strides = [1, 1]} : vector<16x96xf32> to vector<8x8xf32>
    %96 = vector.extract_strided_slice %83 {offsets = [0, 56], sizes = [8, 8], strides = [1, 1]} : vector<16x96xf32> to vector<8x8xf32>
    %97 = vector.extract_strided_slice %83 {offsets = [8, 32], sizes = [8, 8], strides = [1, 1]} : vector<16x96xf32> to vector<8x8xf32>
    %98 = vector.extract_strided_slice %83 {offsets = [8, 40], sizes = [8, 8], strides = [1, 1]} : vector<16x96xf32> to vector<8x8xf32>
    %99 = vector.extract_strided_slice %83 {offsets = [8, 48], sizes = [8, 8], strides = [1, 1]} : vector<16x96xf32> to vector<8x8xf32>
    %100 = vector.extract_strided_slice %83 {offsets = [8, 56], sizes = [8, 8], strides = [1, 1]} : vector<16x96xf32> to vector<8x8xf32>
    %101 = tpu.concatenate %93, %94, %95, %96, %97, %98, %99, %100 in 0 : vector<8x8xf32>, vector<8x8xf32>, vector<8x8xf32>, vector<8x8xf32>, vector<8x8xf32>, vector<8x8xf32>, vector<8x8xf32>, vector<8x8xf32> -> vector<64x8xf32>
    %102 = vector.extract_strided_slice %83 {offsets = [0, 64], sizes = [8, 8], strides = [1, 1]} : vector<16x96xf32> to vector<8x8xf32>
    %103 = vector.extract_strided_slice %83 {offsets = [0, 72], sizes = [8, 8], strides = [1, 1]} : vector<16x96xf32> to vector<8x8xf32>
    %104 = vector.extract_strided_slice %83 {offsets = [0, 80], sizes = [8, 8], strides = [1, 1]} : vector<16x96xf32> to vector<8x8xf32>
    %105 = vector.extract_strided_slice %83 {offsets = [0, 88], sizes = [8, 8], strides = [1, 1]} : vector<16x96xf32> to vector<8x8xf32>
    %106 = vector.extract_strided_slice %83 {offsets = [8, 64], sizes = [8, 8], strides = [1, 1]} : vector<16x96xf32> to vector<8x8xf32>
    %107 = vector.extract_strided_slice %83 {offsets = [8, 72], sizes = [8, 8], strides = [1, 1]} : vector<16x96xf32> to vector<8x8xf32>
    %108 = vector.extract_strided_slice %83 {offsets = [8, 80], sizes = [8, 8], strides = [1, 1]} : vector<16x96xf32> to vector<8x8xf32>
    %109 = vector.extract_strided_slice %83 {offsets = [8, 88], sizes = [8, 8], strides = [1, 1]} : vector<16x96xf32> to vector<8x8xf32>
    %110 = tpu.concatenate %102, %103, %104, %105, %106, %107, %108, %109 in 0 : vector<8x8xf32>, vector<8x8xf32>, vector<8x8xf32>, vector<8x8xf32>, vector<8x8xf32>, vector<8x8xf32>, vector<8x8xf32>, vector<8x8xf32> -> vector<64x8xf32>
    %cst_35 = arith.constant dense<0.000000e+00> : vector<64x64xf32>
    %111 = tpu.matmul %92, %101, %cst_35 {dimension_numbers = #tpu.dot_dimension_numbers<[1], [1], [0], [0], [0, 0, 1, 0], [], []>} : vector<64x8xf32>, vector<64x8xf32>, vector<64x64xf32> -> vector<64x64xf32>
    %cst_36 = arith.constant 0.353553385 : f32
    %112 = vector.broadcast %cst_36 : f32 to vector<64x64xf32>
    %113 = arith.mulf %111, %112 : vector<64x64xf32>
    %114 = arith.addf %113, %76 : vector<64x64xf32>
    %cst_37 = arith.constant dense<0xFF800000> : vector<64xf32>
    %115 = vector.multi_reduction <maximumf>, %114, %cst_37 [1] : vector<64x64xf32> to vector<64xf32>
    %116 = vector.shape_cast %115 : vector<64xf32> to vector<64x1xf32>
    %117 = vector.broadcast %116 : vector<64x1xf32> to vector<64x64xf32>
    %118 = arith.subf %114, %117 : vector<64x64xf32>
    %119 = math.exp %118 : vector<64x64xf32>
    %cst_38 = arith.constant dense<0.000000e+00> : vector<64xf32>
    %120 = vector.multi_reduction <add>, %119, %cst_38 [1] : vector<64x64xf32> to vector<64xf32>
    %121 = vector.shape_cast %120 : vector<64xf32> to vector<64x1xf32>
    %122 = vector.broadcast %121 : vector<64x1xf32> to vector<64x64xf32>
    %123 = arith.divf %119, %122 : vector<64x64xf32>
    %cst_39 = arith.constant dense<0.000000e+00> : vector<64x8xf32>
    %124 = tpu.matmul %123, %110, %cst_39 {dimension_numbers = #tpu.dot_dimension_numbers<[1], [0], [0], [1], [0, 0, 1, 1], [], []>} : vector<64x64xf32>, vector<64x8xf32>, vector<64x8xf32> -> vector<64x8xf32>
    %125 = vector.extract_strided_slice %124 {offsets = [0, 0], sizes = [8, 8], strides = [1, 1]} : vector<64x8xf32> to vector<8x8xf32>
    %126 = vector.extract_strided_slice %124 {offsets = [8, 0], sizes = [8, 8], strides = [1, 1]} : vector<64x8xf32> to vector<8x8xf32>
    %127 = vector.extract_strided_slice %124 {offsets = [16, 0], sizes = [8, 8], strides = [1, 1]} : vector<64x8xf32> to vector<8x8xf32>
    %128 = vector.extract_strided_slice %124 {offsets = [24, 0], sizes = [8, 8], strides = [1, 1]} : vector<64x8xf32> to vector<8x8xf32>
    %129 = tpu.concatenate %125, %126, %127, %128 in 1 : vector<8x8xf32>, vector<8x8xf32>, vector<8x8xf32>, vector<8x8xf32> -> vector<8x32xf32>
    %130 = vector.extract_strided_slice %124 {offsets = [32, 0], sizes = [8, 8], strides = [1, 1]} : vector<64x8xf32> to vector<8x8xf32>
    %131 = vector.extract_strided_slice %124 {offsets = [40, 0], sizes = [8, 8], strides = [1, 1]} : vector<64x8xf32> to vector<8x8xf32>
    %132 = vector.extract_strided_slice %124 {offsets = [48, 0], sizes = [8, 8], strides = [1, 1]} : vector<64x8xf32> to vector<8x8xf32>
    %133 = vector.extract_strided_slice %124 {offsets = [56, 0], sizes = [8, 8], strides = [1, 1]} : vector<64x8xf32> to vector<8x8xf32>
    %134 = tpu.concatenate %130, %131, %132, %133 in 1 : vector<8x8xf32>, vector<8x8xf32>, vector<8x8xf32>, vector<8x8xf32> -> vector<8x32xf32>
    %135 = tpu.concatenate %129, %134 in 0 : vector<8x32xf32>, vector<8x32xf32> -> vector<16x32xf32>
    %c0_40 = arith.constant 0 : index
    %c0_41 = arith.constant 0 : index
    %c0_42 = arith.constant 0 : index
    %136 = vector.load %arg9[%c0_40, %c0_41, %c0_42] : memref<3x32x32xf32, #tpu.memory_space<vmem>>, vector<1x32x32xf32>
    %137 = vector.shape_cast %136 : vector<1x32x32xf32> to vector<32x32xf32>
    %cst_43 = arith.constant dense<0.000000e+00> : vector<16x32xf32>
    %138 = tpu.matmul %135, %137, %cst_43 {dimension_numbers = #tpu.dot_dimension_numbers<[1], [0], [0], [1], [0, 0, 1, 1], [], []>} : vector<16x32xf32>, vector<32x32xf32>, vector<16x32xf32> -> vector<16x32xf32>
    %c0_44 = arith.constant 0 : index
    %c0_45 = arith.constant 0 : index
    %c0_46 = arith.constant 0 : index
    %139 = vector.load %arg10[%c0_44, %c0_45, %c0_46] : memref<3x1x32xf32, #tpu.memory_space<vmem>>, vector<1x1x32xf32>
    %140 = vector.shape_cast %139 : vector<1x1x32xf32> to vector<1x32xf32>
    %141 = vector.broadcast %140 : vector<1x32xf32> to vector<16x32xf32>
    %142 = arith.addf %138, %141 : vector<16x32xf32>
    %143 = arith.addf %142, %38 : vector<16x32xf32>
    %c0_47 = arith.constant 0 : index
    %c0_48 = arith.constant 0 : index
    %c0_49 = arith.constant 0 : index
    %144 = vector.load %arg11[%c0_47, %c0_48, %c0_49] : memref<3x1x32xf32, #tpu.memory_space<vmem>>, vector<1x1x32xf32>
    %145 = vector.shape_cast %144 : vector<1x1x32xf32> to vector<1x32xf32>
    %c0_50 = arith.constant 0 : index
    %c0_51 = arith.constant 0 : index
    %c0_52 = arith.constant 0 : index
    %146 = vector.load %arg12[%c0_50, %c0_51, %c0_52] : memref<3x1x32xf32, #tpu.memory_space<vmem>>, vector<1x1x32xf32>
    %147 = vector.shape_cast %146 : vector<1x1x32xf32> to vector<1x32xf32>
    %cst_53 = arith.constant dense<0.000000e+00> : vector<16xf32>
    %148 = vector.multi_reduction <add>, %143, %cst_53 [1] : vector<16x32xf32> to vector<16xf32>
    %149 = vector.shape_cast %148 : vector<16xf32> to vector<16x1xf32>
    %cst_54 = arith.constant 3.200000e+01 : f32
    %150 = vector.broadcast %cst_54 : f32 to vector<16x1xf32>
    %151 = arith.divf %149, %150 : vector<16x1xf32>
    %152 = vector.broadcast %151 : vector<16x1xf32> to vector<16x32xf32>
    %153 = arith.subf %143, %152 : vector<16x32xf32>
    %154 = arith.mulf %153, %153 : vector<16x32xf32>
    %cst_55 = arith.constant dense<0.000000e+00> : vector<16xf32>
    %155 = vector.multi_reduction <add>, %154, %cst_55 [1] : vector<16x32xf32> to vector<16xf32>
    %156 = vector.shape_cast %155 : vector<16xf32> to vector<16x1xf32>
    %cst_56 = arith.constant 3.200000e+01 : f32
    %157 = vector.broadcast %cst_56 : f32 to vector<16x1xf32>
    %158 = arith.divf %156, %157 : vector<16x1xf32>
    %159 = vector.broadcast %151 : vector<16x1xf32> to vector<16x32xf32>
    %160 = arith.subf %143, %159 : vector<16x32xf32>
    %cst_57 = arith.constant 9.99999996E-13 : f32
    %161 = vector.broadcast %cst_57 : f32 to vector<16x1xf32>
    %162 = arith.addf %158, %161 : vector<16x1xf32>
    %163 = math.rsqrt %162 : vector<16x1xf32>
    %164 = vector.broadcast %163 : vector<16x1xf32> to vector<16x32xf32>
    %165 = arith.mulf %160, %164 : vector<16x32xf32>
    %166 = vector.broadcast %145 : vector<1x32xf32> to vector<16x32xf32>
    %167 = arith.mulf %165, %166 : vector<16x32xf32>
    %168 = vector.broadcast %147 : vector<1x32xf32> to vector<16x32xf32>
    %169 = arith.addf %167, %168 : vector<16x32xf32>
    %c0_58 = arith.constant 0 : index
    %c0_59 = arith.constant 0 : index
    %c0_60 = arith.constant 0 : index
    %170 = vector.load %arg13[%c0_58, %c0_59, %c0_60] : memref<3x32x64xf32, #tpu.memory_space<vmem>>, vector<1x32x64xf32>
    %171 = vector.shape_cast %170 : vector<1x32x64xf32> to vector<32x64xf32>
    %cst_61 = arith.constant dense<0.000000e+00> : vector<16x64xf32>
    %172 = tpu.matmul %169, %171, %cst_61 {dimension_numbers = #tpu.dot_dimension_numbers<[1], [0], [0], [1], [0, 0, 1, 1], [], []>} : vector<16x32xf32>, vector<32x64xf32>, vector<16x64xf32> -> vector<16x64xf32>
    %c0_62 = arith.constant 0 : index
    %c0_63 = arith.constant 0 : index
    %c0_64 = arith.constant 0 : index
    %173 = vector.load %arg14[%c0_62, %c0_63, %c0_64] : memref<3x1x64xf32, #tpu.memory_space<vmem>>, vector<1x1x64xf32>
    %174 = vector.shape_cast %173 : vector<1x1x64xf32> to vector<1x64xf32>
    %175 = vector.broadcast %174 : vector<1x64xf32> to vector<16x64xf32>
    %176 = arith.addf %172, %175 : vector<16x64xf32>
    %cst_65 = arith.constant 5.000000e-01 : f32
    %177 = vector.broadcast %cst_65 : f32 to vector<16x64xf32>
    %178 = arith.mulf %177, %176 : vector<16x64xf32>
    %cst_66 = arith.constant 0.707106769 : f32
    %179 = vector.broadcast %cst_66 : f32 to vector<16x64xf32>
    %180 = arith.mulf %176, %179 : vector<16x64xf32>
    %cst_67 = arith.constant 0.000000e+00 : f32
    %181 = vector.broadcast %cst_67 : f32 to vector<16x64xf32>
    %182 = arith.cmpf oge, %180, %181 : vector<16x64xf32>
    %cst_68 = arith.constant 1.000000e+00 : f32
    %cst_69 = arith.constant -1.000000e+00 : f32
    %183 = vector.broadcast %cst_68 : f32 to vector<16x64xf32>
    %184 = vector.broadcast %cst_69 : f32 to vector<16x64xf32>
    %185 = arith.select %182, %183, %184 : vector<16x64xi1>, vector<16x64xf32>
    %186 = math.absf %180 : vector<16x64xf32>
    %cst_70 = arith.constant 0.327591091 : f32
    %187 = vector.broadcast %cst_70 : f32 to vector<16x64xf32>
    %188 = arith.mulf %187, %186 : vector<16x64xf32>
    %cst_71 = arith.constant 1.000000e+00 : f32
    %189 = vector.broadcast %cst_71 : f32 to vector<16x64xf32>
    %190 = arith.addf %189, %188 : vector<16x64xf32>
    %cst_72 = arith.constant 1.000000e+00 : f32
    %191 = vector.broadcast %cst_72 : f32 to vector<16x64xf32>
    %192 = arith.divf %191, %190 : vector<16x64xf32>
    %cst_73 = arith.constant 1.06140542 : f32
    %193 = vector.broadcast %cst_73 : f32 to vector<16x64xf32>
    %194 = arith.mulf %193, %192 : vector<16x64xf32>
    %cst_74 = arith.constant -1.45315206 : f32
    %195 = vector.broadcast %cst_74 : f32 to vector<16x64xf32>
    %196 = arith.addf %194, %195 : vector<16x64xf32>
    %197 = arith.mulf %196, %192 : vector<16x64xf32>
    %cst_75 = arith.constant 1.42141378 : f32
    %198 = vector.broadcast %cst_75 : f32 to vector<16x64xf32>
    %199 = arith.addf %197, %198 : vector<16x64xf32>
    %200 = arith.mulf %199, %192 : vector<16x64xf32>
    %cst_76 = arith.constant -0.284496725 : f32
    %201 = vector.broadcast %cst_76 : f32 to vector<16x64xf32>
    %202 = arith.addf %200, %201 : vector<16x64xf32>
    %203 = arith.mulf %202, %192 : vector<16x64xf32>
    %cst_77 = arith.constant 0.254829586 : f32
    %204 = vector.broadcast %cst_77 : f32 to vector<16x64xf32>
    %205 = arith.addf %203, %204 : vector<16x64xf32>
    %206 = arith.mulf %205, %192 : vector<16x64xf32>
    %cst_78 = arith.constant 0.000000e+00 : f32
    %207 = vector.broadcast %cst_78 : f32 to vector<16x64xf32>
    %208 = arith.subf %207, %186 : vector<16x64xf32>
    %209 = arith.mulf %208, %186 : vector<16x64xf32>
    %210 = math.exp %209 : vector<16x64xf32>
    %211 = arith.mulf %206, %210 : vector<16x64xf32>
    %cst_79 = arith.constant 1.000000e+00 : f32
    %212 = vector.broadcast %cst_79 : f32 to vector<16x64xf32>
    %213 = arith.subf %212, %211 : vector<16x64xf32>
    %214 = arith.mulf %185, %213 : vector<16x64xf32>
    %cst_80 = arith.constant 1.000000e+00 : f32
    %215 = vector.broadcast %cst_80 : f32 to vector<16x64xf32>
    %216 = arith.addf %215, %214 : vector<16x64xf32>
    %217 = arith.mulf %178, %216 : vector<16x64xf32>
    %c0_81 = arith.constant 0 : index
    %c0_82 = arith.constant 0 : index
    %c0_83 = arith.constant 0 : index
    %218 = vector.load %arg15[%c0_81, %c0_82, %c0_83] : memref<3x64x32xf32, #tpu.memory_space<vmem>>, vector<1x64x32xf32>
    %219 = vector.shape_cast %218 : vector<1x64x32xf32> to vector<64x32xf32>
    %cst_84 = arith.constant dense<0.000000e+00> : vector<16x32xf32>
    %220 = tpu.matmul %217, %219, %cst_84 {dimension_numbers = #tpu.dot_dimension_numbers<[1], [0], [0], [1], [0, 0, 1, 1], [], []>} : vector<16x64xf32>, vector<64x32xf32>, vector<16x32xf32> -> vector<16x32xf32>
    %c0_85 = arith.constant 0 : index
    %c0_86 = arith.constant 0 : index
    %c0_87 = arith.constant 0 : index
    %221 = vector.load %arg16[%c0_85, %c0_86, %c0_87] : memref<3x1x32xf32, #tpu.memory_space<vmem>>, vector<1x1x32xf32>
    %222 = vector.shape_cast %221 : vector<1x1x32xf32> to vector<1x32xf32>
    %223 = vector.broadcast %222 : vector<1x32xf32> to vector<16x32xf32>
    %224 = arith.addf %220, %223 : vector<16x32xf32>
    %225 = arith.addf %224, %169 : vector<16x32xf32>
    %c0_88 = arith.constant 0 : index
    %c0_89 = arith.constant 0 : index
    %c0_90 = arith.constant 0 : index
    %226 = vector.load %arg17[%c0_88, %c0_89, %c0_90] : memref<3x1x32xf32, #tpu.memory_space<vmem>>, vector<1x1x32xf32>
    %227 = vector.shape_cast %226 : vector<1x1x32xf32> to vector<1x32xf32>
    %c0_91 = arith.constant 0 : index
    %c0_92 = arith.constant 0 : index
    %c0_93 = arith.constant 0 : index
    %228 = vector.load %arg18[%c0_91, %c0_92, %c0_93] : memref<3x1x32xf32, #tpu.memory_space<vmem>>, vector<1x1x32xf32>
    %229 = vector.shape_cast %228 : vector<1x1x32xf32> to vector<1x32xf32>
    %cst_94 = arith.constant dense<0.000000e+00> : vector<16xf32>
    %230 = vector.multi_reduction <add>, %225, %cst_94 [1] : vector<16x32xf32> to vector<16xf32>
    %231 = vector.shape_cast %230 : vector<16xf32> to vector<16x1xf32>
    %cst_95 = arith.constant 3.200000e+01 : f32
    %232 = vector.broadcast %cst_95 : f32 to vector<16x1xf32>
    %233 = arith.divf %231, %232 : vector<16x1xf32>
    %234 = vector.broadcast %233 : vector<16x1xf32> to vector<16x32xf32>
    %235 = arith.subf %225, %234 : vector<16x32xf32>
    %236 = arith.mulf %235, %235 : vector<16x32xf32>
    %cst_96 = arith.constant dense<0.000000e+00> : vector<16xf32>
    %237 = vector.multi_reduction <add>, %236, %cst_96 [1] : vector<16x32xf32> to vector<16xf32>
    %238 = vector.shape_cast %237 : vector<16xf32> to vector<16x1xf32>
    %cst_97 = arith.constant 3.200000e+01 : f32
    %239 = vector.broadcast %cst_97 : f32 to vector<16x1xf32>
    %240 = arith.divf %238, %239 : vector<16x1xf32>
    %241 = vector.broadcast %233 : vector<16x1xf32> to vector<16x32xf32>
    %242 = arith.subf %225, %241 : vector<16x32xf32>
    %cst_98 = arith.constant 9.99999996E-13 : f32
    %243 = vector.broadcast %cst_98 : f32 to vector<16x1xf32>
    %244 = arith.addf %240, %243 : vector<16x1xf32>
    %245 = math.rsqrt %244 : vector<16x1xf32>
    %246 = vector.broadcast %245 : vector<16x1xf32> to vector<16x32xf32>
    %247 = arith.mulf %242, %246 : vector<16x32xf32>
    %248 = vector.broadcast %227 : vector<1x32xf32> to vector<16x32xf32>
    %249 = arith.mulf %247, %248 : vector<16x32xf32>
    %250 = vector.broadcast %229 : vector<1x32xf32> to vector<16x32xf32>
    %251 = arith.addf %249, %250 : vector<16x32xf32>
    %c1 = arith.constant 1 : index
    %c0_99 = arith.constant 0 : index
    %c0_100 = arith.constant 0 : index
    %252 = vector.load %arg7[%c1, %c0_99, %c0_100] : memref<3x32x96xf32, #tpu.memory_space<vmem>>, vector<1x32x96xf32>
    %253 = vector.shape_cast %252 : vector<1x32x96xf32> to vector<32x96xf32>
    %cst_101 = arith.constant dense<0.000000e+00> : vector<16x96xf32>
    %254 = tpu.matmul %251, %253, %cst_101 {dimension_numbers = #tpu.dot_dimension_numbers<[1], [0], [0], [1], [0, 0, 1, 1], [], []>} : vector<16x32xf32>, vector<32x96xf32>, vector<16x96xf32> -> vector<16x96xf32>
    %c1_102 = arith.constant 1 : index
    %c0_103 = arith.constant 0 : index
    %c0_104 = arith.constant 0 : index
    %255 = vector.load %arg8[%c1_102, %c0_103, %c0_104] : memref<3x1x96xf32, #tpu.memory_space<vmem>>, vector<1x1x96xf32>
    %256 = vector.shape_cast %255 : vector<1x1x96xf32> to vector<1x96xf32>
    %257 = vector.broadcast %256 : vector<1x96xf32> to vector<16x96xf32>
    %258 = arith.addf %254, %257 : vector<16x96xf32>
    %259 = vector.extract_strided_slice %258 {offsets = [0, 0], sizes = [8, 8], strides = [1, 1]} : vector<16x96xf32> to vector<8x8xf32>
    %260 = vector.extract_strided_slice %258 {offsets = [0, 8], sizes = [8, 8], strides = [1, 1]} : vector<16x96xf32> to vector<8x8xf32>
    %261 = vector.extract_strided_slice %258 {offsets = [0, 16], sizes = [8, 8], strides = [1, 1]} : vector<16x96xf32> to vector<8x8xf32>
    %262 = vector.extract_strided_slice %258 {offsets = [0, 24], sizes = [8, 8], strides = [1, 1]} : vector<16x96xf32> to vector<8x8xf32>
    %263 = vector.extract_strided_slice %258 {offsets = [8, 0], sizes = [8, 8], strides = [1, 1]} : vector<16x96xf32> to vector<8x8xf32>
    %264 = vector.extract_strided_slice %258 {offsets = [8, 8], sizes = [8, 8], strides = [1, 1]} : vector<16x96xf32> to vector<8x8xf32>
    %265 = vector.extract_strided_slice %258 {offsets = [8, 16], sizes = [8, 8], strides = [1, 1]} : vector<16x96xf32> to vector<8x8xf32>
    %266 = vector.extract_strided_slice %258 {offsets = [8, 24], sizes = [8, 8], strides = [1, 1]} : vector<16x96xf32> to vector<8x8xf32>
    %267 = tpu.concatenate %259, %260, %261, %262, %263, %264, %265, %266 in 0 : vector<8x8xf32>, vector<8x8xf32>, vector<8x8xf32>, vector<8x8xf32>, vector<8x8xf32>, vector<8x8xf32>, vector<8x8xf32>, vector<8x8xf32> -> vector<64x8xf32>
    %268 = vector.extract_strided_slice %258 {offsets = [0, 32], sizes = [8, 8], strides = [1, 1]} : vector<16x96xf32> to vector<8x8xf32>
    %269 = vector.extract_strided_slice %258 {offsets = [0, 40], sizes = [8, 8], strides = [1, 1]} : vector<16x96xf32> to vector<8x8xf32>
    %270 = vector.extract_strided_slice %258 {offsets = [0, 48], sizes = [8, 8], strides = [1, 1]} : vector<16x96xf32> to vector<8x8xf32>
    %271 = vector.extract_strided_slice %258 {offsets = [0, 56], sizes = [8, 8], strides = [1, 1]} : vector<16x96xf32> to vector<8x8xf32>
    %272 = vector.extract_strided_slice %258 {offsets = [8, 32], sizes = [8, 8], strides = [1, 1]} : vector<16x96xf32> to vector<8x8xf32>
    %273 = vector.extract_strided_slice %258 {offsets = [8, 40], sizes = [8, 8], strides = [1, 1]} : vector<16x96xf32> to vector<8x8xf32>
    %274 = vector.extract_strided_slice %258 {offsets = [8, 48], sizes = [8, 8], strides = [1, 1]} : vector<16x96xf32> to vector<8x8xf32>
    %275 = vector.extract_strided_slice %258 {offsets = [8, 56], sizes = [8, 8], strides = [1, 1]} : vector<16x96xf32> to vector<8x8xf32>
    %276 = tpu.concatenate %268, %269, %270, %271, %272, %273, %274, %275 in 0 : vector<8x8xf32>, vector<8x8xf32>, vector<8x8xf32>, vector<8x8xf32>, vector<8x8xf32>, vector<8x8xf32>, vector<8x8xf32>, vector<8x8xf32> -> vector<64x8xf32>
    %277 = vector.extract_strided_slice %258 {offsets = [0, 64], sizes = [8, 8], strides = [1, 1]} : vector<16x96xf32> to vector<8x8xf32>
    %278 = vector.extract_strided_slice %258 {offsets = [0, 72], sizes = [8, 8], strides = [1, 1]} : vector<16x96xf32> to vector<8x8xf32>
    %279 = vector.extract_strided_slice %258 {offsets = [0, 80], sizes = [8, 8], strides = [1, 1]} : vector<16x96xf32> to vector<8x8xf32>
    %280 = vector.extract_strided_slice %258 {offsets = [0, 88], sizes = [8, 8], strides = [1, 1]} : vector<16x96xf32> to vector<8x8xf32>
    %281 = vector.extract_strided_slice %258 {offsets = [8, 64], sizes = [8, 8], strides = [1, 1]} : vector<16x96xf32> to vector<8x8xf32>
    %282 = vector.extract_strided_slice %258 {offsets = [8, 72], sizes = [8, 8], strides = [1, 1]} : vector<16x96xf32> to vector<8x8xf32>
    %283 = vector.extract_strided_slice %258 {offsets = [8, 80], sizes = [8, 8], strides = [1, 1]} : vector<16x96xf32> to vector<8x8xf32>
    %284 = vector.extract_strided_slice %258 {offsets = [8, 88], sizes = [8, 8], strides = [1, 1]} : vector<16x96xf32> to vector<8x8xf32>
    %285 = tpu.concatenate %277, %278, %279, %280, %281, %282, %283, %284 in 0 : vector<8x8xf32>, vector<8x8xf32>, vector<8x8xf32>, vector<8x8xf32>, vector<8x8xf32>, vector<8x8xf32>, vector<8x8xf32>, vector<8x8xf32> -> vector<64x8xf32>
    %cst_105 = arith.constant dense<0.000000e+00> : vector<64x64xf32>
    %286 = tpu.matmul %267, %276, %cst_105 {dimension_numbers = #tpu.dot_dimension_numbers<[1], [1], [0], [0], [0, 0, 1, 0], [], []>} : vector<64x8xf32>, vector<64x8xf32>, vector<64x64xf32> -> vector<64x64xf32>
    %cst_106 = arith.constant 0.353553385 : f32
    %287 = vector.broadcast %cst_106 : f32 to vector<64x64xf32>
    %288 = arith.mulf %286, %287 : vector<64x64xf32>
    %289 = arith.addf %288, %76 : vector<64x64xf32>
    %cst_107 = arith.constant dense<0xFF800000> : vector<64xf32>
    %290 = vector.multi_reduction <maximumf>, %289, %cst_107 [1] : vector<64x64xf32> to vector<64xf32>
    %291 = vector.shape_cast %290 : vector<64xf32> to vector<64x1xf32>
    %292 = vector.broadcast %291 : vector<64x1xf32> to vector<64x64xf32>
    %293 = arith.subf %289, %292 : vector<64x64xf32>
    %294 = math.exp %293 : vector<64x64xf32>
    %cst_108 = arith.constant dense<0.000000e+00> : vector<64xf32>
    %295 = vector.multi_reduction <add>, %294, %cst_108 [1] : vector<64x64xf32> to vector<64xf32>
    %296 = vector.shape_cast %295 : vector<64xf32> to vector<64x1xf32>
    %297 = vector.broadcast %296 : vector<64x1xf32> to vector<64x64xf32>
    %298 = arith.divf %294, %297 : vector<64x64xf32>
    %cst_109 = arith.constant dense<0.000000e+00> : vector<64x8xf32>
    %299 = tpu.matmul %298, %285, %cst_109 {dimension_numbers = #tpu.dot_dimension_numbers<[1], [0], [0], [1], [0, 0, 1, 1], [], []>} : vector<64x64xf32>, vector<64x8xf32>, vector<64x8xf32> -> vector<64x8xf32>
    %300 = vector.extract_strided_slice %299 {offsets = [0, 0], sizes = [8, 8], strides = [1, 1]} : vector<64x8xf32> to vector<8x8xf32>
    %301 = vector.extract_strided_slice %299 {offsets = [8, 0], sizes = [8, 8], strides = [1, 1]} : vector<64x8xf32> to vector<8x8xf32>
    %302 = vector.extract_strided_slice %299 {offsets = [16, 0], sizes = [8, 8], strides = [1, 1]} : vector<64x8xf32> to vector<8x8xf32>
    %303 = vector.extract_strided_slice %299 {offsets = [24, 0], sizes = [8, 8], strides = [1, 1]} : vector<64x8xf32> to vector<8x8xf32>
    %304 = tpu.concatenate %300, %301, %302, %303 in 1 : vector<8x8xf32>, vector<8x8xf32>, vector<8x8xf32>, vector<8x8xf32> -> vector<8x32xf32>
    %305 = vector.extract_strided_slice %299 {offsets = [32, 0], sizes = [8, 8], strides = [1, 1]} : vector<64x8xf32> to vector<8x8xf32>
    %306 = vector.extract_strided_slice %299 {offsets = [40, 0], sizes = [8, 8], strides = [1, 1]} : vector<64x8xf32> to vector<8x8xf32>
    %307 = vector.extract_strided_slice %299 {offsets = [48, 0], sizes = [8, 8], strides = [1, 1]} : vector<64x8xf32> to vector<8x8xf32>
    %308 = vector.extract_strided_slice %299 {offsets = [56, 0], sizes = [8, 8], strides = [1, 1]} : vector<64x8xf32> to vector<8x8xf32>
    %309 = tpu.concatenate %305, %306, %307, %308 in 1 : vector<8x8xf32>, vector<8x8xf32>, vector<8x8xf32>, vector<8x8xf32> -> vector<8x32xf32>
    %310 = tpu.concatenate %304, %309 in 0 : vector<8x32xf32>, vector<8x32xf32> -> vector<16x32xf32>
    %c1_110 = arith.constant 1 : index
    %c0_111 = arith.constant 0 : index
    %c0_112 = arith.constant 0 : index
    %311 = vector.load %arg9[%c1_110, %c0_111, %c0_112] : memref<3x32x32xf32, #tpu.memory_space<vmem>>, vector<1x32x32xf32>
    %312 = vector.shape_cast %311 : vector<1x32x32xf32> to vector<32x32xf32>
    %cst_113 = arith.constant dense<0.000000e+00> : vector<16x32xf32>
    %313 = tpu.matmul %310, %312, %cst_113 {dimension_numbers = #tpu.dot_dimension_numbers<[1], [0], [0], [1], [0, 0, 1, 1], [], []>} : vector<16x32xf32>, vector<32x32xf32>, vector<16x32xf32> -> vector<16x32xf32>
    %c1_114 = arith.constant 1 : index
    %c0_115 = arith.constant 0 : index
    %c0_116 = arith.constant 0 : index
    %314 = vector.load %arg10[%c1_114, %c0_115, %c0_116] : memref<3x1x32xf32, #tpu.memory_space<vmem>>, vector<1x1x32xf32>
    %315 = vector.shape_cast %314 : vector<1x1x32xf32> to vector<1x32xf32>
    %316 = vector.broadcast %315 : vector<1x32xf32> to vector<16x32xf32>
    %317 = arith.addf %313, %316 : vector<16x32xf32>
    %318 = arith.addf %317, %251 : vector<16x32xf32>
    %c1_117 = arith.constant 1 : index
    %c0_118 = arith.constant 0 : index
    %c0_119 = arith.constant 0 : index
    %319 = vector.load %arg11[%c1_117, %c0_118, %c0_119] : memref<3x1x32xf32, #tpu.memory_space<vmem>>, vector<1x1x32xf32>
    %320 = vector.shape_cast %319 : vector<1x1x32xf32> to vector<1x32xf32>
    %c1_120 = arith.constant 1 : index
    %c0_121 = arith.constant 0 : index
    %c0_122 = arith.constant 0 : index
    %321 = vector.load %arg12[%c1_120, %c0_121, %c0_122] : memref<3x1x32xf32, #tpu.memory_space<vmem>>, vector<1x1x32xf32>
    %322 = vector.shape_cast %321 : vector<1x1x32xf32> to vector<1x32xf32>
    %cst_123 = arith.constant dense<0.000000e+00> : vector<16xf32>
    %323 = vector.multi_reduction <add>, %318, %cst_123 [1] : vector<16x32xf32> to vector<16xf32>
    %324 = vector.shape_cast %323 : vector<16xf32> to vector<16x1xf32>
    %cst_124 = arith.constant 3.200000e+01 : f32
    %325 = vector.broadcast %cst_124 : f32 to vector<16x1xf32>
    %326 = arith.divf %324, %325 : vector<16x1xf32>
    %327 = vector.broadcast %326 : vector<16x1xf32> to vector<16x32xf32>
    %328 = arith.subf %318, %327 : vector<16x32xf32>
    %329 = arith.mulf %328, %328 : vector<16x32xf32>
    %cst_125 = arith.constant dense<0.000000e+00> : vector<16xf32>
    %330 = vector.multi_reduction <add>, %329, %cst_125 [1] : vector<16x32xf32> to vector<16xf32>
    %331 = vector.shape_cast %330 : vector<16xf32> to vector<16x1xf32>
    %cst_126 = arith.constant 3.200000e+01 : f32
    %332 = vector.broadcast %cst_126 : f32 to vector<16x1xf32>
    %333 = arith.divf %331, %332 : vector<16x1xf32>
    %334 = vector.broadcast %326 : vector<16x1xf32> to vector<16x32xf32>
    %335 = arith.subf %318, %334 : vector<16x32xf32>
    %cst_127 = arith.constant 9.99999996E-13 : f32
    %336 = vector.broadcast %cst_127 : f32 to vector<16x1xf32>
    %337 = arith.addf %333, %336 : vector<16x1xf32>
    %338 = math.rsqrt %337 : vector<16x1xf32>
    %339 = vector.broadcast %338 : vector<16x1xf32> to vector<16x32xf32>
    %340 = arith.mulf %335, %339 : vector<16x32xf32>
    %341 = vector.broadcast %320 : vector<1x32xf32> to vector<16x32xf32>
    %342 = arith.mulf %340, %341 : vector<16x32xf32>
    %343 = vector.broadcast %322 : vector<1x32xf32> to vector<16x32xf32>
    %344 = arith.addf %342, %343 : vector<16x32xf32>
    %c1_128 = arith.constant 1 : index
    %c0_129 = arith.constant 0 : index
    %c0_130 = arith.constant 0 : index
    %345 = vector.load %arg13[%c1_128, %c0_129, %c0_130] : memref<3x32x64xf32, #tpu.memory_space<vmem>>, vector<1x32x64xf32>
    %346 = vector.shape_cast %345 : vector<1x32x64xf32> to vector<32x64xf32>
    %cst_131 = arith.constant dense<0.000000e+00> : vector<16x64xf32>
    %347 = tpu.matmul %344, %346, %cst_131 {dimension_numbers = #tpu.dot_dimension_numbers<[1], [0], [0], [1], [0, 0, 1, 1], [], []>} : vector<16x32xf32>, vector<32x64xf32>, vector<16x64xf32> -> vector<16x64xf32>
    %c1_132 = arith.constant 1 : index
    %c0_133 = arith.constant 0 : index
    %c0_134 = arith.constant 0 : index
    %348 = vector.load %arg14[%c1_132, %c0_133, %c0_134] : memref<3x1x64xf32, #tpu.memory_space<vmem>>, vector<1x1x64xf32>
    %349 = vector.shape_cast %348 : vector<1x1x64xf32> to vector<1x64xf32>
    %350 = vector.broadcast %349 : vector<1x64xf32> to vector<16x64xf32>
    %351 = arith.addf %347, %350 : vector<16x64xf32>
    %cst_135 = arith.constant 5.000000e-01 : f32
    %352 = vector.broadcast %cst_135 : f32 to vector<16x64xf32>
    %353 = arith.mulf %352, %351 : vector<16x64xf32>
    %cst_136 = arith.constant 0.707106769 : f32
    %354 = vector.broadcast %cst_136 : f32 to vector<16x64xf32>
    %355 = arith.mulf %351, %354 : vector<16x64xf32>
    %cst_137 = arith.constant 0.000000e+00 : f32
    %356 = vector.broadcast %cst_137 : f32 to vector<16x64xf32>
    %357 = arith.cmpf oge, %355, %356 : vector<16x64xf32>
    %cst_138 = arith.constant 1.000000e+00 : f32
    %cst_139 = arith.constant -1.000000e+00 : f32
    %358 = vector.broadcast %cst_138 : f32 to vector<16x64xf32>
    %359 = vector.broadcast %cst_139 : f32 to vector<16x64xf32>
    %360 = arith.select %357, %358, %359 : vector<16x64xi1>, vector<16x64xf32>
    %361 = math.absf %355 : vector<16x64xf32>
    %cst_140 = arith.constant 0.327591091 : f32
    %362 = vector.broadcast %cst_140 : f32 to vector<16x64xf32>
    %363 = arith.mulf %362, %361 : vector<16x64xf32>
    %cst_141 = arith.constant 1.000000e+00 : f32
    %364 = vector.broadcast %cst_141 : f32 to vector<16x64xf32>
    %365 = arith.addf %364, %363 : vector<16x64xf32>
    %cst_142 = arith.constant 1.000000e+00 : f32
    %366 = vector.broadcast %cst_142 : f32 to vector<16x64xf32>
    %367 = arith.divf %366, %365 : vector<16x64xf32>
    %cst_143 = arith.constant 1.06140542 : f32
    %368 = vector.broadcast %cst_143 : f32 to vector<16x64xf32>
    %369 = arith.mulf %368, %367 : vector<16x64xf32>
    %cst_144 = arith.constant -1.45315206 : f32
    %370 = vector.broadcast %cst_144 : f32 to vector<16x64xf32>
    %371 = arith.addf %369, %370 : vector<16x64xf32>
    %372 = arith.mulf %371, %367 : vector<16x64xf32>
    %cst_145 = arith.constant 1.42141378 : f32
    %373 = vector.broadcast %cst_145 : f32 to vector<16x64xf32>
    %374 = arith.addf %372, %373 : vector<16x64xf32>
    %375 = arith.mulf %374, %367 : vector<16x64xf32>
    %cst_146 = arith.constant -0.284496725 : f32
    %376 = vector.broadcast %cst_146 : f32 to vector<16x64xf32>
    %377 = arith.addf %375, %376 : vector<16x64xf32>
    %378 = arith.mulf %377, %367 : vector<16x64xf32>
    %cst_147 = arith.constant 0.254829586 : f32
    %379 = vector.broadcast %cst_147 : f32 to vector<16x64xf32>
    %380 = arith.addf %378, %379 : vector<16x64xf32>
    %381 = arith.mulf %380, %367 : vector<16x64xf32>
    %cst_148 = arith.constant 0.000000e+00 : f32
    %382 = vector.broadcast %cst_148 : f32 to vector<16x64xf32>
    %383 = arith.subf %382, %361 : vector<16x64xf32>
    %384 = arith.mulf %383, %361 : vector<16x64xf32>
    %385 = math.exp %384 : vector<16x64xf32>
    %386 = arith.mulf %381, %385 : vector<16x64xf32>
    %cst_149 = arith.constant 1.000000e+00 : f32
    %387 = vector.broadcast %cst_149 : f32 to vector<16x64xf32>
    %388 = arith.subf %387, %386 : vector<16x64xf32>
    %389 = arith.mulf %360, %388 : vector<16x64xf32>
    %cst_150 = arith.constant 1.000000e+00 : f32
    %390 = vector.broadcast %cst_150 : f32 to vector<16x64xf32>
    %391 = arith.addf %390, %389 : vector<16x64xf32>
    %392 = arith.mulf %353, %391 : vector<16x64xf32>
    %c1_151 = arith.constant 1 : index
    %c0_152 = arith.constant 0 : index
    %c0_153 = arith.constant 0 : index
    %393 = vector.load %arg15[%c1_151, %c0_152, %c0_153] : memref<3x64x32xf32, #tpu.memory_space<vmem>>, vector<1x64x32xf32>
    %394 = vector.shape_cast %393 : vector<1x64x32xf32> to vector<64x32xf32>
    %cst_154 = arith.constant dense<0.000000e+00> : vector<16x32xf32>
    %395 = tpu.matmul %392, %394, %cst_154 {dimension_numbers = #tpu.dot_dimension_numbers<[1], [0], [0], [1], [0, 0, 1, 1], [], []>} : vector<16x64xf32>, vector<64x32xf32>, vector<16x32xf32> -> vector<16x32xf32>
    %c1_155 = arith.constant 1 : index
    %c0_156 = arith.constant 0 : index
    %c0_157 = arith.constant 0 : index
    %396 = vector.load %arg16[%c1_155, %c0_156, %c0_157] : memref<3x1x32xf32, #tpu.memory_space<vmem>>, vector<1x1x32xf32>
    %397 = vector.shape_cast %396 : vector<1x1x32xf32> to vector<1x32xf32>
    %398 = vector.broadcast %397 : vector<1x32xf32> to vector<16x32xf32>
    %399 = arith.addf %395, %398 : vector<16x32xf32>
    %400 = arith.addf %399, %344 : vector<16x32xf32>
    %c1_158 = arith.constant 1 : index
    %c0_159 = arith.constant 0 : index
    %c0_160 = arith.constant 0 : index
    %401 = vector.load %arg17[%c1_158, %c0_159, %c0_160] : memref<3x1x32xf32, #tpu.memory_space<vmem>>, vector<1x1x32xf32>
    %402 = vector.shape_cast %401 : vector<1x1x32xf32> to vector<1x32xf32>
    %c1_161 = arith.constant 1 : index
    %c0_162 = arith.constant 0 : index
    %c0_163 = arith.constant 0 : index
    %403 = vector.load %arg18[%c1_161, %c0_162, %c0_163] : memref<3x1x32xf32, #tpu.memory_space<vmem>>, vector<1x1x32xf32>
    %404 = vector.shape_cast %403 : vector<1x1x32xf32> to vector<1x32xf32>
    %cst_164 = arith.constant dense<0.000000e+00> : vector<16xf32>
    %405 = vector.multi_reduction <add>, %400, %cst_164 [1] : vector<16x32xf32> to vector<16xf32>
    %406 = vector.shape_cast %405 : vector<16xf32> to vector<16x1xf32>
    %cst_165 = arith.constant 3.200000e+01 : f32
    %407 = vector.broadcast %cst_165 : f32 to vector<16x1xf32>
    %408 = arith.divf %406, %407 : vector<16x1xf32>
    %409 = vector.broadcast %408 : vector<16x1xf32> to vector<16x32xf32>
    %410 = arith.subf %400, %409 : vector<16x32xf32>
    %411 = arith.mulf %410, %410 : vector<16x32xf32>
    %cst_166 = arith.constant dense<0.000000e+00> : vector<16xf32>
    %412 = vector.multi_reduction <add>, %411, %cst_166 [1] : vector<16x32xf32> to vector<16xf32>
    %413 = vector.shape_cast %412 : vector<16xf32> to vector<16x1xf32>
    %cst_167 = arith.constant 3.200000e+01 : f32
    %414 = vector.broadcast %cst_167 : f32 to vector<16x1xf32>
    %415 = arith.divf %413, %414 : vector<16x1xf32>
    %416 = vector.broadcast %408 : vector<16x1xf32> to vector<16x32xf32>
    %417 = arith.subf %400, %416 : vector<16x32xf32>
    %cst_168 = arith.constant 9.99999996E-13 : f32
    %418 = vector.broadcast %cst_168 : f32 to vector<16x1xf32>
    %419 = arith.addf %415, %418 : vector<16x1xf32>
    %420 = math.rsqrt %419 : vector<16x1xf32>
    %421 = vector.broadcast %420 : vector<16x1xf32> to vector<16x32xf32>
    %422 = arith.mulf %417, %421 : vector<16x32xf32>
    %423 = vector.broadcast %402 : vector<1x32xf32> to vector<16x32xf32>
    %424 = arith.mulf %422, %423 : vector<16x32xf32>
    %425 = vector.broadcast %404 : vector<1x32xf32> to vector<16x32xf32>
    %426 = arith.addf %424, %425 : vector<16x32xf32>
    %c2 = arith.constant 2 : index
    %c0_169 = arith.constant 0 : index
    %c0_170 = arith.constant 0 : index
    %427 = vector.load %arg7[%c2, %c0_169, %c0_170] : memref<3x32x96xf32, #tpu.memory_space<vmem>>, vector<1x32x96xf32>
    %428 = vector.shape_cast %427 : vector<1x32x96xf32> to vector<32x96xf32>
    %cst_171 = arith.constant dense<0.000000e+00> : vector<16x96xf32>
    %429 = tpu.matmul %426, %428, %cst_171 {dimension_numbers = #tpu.dot_dimension_numbers<[1], [0], [0], [1], [0, 0, 1, 1], [], []>} : vector<16x32xf32>, vector<32x96xf32>, vector<16x96xf32> -> vector<16x96xf32>
    %c2_172 = arith.constant 2 : index
    %c0_173 = arith.constant 0 : index
    %c0_174 = arith.constant 0 : index
    %430 = vector.load %arg8[%c2_172, %c0_173, %c0_174] : memref<3x1x96xf32, #tpu.memory_space<vmem>>, vector<1x1x96xf32>
    %431 = vector.shape_cast %430 : vector<1x1x96xf32> to vector<1x96xf32>
    %432 = vector.broadcast %431 : vector<1x96xf32> to vector<16x96xf32>
    %433 = arith.addf %429, %432 : vector<16x96xf32>
    %434 = vector.extract_strided_slice %433 {offsets = [0, 0], sizes = [8, 8], strides = [1, 1]} : vector<16x96xf32> to vector<8x8xf32>
    %435 = vector.extract_strided_slice %433 {offsets = [0, 8], sizes = [8, 8], strides = [1, 1]} : vector<16x96xf32> to vector<8x8xf32>
    %436 = vector.extract_strided_slice %433 {offsets = [0, 16], sizes = [8, 8], strides = [1, 1]} : vector<16x96xf32> to vector<8x8xf32>
    %437 = vector.extract_strided_slice %433 {offsets = [0, 24], sizes = [8, 8], strides = [1, 1]} : vector<16x96xf32> to vector<8x8xf32>
    %438 = vector.extract_strided_slice %433 {offsets = [8, 0], sizes = [8, 8], strides = [1, 1]} : vector<16x96xf32> to vector<8x8xf32>
    %439 = vector.extract_strided_slice %433 {offsets = [8, 8], sizes = [8, 8], strides = [1, 1]} : vector<16x96xf32> to vector<8x8xf32>
    %440 = vector.extract_strided_slice %433 {offsets = [8, 16], sizes = [8, 8], strides = [1, 1]} : vector<16x96xf32> to vector<8x8xf32>
    %441 = vector.extract_strided_slice %433 {offsets = [8, 24], sizes = [8, 8], strides = [1, 1]} : vector<16x96xf32> to vector<8x8xf32>
    %442 = tpu.concatenate %434, %435, %436, %437, %438, %439, %440, %441 in 0 : vector<8x8xf32>, vector<8x8xf32>, vector<8x8xf32>, vector<8x8xf32>, vector<8x8xf32>, vector<8x8xf32>, vector<8x8xf32>, vector<8x8xf32> -> vector<64x8xf32>
    %443 = vector.extract_strided_slice %433 {offsets = [0, 32], sizes = [8, 8], strides = [1, 1]} : vector<16x96xf32> to vector<8x8xf32>
    %444 = vector.extract_strided_slice %433 {offsets = [0, 40], sizes = [8, 8], strides = [1, 1]} : vector<16x96xf32> to vector<8x8xf32>
    %445 = vector.extract_strided_slice %433 {offsets = [0, 48], sizes = [8, 8], strides = [1, 1]} : vector<16x96xf32> to vector<8x8xf32>
    %446 = vector.extract_strided_slice %433 {offsets = [0, 56], sizes = [8, 8], strides = [1, 1]} : vector<16x96xf32> to vector<8x8xf32>
    %447 = vector.extract_strided_slice %433 {offsets = [8, 32], sizes = [8, 8], strides = [1, 1]} : vector<16x96xf32> to vector<8x8xf32>
    %448 = vector.extract_strided_slice %433 {offsets = [8, 40], sizes = [8, 8], strides = [1, 1]} : vector<16x96xf32> to vector<8x8xf32>
    %449 = vector.extract_strided_slice %433 {offsets = [8, 48], sizes = [8, 8], strides = [1, 1]} : vector<16x96xf32> to vector<8x8xf32>
    %450 = vector.extract_strided_slice %433 {offsets = [8, 56], sizes = [8, 8], strides = [1, 1]} : vector<16x96xf32> to vector<8x8xf32>
    %451 = tpu.concatenate %443, %444, %445, %446, %447, %448, %449, %450 in 0 : vector<8x8xf32>, vector<8x8xf32>, vector<8x8xf32>, vector<8x8xf32>, vector<8x8xf32>, vector<8x8xf32>, vector<8x8xf32>, vector<8x8xf32> -> vector<64x8xf32>
    %452 = vector.extract_strided_slice %433 {offsets = [0, 64], sizes = [8, 8], strides = [1, 1]} : vector<16x96xf32> to vector<8x8xf32>
    %453 = vector.extract_strided_slice %433 {offsets = [0, 72], sizes = [8, 8], strides = [1, 1]} : vector<16x96xf32> to vector<8x8xf32>
    %454 = vector.extract_strided_slice %433 {offsets = [0, 80], sizes = [8, 8], strides = [1, 1]} : vector<16x96xf32> to vector<8x8xf32>
    %455 = vector.extract_strided_slice %433 {offsets = [0, 88], sizes = [8, 8], strides = [1, 1]} : vector<16x96xf32> to vector<8x8xf32>
    %456 = vector.extract_strided_slice %433 {offsets = [8, 64], sizes = [8, 8], strides = [1, 1]} : vector<16x96xf32> to vector<8x8xf32>
    %457 = vector.extract_strided_slice %433 {offsets = [8, 72], sizes = [8, 8], strides = [1, 1]} : vector<16x96xf32> to vector<8x8xf32>
    %458 = vector.extract_strided_slice %433 {offsets = [8, 80], sizes = [8, 8], strides = [1, 1]} : vector<16x96xf32> to vector<8x8xf32>
    %459 = vector.extract_strided_slice %433 {offsets = [8, 88], sizes = [8, 8], strides = [1, 1]} : vector<16x96xf32> to vector<8x8xf32>
    %460 = tpu.concatenate %452, %453, %454, %455, %456, %457, %458, %459 in 0 : vector<8x8xf32>, vector<8x8xf32>, vector<8x8xf32>, vector<8x8xf32>, vector<8x8xf32>, vector<8x8xf32>, vector<8x8xf32>, vector<8x8xf32> -> vector<64x8xf32>
    %cst_175 = arith.constant dense<0.000000e+00> : vector<64x64xf32>
    %461 = tpu.matmul %442, %451, %cst_175 {dimension_numbers = #tpu.dot_dimension_numbers<[1], [1], [0], [0], [0, 0, 1, 0], [], []>} : vector<64x8xf32>, vector<64x8xf32>, vector<64x64xf32> -> vector<64x64xf32>
    %cst_176 = arith.constant 0.353553385 : f32
    %462 = vector.broadcast %cst_176 : f32 to vector<64x64xf32>
    %463 = arith.mulf %461, %462 : vector<64x64xf32>
    %464 = arith.addf %463, %76 : vector<64x64xf32>
    %cst_177 = arith.constant dense<0xFF800000> : vector<64xf32>
    %465 = vector.multi_reduction <maximumf>, %464, %cst_177 [1] : vector<64x64xf32> to vector<64xf32>
    %466 = vector.shape_cast %465 : vector<64xf32> to vector<64x1xf32>
    %467 = vector.broadcast %466 : vector<64x1xf32> to vector<64x64xf32>
    %468 = arith.subf %464, %467 : vector<64x64xf32>
    %469 = math.exp %468 : vector<64x64xf32>
    %cst_178 = arith.constant dense<0.000000e+00> : vector<64xf32>
    %470 = vector.multi_reduction <add>, %469, %cst_178 [1] : vector<64x64xf32> to vector<64xf32>
    %471 = vector.shape_cast %470 : vector<64xf32> to vector<64x1xf32>
    %472 = vector.broadcast %471 : vector<64x1xf32> to vector<64x64xf32>
    %473 = arith.divf %469, %472 : vector<64x64xf32>
    %cst_179 = arith.constant dense<0.000000e+00> : vector<64x8xf32>
    %474 = tpu.matmul %473, %460, %cst_179 {dimension_numbers = #tpu.dot_dimension_numbers<[1], [0], [0], [1], [0, 0, 1, 1], [], []>} : vector<64x64xf32>, vector<64x8xf32>, vector<64x8xf32> -> vector<64x8xf32>
    %475 = vector.extract_strided_slice %474 {offsets = [0, 0], sizes = [8, 8], strides = [1, 1]} : vector<64x8xf32> to vector<8x8xf32>
    %476 = vector.extract_strided_slice %474 {offsets = [8, 0], sizes = [8, 8], strides = [1, 1]} : vector<64x8xf32> to vector<8x8xf32>
    %477 = vector.extract_strided_slice %474 {offsets = [16, 0], sizes = [8, 8], strides = [1, 1]} : vector<64x8xf32> to vector<8x8xf32>
    %478 = vector.extract_strided_slice %474 {offsets = [24, 0], sizes = [8, 8], strides = [1, 1]} : vector<64x8xf32> to vector<8x8xf32>
    %479 = tpu.concatenate %475, %476, %477, %478 in 1 : vector<8x8xf32>, vector<8x8xf32>, vector<8x8xf32>, vector<8x8xf32> -> vector<8x32xf32>
    %480 = vector.extract_strided_slice %474 {offsets = [32, 0], sizes = [8, 8], strides = [1, 1]} : vector<64x8xf32> to vector<8x8xf32>
    %481 = vector.extract_strided_slice %474 {offsets = [40, 0], sizes = [8, 8], strides = [1, 1]} : vector<64x8xf32> to vector<8x8xf32>
    %482 = vector.extract_strided_slice %474 {offsets = [48, 0], sizes = [8, 8], strides = [1, 1]} : vector<64x8xf32> to vector<8x8xf32>
    %483 = vector.extract_strided_slice %474 {offsets = [56, 0], sizes = [8, 8], strides = [1, 1]} : vector<64x8xf32> to vector<8x8xf32>
    %484 = tpu.concatenate %480, %481, %482, %483 in 1 : vector<8x8xf32>, vector<8x8xf32>, vector<8x8xf32>, vector<8x8xf32> -> vector<8x32xf32>
    %485 = tpu.concatenate %479, %484 in 0 : vector<8x32xf32>, vector<8x32xf32> -> vector<16x32xf32>
    %c2_180 = arith.constant 2 : index
    %c0_181 = arith.constant 0 : index
    %c0_182 = arith.constant 0 : index
    %486 = vector.load %arg9[%c2_180, %c0_181, %c0_182] : memref<3x32x32xf32, #tpu.memory_space<vmem>>, vector<1x32x32xf32>
    %487 = vector.shape_cast %486 : vector<1x32x32xf32> to vector<32x32xf32>
    %cst_183 = arith.constant dense<0.000000e+00> : vector<16x32xf32>
    %488 = tpu.matmul %485, %487, %cst_183 {dimension_numbers = #tpu.dot_dimension_numbers<[1], [0], [0], [1], [0, 0, 1, 1], [], []>} : vector<16x32xf32>, vector<32x32xf32>, vector<16x32xf32> -> vector<16x32xf32>
    %c2_184 = arith.constant 2 : index
    %c0_185 = arith.constant 0 : index
    %c0_186 = arith.constant 0 : index
    %489 = vector.load %arg10[%c2_184, %c0_185, %c0_186] : memref<3x1x32xf32, #tpu.memory_space<vmem>>, vector<1x1x32xf32>
    %490 = vector.shape_cast %489 : vector<1x1x32xf32> to vector<1x32xf32>
    %491 = vector.broadcast %490 : vector<1x32xf32> to vector<16x32xf32>
    %492 = arith.addf %488, %491 : vector<16x32xf32>
    %493 = arith.addf %492, %426 : vector<16x32xf32>
    %c2_187 = arith.constant 2 : index
    %c0_188 = arith.constant 0 : index
    %c0_189 = arith.constant 0 : index
    %494 = vector.load %arg11[%c2_187, %c0_188, %c0_189] : memref<3x1x32xf32, #tpu.memory_space<vmem>>, vector<1x1x32xf32>
    %495 = vector.shape_cast %494 : vector<1x1x32xf32> to vector<1x32xf32>
    %c2_190 = arith.constant 2 : index
    %c0_191 = arith.constant 0 : index
    %c0_192 = arith.constant 0 : index
    %496 = vector.load %arg12[%c2_190, %c0_191, %c0_192] : memref<3x1x32xf32, #tpu.memory_space<vmem>>, vector<1x1x32xf32>
    %497 = vector.shape_cast %496 : vector<1x1x32xf32> to vector<1x32xf32>
    %cst_193 = arith.constant dense<0.000000e+00> : vector<16xf32>
    %498 = vector.multi_reduction <add>, %493, %cst_193 [1] : vector<16x32xf32> to vector<16xf32>
    %499 = vector.shape_cast %498 : vector<16xf32> to vector<16x1xf32>
    %cst_194 = arith.constant 3.200000e+01 : f32
    %500 = vector.broadcast %cst_194 : f32 to vector<16x1xf32>
    %501 = arith.divf %499, %500 : vector<16x1xf32>
    %502 = vector.broadcast %501 : vector<16x1xf32> to vector<16x32xf32>
    %503 = arith.subf %493, %502 : vector<16x32xf32>
    %504 = arith.mulf %503, %503 : vector<16x32xf32>
    %cst_195 = arith.constant dense<0.000000e+00> : vector<16xf32>
    %505 = vector.multi_reduction <add>, %504, %cst_195 [1] : vector<16x32xf32> to vector<16xf32>
    %506 = vector.shape_cast %505 : vector<16xf32> to vector<16x1xf32>
    %cst_196 = arith.constant 3.200000e+01 : f32
    %507 = vector.broadcast %cst_196 : f32 to vector<16x1xf32>
    %508 = arith.divf %506, %507 : vector<16x1xf32>
    %509 = vector.broadcast %501 : vector<16x1xf32> to vector<16x32xf32>
    %510 = arith.subf %493, %509 : vector<16x32xf32>
    %cst_197 = arith.constant 9.99999996E-13 : f32
    %511 = vector.broadcast %cst_197 : f32 to vector<16x1xf32>
    %512 = arith.addf %508, %511 : vector<16x1xf32>
    %513 = math.rsqrt %512 : vector<16x1xf32>
    %514 = vector.broadcast %513 : vector<16x1xf32> to vector<16x32xf32>
    %515 = arith.mulf %510, %514 : vector<16x32xf32>
    %516 = vector.broadcast %495 : vector<1x32xf32> to vector<16x32xf32>
    %517 = arith.mulf %515, %516 : vector<16x32xf32>
    %518 = vector.broadcast %497 : vector<1x32xf32> to vector<16x32xf32>
    %519 = arith.addf %517, %518 : vector<16x32xf32>
    %c2_198 = arith.constant 2 : index
    %c0_199 = arith.constant 0 : index
    %c0_200 = arith.constant 0 : index
    %520 = vector.load %arg13[%c2_198, %c0_199, %c0_200] : memref<3x32x64xf32, #tpu.memory_space<vmem>>, vector<1x32x64xf32>
    %521 = vector.shape_cast %520 : vector<1x32x64xf32> to vector<32x64xf32>
    %cst_201 = arith.constant dense<0.000000e+00> : vector<16x64xf32>
    %522 = tpu.matmul %519, %521, %cst_201 {dimension_numbers = #tpu.dot_dimension_numbers<[1], [0], [0], [1], [0, 0, 1, 1], [], []>} : vector<16x32xf32>, vector<32x64xf32>, vector<16x64xf32> -> vector<16x64xf32>
    %c2_202 = arith.constant 2 : index
    %c0_203 = arith.constant 0 : index
    %c0_204 = arith.constant 0 : index
    %523 = vector.load %arg14[%c2_202, %c0_203, %c0_204] : memref<3x1x64xf32, #tpu.memory_space<vmem>>, vector<1x1x64xf32>
    %524 = vector.shape_cast %523 : vector<1x1x64xf32> to vector<1x64xf32>
    %525 = vector.broadcast %524 : vector<1x64xf32> to vector<16x64xf32>
    %526 = arith.addf %522, %525 : vector<16x64xf32>
    %cst_205 = arith.constant 5.000000e-01 : f32
    %527 = vector.broadcast %cst_205 : f32 to vector<16x64xf32>
    %528 = arith.mulf %527, %526 : vector<16x64xf32>
    %cst_206 = arith.constant 0.707106769 : f32
    %529 = vector.broadcast %cst_206 : f32 to vector<16x64xf32>
    %530 = arith.mulf %526, %529 : vector<16x64xf32>
    %cst_207 = arith.constant 0.000000e+00 : f32
    %531 = vector.broadcast %cst_207 : f32 to vector<16x64xf32>
    %532 = arith.cmpf oge, %530, %531 : vector<16x64xf32>
    %cst_208 = arith.constant 1.000000e+00 : f32
    %cst_209 = arith.constant -1.000000e+00 : f32
    %533 = vector.broadcast %cst_208 : f32 to vector<16x64xf32>
    %534 = vector.broadcast %cst_209 : f32 to vector<16x64xf32>
    %535 = arith.select %532, %533, %534 : vector<16x64xi1>, vector<16x64xf32>
    %536 = math.absf %530 : vector<16x64xf32>
    %cst_210 = arith.constant 0.327591091 : f32
    %537 = vector.broadcast %cst_210 : f32 to vector<16x64xf32>
    %538 = arith.mulf %537, %536 : vector<16x64xf32>
    %cst_211 = arith.constant 1.000000e+00 : f32
    %539 = vector.broadcast %cst_211 : f32 to vector<16x64xf32>
    %540 = arith.addf %539, %538 : vector<16x64xf32>
    %cst_212 = arith.constant 1.000000e+00 : f32
    %541 = vector.broadcast %cst_212 : f32 to vector<16x64xf32>
    %542 = arith.divf %541, %540 : vector<16x64xf32>
    %cst_213 = arith.constant 1.06140542 : f32
    %543 = vector.broadcast %cst_213 : f32 to vector<16x64xf32>
    %544 = arith.mulf %543, %542 : vector<16x64xf32>
    %cst_214 = arith.constant -1.45315206 : f32
    %545 = vector.broadcast %cst_214 : f32 to vector<16x64xf32>
    %546 = arith.addf %544, %545 : vector<16x64xf32>
    %547 = arith.mulf %546, %542 : vector<16x64xf32>
    %cst_215 = arith.constant 1.42141378 : f32
    %548 = vector.broadcast %cst_215 : f32 to vector<16x64xf32>
    %549 = arith.addf %547, %548 : vector<16x64xf32>
    %550 = arith.mulf %549, %542 : vector<16x64xf32>
    %cst_216 = arith.constant -0.284496725 : f32
    %551 = vector.broadcast %cst_216 : f32 to vector<16x64xf32>
    %552 = arith.addf %550, %551 : vector<16x64xf32>
    %553 = arith.mulf %552, %542 : vector<16x64xf32>
    %cst_217 = arith.constant 0.254829586 : f32
    %554 = vector.broadcast %cst_217 : f32 to vector<16x64xf32>
    %555 = arith.addf %553, %554 : vector<16x64xf32>
    %556 = arith.mulf %555, %542 : vector<16x64xf32>
    %cst_218 = arith.constant 0.000000e+00 : f32
    %557 = vector.broadcast %cst_218 : f32 to vector<16x64xf32>
    %558 = arith.subf %557, %536 : vector<16x64xf32>
    %559 = arith.mulf %558, %536 : vector<16x64xf32>
    %560 = math.exp %559 : vector<16x64xf32>
    %561 = arith.mulf %556, %560 : vector<16x64xf32>
    %cst_219 = arith.constant 1.000000e+00 : f32
    %562 = vector.broadcast %cst_219 : f32 to vector<16x64xf32>
    %563 = arith.subf %562, %561 : vector<16x64xf32>
    %564 = arith.mulf %535, %563 : vector<16x64xf32>
    %cst_220 = arith.constant 1.000000e+00 : f32
    %565 = vector.broadcast %cst_220 : f32 to vector<16x64xf32>
    %566 = arith.addf %565, %564 : vector<16x64xf32>
    %567 = arith.mulf %528, %566 : vector<16x64xf32>
    %c2_221 = arith.constant 2 : index
    %c0_222 = arith.constant 0 : index
    %c0_223 = arith.constant 0 : index
    %568 = vector.load %arg15[%c2_221, %c0_222, %c0_223] : memref<3x64x32xf32, #tpu.memory_space<vmem>>, vector<1x64x32xf32>
    %569 = vector.shape_cast %568 : vector<1x64x32xf32> to vector<64x32xf32>
    %cst_224 = arith.constant dense<0.000000e+00> : vector<16x32xf32>
    %570 = tpu.matmul %567, %569, %cst_224 {dimension_numbers = #tpu.dot_dimension_numbers<[1], [0], [0], [1], [0, 0, 1, 1], [], []>} : vector<16x64xf32>, vector<64x32xf32>, vector<16x32xf32> -> vector<16x32xf32>
    %c2_225 = arith.constant 2 : index
    %c0_226 = arith.constant 0 : index
    %c0_227 = arith.constant 0 : index
    %571 = vector.load %arg16[%c2_225, %c0_226, %c0_227] : memref<3x1x32xf32, #tpu.memory_space<vmem>>, vector<1x1x32xf32>
    %572 = vector.shape_cast %571 : vector<1x1x32xf32> to vector<1x32xf32>
    %573 = vector.broadcast %572 : vector<1x32xf32> to vector<16x32xf32>
    %574 = arith.addf %570, %573 : vector<16x32xf32>
    %575 = arith.addf %574, %519 : vector<16x32xf32>
    %c2_228 = arith.constant 2 : index
    %c0_229 = arith.constant 0 : index
    %c0_230 = arith.constant 0 : index
    %576 = vector.load %arg17[%c2_228, %c0_229, %c0_230] : memref<3x1x32xf32, #tpu.memory_space<vmem>>, vector<1x1x32xf32>
    %577 = vector.shape_cast %576 : vector<1x1x32xf32> to vector<1x32xf32>
    %c2_231 = arith.constant 2 : index
    %c0_232 = arith.constant 0 : index
    %c0_233 = arith.constant 0 : index
    %578 = vector.load %arg18[%c2_231, %c0_232, %c0_233] : memref<3x1x32xf32, #tpu.memory_space<vmem>>, vector<1x1x32xf32>
    %579 = vector.shape_cast %578 : vector<1x1x32xf32> to vector<1x32xf32>
    %cst_234 = arith.constant dense<0.000000e+00> : vector<16xf32>
    %580 = vector.multi_reduction <add>, %575, %cst_234 [1] : vector<16x32xf32> to vector<16xf32>
    %581 = vector.shape_cast %580 : vector<16xf32> to vector<16x1xf32>
    %cst_235 = arith.constant 3.200000e+01 : f32
    %582 = vector.broadcast %cst_235 : f32 to vector<16x1xf32>
    %583 = arith.divf %581, %582 : vector<16x1xf32>
    %584 = vector.broadcast %583 : vector<16x1xf32> to vector<16x32xf32>
    %585 = arith.subf %575, %584 : vector<16x32xf32>
    %586 = arith.mulf %585, %585 : vector<16x32xf32>
    %cst_236 = arith.constant dense<0.000000e+00> : vector<16xf32>
    %587 = vector.multi_reduction <add>, %586, %cst_236 [1] : vector<16x32xf32> to vector<16xf32>
    %588 = vector.shape_cast %587 : vector<16xf32> to vector<16x1xf32>
    %cst_237 = arith.constant 3.200000e+01 : f32
    %589 = vector.broadcast %cst_237 : f32 to vector<16x1xf32>
    %590 = arith.divf %588, %589 : vector<16x1xf32>
    %591 = vector.broadcast %583 : vector<16x1xf32> to vector<16x32xf32>
    %592 = arith.subf %575, %591 : vector<16x32xf32>
    %cst_238 = arith.constant 9.99999996E-13 : f32
    %593 = vector.broadcast %cst_238 : f32 to vector<16x1xf32>
    %594 = arith.addf %590, %593 : vector<16x1xf32>
    %595 = math.rsqrt %594 : vector<16x1xf32>
    %596 = vector.broadcast %595 : vector<16x1xf32> to vector<16x32xf32>
    %597 = arith.mulf %592, %596 : vector<16x32xf32>
    %598 = vector.broadcast %577 : vector<1x32xf32> to vector<16x32xf32>
    %599 = arith.mulf %597, %598 : vector<16x32xf32>
    %600 = vector.broadcast %579 : vector<1x32xf32> to vector<16x32xf32>
    %601 = arith.addf %599, %600 : vector<16x32xf32>
    %c0_239 = arith.constant 0 : index
    %c0_240 = arith.constant 0 : index
    %602 = vector.load %arg19[%c0_239, %c0_240] : memref<16x32xf32, #tpu.memory_space<vmem>>, vector<16x32xf32>
    tpu.vector_store %arg19[%c0_239, %c0_240], %601 {strides = array<i32>} : memref<16x32xf32, #tpu.memory_space<vmem>>, vector<16x32xf32>,
    return
  }
}

</mosaic_0001>

<bundles_post_ra>
// kernel: text_model_forward.1
= control target key start
LH: loop header
LB: loop body
LE: loop exit
PB: predicated region body
PF: predicated region fallthrough
CT: control target
= control target key end

     0   :  { %s5967_s0 = inlined_call_operand.vmem [shape: s32[16,1], index: 0, kind: input, shape index: {}]   ;;  %s5968_s1 = inlined_call_operand.vmem [shape: s32[2,8], index: 1, kind: input, shape index: {}]   ;;  %s5969_s2 = inlined_call_operand.vmem [shape: f32[64,32], index: 2, kind: input, shape index: {}]   ;;  %s5970_s3 = inlined_call_operand.vmem [shape: f32[16,32], index: 3, kind: input, shape index: {}]   ;;  %s5971_s4 = inlined_call_operand.hbm [shape: f32[2,32], index: 4, kind: input, shape index: {}]   ;;  %s5972_s5 = inlined_call_operand.hbm [shape: f32[1,32], index: 5, kind: input, shape index: {}]   ;;  %s5973_s6 = inlined_call_operand.hbm [shape: f32[1,32], index: 6, kind: input, shape index: {}]   ;;  %s5974_s7 = inlined_call_operand.vmem [shape: f32[3,32,96], index: 7, kind: input, shape index: {}]   ;;  %s5975_s8 = inlined_call_operand.vmem [shape: f32[3,1,96], index: 8, kind: input, shape index: {}]   ;;  %s5976_s9 = inlined_call_operand.vmem [shape: f32[3,32,32], index: 9, kind: input, shape index: {}]   ;;  %s5977_s10 = inlined_call_operand.vmem [shape: f32[3,1,32], index: 10, kind: input, shape index: {}]   ;;  %s5978_s11 = inlined_call_operand.vmem [shape: f32[3,1,32], index: 11, kind: input, shape index: {}]   ;;  %s5979_s12 = inlined_call_operand.vmem [shape: f32[3,1,32], index: 12, kind: input, shape index: {}]   ;;  %s5980_s13 = inlined_call_operand.vmem [shape: f32[3,32,64], index: 13, kind: input, shape index: {}]   ;;  %s5981_s14 = inlined_call_operand.vmem [shape: f32[3,1,64], index: 14, kind: input, shape index: {}]   ;;  %s5982_s15 = inlined_call_operand.vmem [shape: f32[3,64,32], index: 15, kind: input, shape index: {}]   ;;  %s5983_s16 = inlined_call_operand.vmem [shape: f32[3,1,32], index: 16, kind: input, shape index: {}]   ;;  %s5984_s17 = inlined_call_operand.vmem [shape: f32[3,1,32], index: 17, kind: input, shape index: {}]   ;;  %s5985_s18 = inlined_call_operand.hbm [shape: f32[3,1,32], index: 18, kind: input, shape index: {}]   ;;  %s5986_s19 = inlined_call_operand.hbm [shape: f32[16,32], index: 19, kind: output, shape index: {}]  }
   0x1   :  { %5993 = sst [smem:[#allocation15_spill]] %s5967_s0 }
   0x2   :  { %5994 = sst [smem:[#allocation16_spill]] %s5968_s1 }
   0x3   :  { %5995 = sst [smem:[#allocation17_spill]] %s5969_s2 }
   0x4   :  { %5996 = sst [smem:[#allocation18_spill]] %s5970_s3 }
   0x5   :  { %24 = vsyncpa [#allocation3], 0 }
   0x6   :  { %25 = vsyncpa [#allocation6], 0 }
   0x7   :  { %26 = vsyncpa [#allocation9], 0 }
   0x8   :  { %27 = vsyncpa [#allocation4], 0  ;;  %s4932_s0 = smov [#allocation5]   ;;  %s4933_s20 = smov [#allocation2]  }
   0x9   :  { %s52_s30 = sshll.u32 %s4932_s0, 4  ;;  %s42_s21 = sshll.u32 %s4933_s20, 4  ;;  %s53_s30 = int_to_ptr.vmem [resolvable:$true] %s52_s30  ;;  %s43_s21 = int_to_ptr.vmem [resolvable:$true] %s42_s21 }
   0xa   :  { %s4814_s2 = scalar_lea.hbm %s5972_s5, 16 }
   0xb   :  { %p4815_p0 = scmp.ne.s32.totalorder %s5972_s5, %s4814_s2  ;;  %p4818_p1 = scmp.lt.u32.totalorder %s4814_s2, %s5972_s5 }
   0xd   :  { %p4820_p2 = pnand %p4818_p1, %p4815_p0 }
   0xf   :  { %4823 = shalt.err (!%p4820_p2)
}
  0x10   :  { %s4824_s26 = scalar_lea.vmem %s53_s30, 16  ;;  %s4828_s27 = scalar_lea.vmem %s53_s30, 32 }
  0x11   :  { %p4825_p3 = scmp.ne.s32.totalorder %s53_s30, %s4824_s26  ;;  %p4829_p4 = scmp.lt.s32.totalorder %s53_s30, %s53_s30 }
  0x12   :  { %p4830_p5 = scmp.lt.s32.totalorder %s4828_s27, %s4824_s26 }
  0x14   :  { %p4831_p6 = por %p4830_p5, %p4829_p4 }
  0x16   :  { %p4832_p7 = pnand %p4831_p6, %p4825_p3 }
  0x18   :  { %4835 = shalt.err (!%p4832_p7)
}
  0x19   :  { %55 = dma.hbm_to_vmem [thread:$0]  %s5972_s5, 16, %s53_s30, [#allocation6]  }
  0x1a   :  { %s4836_s1 = scalar_lea.hbm %s5971_s4, 32 }
  0x1b   :  { %p4837_p8 = scmp.ne.s32.totalorder %s5971_s4, %s4836_s1  ;;  %p4840_p9 = scmp.lt.u32.totalorder %s4836_s1, %s5971_s4 }
  0x1d   :  { %p4842_p10 = pnand %p4840_p9, %p4837_p8 }
  0x1f   :  { %4845 = shalt.err (!%p4842_p10)
}
  0x20   :  { %s4846_s25 = scalar_lea.vmem %s43_s21, 32  ;;  %p4851_p12 = scmp.lt.s32.totalorder %s43_s21, %s43_s21 }
  0x21   :  { %p4847_p11 = scmp.ne.s32.totalorder %s43_s21, %s4846_s25  ;;  %p4852_p13 = scmp.lt.s32.totalorder %s4846_s25, %s4846_s25 }
  0x23   :  { %p4853_p0 = por %p4852_p13, %p4851_p12 }
  0x25   :  { %p4854_p1 = pnand %p4853_p0, %p4847_p11 }
  0x27   :  { %4857 = shalt.err (!%p4854_p1)
}
  0x28   :  { %45 = dma.hbm_to_vmem [thread:$0]  %s5971_s4, 32, %s43_s21, [#allocation3]  }
  0x29   :  { %s4934_s3 = smov [#allocation7]   ;;  %s4935_s27 = smov [#allocation8]  }
  0x2a   :  { %s62_s26 = sshll.u32 %s4934_s3, 4  ;;  %s93_s28 = sshll.u32 %s4935_s27, 4  ;;  %s63_s26 = int_to_ptr.vmem [resolvable:$true] %s62_s26  ;;  %s5078_s28 = int_to_ptr.vmem [resolvable:$true] %s93_s28 }
  0x2b   :  { %s4858_s20 = scalar_lea.hbm %s5973_s6, 16 }
  0x2c   :  { %p4859_p2 = scmp.ne.s32.totalorder %s5973_s6, %s4858_s20  ;;  %p4862_p3 = scmp.lt.u32.totalorder %s4858_s20, %s5973_s6 }
  0x2e   :  { %p4864_p4 = pnand %p4862_p3, %p4859_p2 }
  0x30   :  { %4867 = shalt.err (!%p4864_p4)
}
  0x31   :  { %s4868_s4 = scalar_lea.vmem %s63_s26, 16  ;;  %s4872_s21 = scalar_lea.vmem %s63_s26, 32 }
  0x32   :  { %p4869_p5 = scmp.ne.s32.totalorder %s63_s26, %s4868_s4  ;;  %p4873_p6 = scmp.lt.s32.totalorder %s63_s26, %s63_s26 }
  0x33   :  { %p4874_p7 = scmp.lt.s32.totalorder %s4872_s21, %s4868_s4 }
  0x35   :  { %p4875_p8 = por %p4874_p7, %p4873_p6 }
  0x37   :  { %p4876_p9 = pnand %p4875_p8, %p4869_p5 }
  0x39   :  { %4879 = shalt.err (!%p4876_p9)
}
  0x3a   :  { %65 = dma.hbm_to_vmem [thread:$0]  %s5973_s6, 16, %s63_s26, [#allocation6]  }
  0x3b   :  { %s4880_s3 = scalar_lea.hbm %s5985_s18, 48 }
  0x3c   :  { %p4881_p10 = scmp.ne.s32.totalorder %s5985_s18, %s4880_s3  ;;  %p4884_p11 = scmp.lt.u32.totalorder %s4880_s3, %s5985_s18 }
  0x3e   :  { %p4886_p12 = pnand %p4884_p11, %p4881_p10 }
  0x40   :  { %4889 = shalt.err (!%p4886_p12)
}
  0x41   :  { %s4890_s1 = scalar_lea.vmem %s5078_s28, 48  ;;  %s4894_s6 = scalar_lea.vmem %s5078_s28, 64 }
  0x42   :  { %p4891_p13 = scmp.ne.s32.totalorder %s5078_s28, %s4890_s1  ;;  %p4895_p0 = scmp.lt.s32.totalorder %s5078_s28, %s5078_s28 }
  0x43   :  { %p4896_p1 = scmp.lt.s32.totalorder %s4894_s6, %s4890_s1 }
  0x45   :  { %p4897_p2 = por %p4896_p1, %p4895_p0 }
  0x47   :  { %p4898_p3 = pnand %p4897_p2, %p4891_p13 }
  0x49   :  { %4901 = shalt.err (!%p4898_p3)
}
  0x4a   :  { %s4936_s26 = smov 16   ;;  %s4937_s22 = smov 1  }
  0x4b   :  { %99 = dma.hbm_to_vmem [thread:$0]  %s5985_s18, 48, %s5078_s28, [#allocation9], %s4936_s26, %s4936_s26, %s4937_s22  }
  0x4c   :  { %4924 = dma.done.wait [#allocation3], 32  }
  0x4d   :  { %4925 = vsyncadd [#allocation3], 4294967264 }
  0x4e   :  { %4926 = dma.done.wait [#allocation6], 32  }
  0x4f   :  { %4927 = vsyncadd [#allocation6], 4294967264 }
  0x50   :  { %4928 = dma.done.wait [#allocation9], 48  }
  0x51   :  { %4929 = vsyncadd [#allocation9], 4294967248  ;;  %v4938_v0 = vmov 0   ;;  %s5997_s24 = sld [smem:[#allocation15_spill]]  ;;  %s5998_s30 = sld [smem:[#allocation17_spill]]  ;;  %v114_v15 = vlaneseq  ;;  %vm5989_vm0 = vcmask 523264  }
  0x52   :  { %4545 = vset.pattern.permute.xlu0 %v4938_v0  ;;  %v4939_v18 = vmov 0.0   ;;  %s5999_s3 = sld [smem:[#allocation18_spill]]  ;;  %v3473_v25 = vld [vmem:[#allocation2] ss:$0 sm:$0xff]  ;;  %vm5990_vm3 = vcmask 261120   ;;  %v511_v43 = vld [vmem:[%s5974_s7 + $0x8] sm:$0xff] }
  0x53   :  { %v5143_v16 = vand.u32 127, %v114_v15  ;;  %v510_v42 = vld [vmem:[%s5974_s7] sm:$0xff]  ;;  %v512_v44 = vld [vmem:[%s5974_s7 + $0x10] sm:$0xff]  ;;  %v513_v46 = vld [vmem:[%s5974_s7 + $0x18] sm:$0xff]  ;;  %vm5991_vm4 = vcmask 64512   ;;  %s4940_s23 = smov 112  }
  0x54   :  { %v4283_v45 = vpack.c.bf16 %v511_v43, %v510_v42  ;;  %v4287_v47 = vpack.c.bf16 %v513_v46, %v512_v44  ;;  %v3474_v55 = vld [vmem:[#allocation5] ss:$0 sm:$0xff]  ;;  %v3475_v57 = vld [vmem:[#allocation7] ss:$0 sm:$0xff]  ;;  %v3492_v0 = vld [vmem:[%s5975_s8] ss:$0 sm:$0xff] }
  0x55   :  { %s4941_s4 = smov 120   ;;  %vm5206_vm9 = vmpackc.low %vm5991_vm4, %vm5991_vm4  ;;  %s4942_s21 = smov 104  }
  0x56   :  { %s4945_s27 = smov 24   ;;  %s4946_s18 = smov 32  }
  0x57   :  { %v112_v1 = vld [vmem:[%s5997_s24] sm:$0xff]  ;;  %v127_v3 = vld [vmem:[%s5998_s30 + $0x8] sm:$0xff]  ;;  %v128_v4 = vld [vmem:[%s5998_s30 + $0x10] sm:$0xff]  ;;  %s4947_s28 = smov 40   ;;  %s4948_s29 = smov 48  }
  0x58   :  { %v126_v2 = vld [vmem:[%s5998_s30] sm:$0xff]  ;;  %117 = vperm.xlu0 %4545, %v112_v1   ;;  %v129_v5 = vld [vmem:[%s5998_s30 + $0x18] sm:$0xff]  ;;  %v113_v6 = vld [vmem:[%s5997_s24 + $0x8] sm:$0xff]  ;;  %s4943_s24 = smov 96   ;;  %s4949_s0 = smov 56  }
  0x59   :  { %v4243_v7 = vpack.c.bf16 %v127_v3, %v126_v2  ;;  %v4247_v8 = vpack.c.bf16 %v129_v5, %v128_v4  ;;  %v130_v9 = vld [vmem:[%s5998_s30 + $0x20] sm:$0xff]  ;;  %v131_v10 = vld [vmem:[%s5998_s30 + $0x28] sm:$0xff]  ;;  %v132_v12 = vld [vmem:[%s5998_s30 + $0x30] sm:$0xff]  ;;  %v5192_v5 = vshrl.u32 %v114_v15, 7  ;;  %s4950_s20 = smov 64   ;;  %s4952_s2 = smov [#allocation10]  }
  0x5a   :  { %v4251_v11 = vpack.c.bf16 %v131_v10, %v130_v9  ;;  %v133_v13 = vld [vmem:[%s5998_s30 + $0x38] sm:$0xff]  ;;  %v134_v22 = vld [vmem:[%s5999_s3] sm:$0xff]  ;;  %s6011_s30 = sld [smem:[#allocation16_spill]]  ;;  %s4944_s3 = smov 8  }
  0x5b   :  { %4244 = vmatprep.subr.bf16.mxu0 %v4243_v7  ;;  %v4255_v14 = vpack.c.bf16 %v133_v13, %v132_v12  ;;  %v313_v9 = vadd.s32 16, %v5192_v5  ;;  %v314_v10 = vadd.s32 24, %v5192_v5  ;;  %v316_v12 = vadd.s32 40, %v5192_v5  ;;  %s3457_s25 = sshll.u32 %s4952_s2, 4  ;;  %s3458_s25 = int_to_ptr.vmem [resolvable:$true] %s3457_s25 }
  0x5c   :  { %120 = vperm.xlu0 %4545, %v113_v6   ;;  %4246 = vmatpush3.bf16.msra.mxu0 %v4243_v7  ;;  %v319_v6 = vmul.u32 8, %v5143_v16  ;;  %v312_v7 = vadd.s32 8, %v5192_v5  ;;  %v6000_v13 = vmov 0  ;;  %s4902_s5 = scalar_lea.vmem %s3458_s25, 256  ;;  %p4907_p5 = scmp.lt.s32.totalorder %s3458_s25, %s3458_s25 }
  0x5d   :  { %4248 = vmatprep.subr.bf16.mxu0 %v4247_v8  ;;  %v6001_v13 = vsel %vm5206_vm9, 4294967295, %v6000_v13  ;;  %vm6002_vm9 = vcmask 64512   ;;  %p4903_p4 = scmp.ne.s32.totalorder %s3458_s25, %s4902_s5  ;;  %p4908_p6 = scmp.lt.s32.totalorder %s4902_s5, %s4902_s5 }
  0x5e   :  { %vm320_vm5 = vcmp.ge.s32.totalorder %v5192_v5, %v319_v6  ;;  %vm321_vm6 = vcmp.ge.s32.totalorder %v312_v7, %v319_v6  ;;  %vm322_vm10 = vcmp.ge.s32.totalorder %v313_v9, %v319_v6  ;;  %vm323_vm12 = vcmp.ge.s32.totalorder %v314_v10, %v319_v6 }
  0x5f   :  { %p4909_p7 = por %p4908_p6, %p4907_p5 }
  0x60   :  { %4250 = vmatpush3.bf16.msra.mxu0 %v4247_v8  ;;  %v328_v8 = vadd.s32 8, %v319_v6 }
  0x61   :  { %4252 = vmatprep.subr.bf16.mxu0 %v4251_v11  ;;  %p4910_p8 = pnand %p4909_p7, %p4903_p4 }
  0x62   :  { %vm329_vm7 = vcmp.lt.s32.totalorder %v5192_v5, %v328_v8  ;;  %vm330_vm8 = vcmp.lt.s32.totalorder %v312_v7, %v328_v8  ;;  %vm331_vm13 = vcmp.lt.s32.totalorder %v313_v9, %v328_v8  ;;  %vm332_vm14 = vcmp.lt.s32.totalorder %v314_v10, %v328_v8 }
  0x63   :  { %vm337_vm11 = vmand %vm320_vm5, %vm329_vm7  ;;  %vm6003_vm7 = vnez %v6001_v13 }
  0x64   :  { %4254 = vmatpush3.bf16.msra.mxu0 %v4251_v11  ;;  %v315_v11 = vadd.s32 32, %v5192_v5  ;;  %vm338_vm15 = vmand %vm321_vm6, %vm330_vm8 }
  0x65   :  { %4256 = vmatprep.subr.bf16.mxu0 %v4255_v14  ;;  %v346_v15 = vsel %vm338_vm15, 1.0, %v4939_v18  ;;  %vm340_vm5 = vmand %vm323_vm12, %vm332_vm14  ;;  %vm6004_vm12 = vcmask 64512  }
  0x66   :  { %vm6006_vm14 = vmmov %vm6004_vm12 }
  0x67   :  { %vm6007_vm15 = vmmov %vm6004_vm12 }
  0x68   :  { %4258 = vmatpush3.bf16.msra.mxu0 %v4255_v14  ;;  %v345_v14 = vsel %vm337_vm11, 1.0, %v4939_v18 }
  0x69   :  { %4284 = vmatprep.subr.bf16.mxu0 %v4283_v45  ;;  %3907 = vmatprep.mubr.msk.f32.mxu1 %vm6002_vm9, %v345_v14 }
  0xd7   :  { %v118_v17 = vpop.permute.xlu0 %117 }
  0xd8   :  { %vm122_vm1 = vcmp.eq.s32.totalorder %v5143_v16, %v118_v17 }
  0xd9   :  { %v124_v19 = vsel %vm122_vm1, 1.0, %v4939_v18  ;;  %vm324_vm1 = vcmp.ge.s32.totalorder %v315_v11, %v319_v6 }
  0xda   :  { %3888 = vmatprep.mubr.msk.f32.mxu0 %vm5989_vm0, %v124_v19  ;;  %v348_v19 = vsel %vm340_vm5, 1.0, %v4939_v18 }
  0xdb   :  { %v121_v20 = vpop.permute.xlu0 %120 }
  0xdc   :  { %vm123_vm2 = vcmp.eq.s32.totalorder %v5143_v16, %v121_v20  ;;  %v4259_v16 = vpack.c.bf16 %v346_v15, %v345_v14 }
  0xdd   :  { %v125_v21 = vsel %vm123_vm2, 1.0, %v4939_v18  ;;  %vm333_vm2 = vcmp.lt.s32.totalorder %v315_v11, %v328_v8 }
  0xde   :  { %3889 = vmatmul.mubr.msk.f32.vlgmr.msra.gmra.mrb[0].mxu0 %vm5989_vm0, %v125_v21  ;;  %vm339_vm0 = vmand %vm322_vm10, %vm331_vm13  ;;  %4261 = vmatprep.subr.msk.bf16.mxu1 %vm6003_vm7, %v4259_v16 }
  0xdf   :  { %4286 = vmatpush3.bf16.msra.mxu0 %v4283_v45  ;;  %v347_v17 = vsel %vm339_vm0, 1.0, %v4939_v18  ;;  %vm341_vm6 = vmand %vm324_vm1, %vm333_vm2  ;;  %4264 = vmatpush3.bf16.xpose.msk.msra.mxu1 %vm6003_vm7, %v4259_v16 }
  0xe0   :  { %4288 = vmatprep.subr.bf16.mxu0 %v4287_v47  ;;  %v4265_v20 = vpack.c.bf16 %v348_v19, %v347_v17  ;;  %v349_v21 = vsel %vm341_vm6, 1.0, %v4939_v18  ;;  %vm6005_vm13 = vmmov %vm6004_vm12 }
  0xe1   :  { %vm6008_vm1 = vmmov %vm6004_vm12 }
  0xe2   :  { %4267 = vmatprep.subr.msk.bf16.mxu1 %vm6003_vm7, %v4265_v20  ;;  %vm6009_vm2 = vmmov %vm6008_vm1 }
  0xe3   :  { %4290 = vmatpush3.bf16.msra.mxu0 %v4287_v47  ;;  %vm6010_vm5 = vmmov %vm6008_vm1 }
  0xe4   :  { %vm6012_vm6 = vmmov %vm6008_vm1 }
  0xe7   :  { %4270 = vmatpush3.bf16.xpose.msk.msra.mxu1 %vm6003_vm7, %v4265_v20 }
 0x1b1   :  { %v3890_v23 = vpop.f32.mrb[0].mxu0 }
 0x1b2   :  { %v208_v24 = vpop.f32.mrb[1].mxu0  ;;  %v214_v26 = vadd.f32 %v3890_v23, %v134_v22 }
 0x1b3   :  { %v209_v27 = vadd.f32 %v208_v24, %v134_v22  ;;  %v317_v24 = vadd.s32 48, %v5192_v5 }
 0x1b4   :  { %v223_v30 = vadd.f32 %v3473_v25, %v214_v26 }
 0x1b5   :  { %v222_v28 = vadd.f32 %v3473_v25, %v209_v27  ;;  %v318_v25 = vadd.s32 56, %v5192_v5  ;;  %vm326_vm0 = vcmp.ge.s32.totalorder %v317_v24, %v319_v6 }
 0x1b6   :  { %v230_v31 = vsel %vm5990_vm3, %v223_v30, 0.0 }
 0x1b7   :  { %v227_v29 = vsel %vm5990_vm3, %v222_v28, 0.0  ;;  %vm336_vm9 = vcmp.lt.s32.totalorder %v318_v25, %v328_v8 }
 0x1b8   :  { %228 = vadd.xlane.f32.xlu1 %v227_v29 }
 0x1bc   :  { %231 = vadd.xlane.f32.xlu1 %v230_v31 }
 0x245   :  { %v229_v32 = vpop.xlane.xlu1 %228 }
 0x246   :  { %v234_v33 = vmul.f32 0.03125, %v229_v32 }
 0x248   :  { %v236_v34 = vsub.f32 %v222_v28, %v234_v33 }
 0x249   :  { %v232_v35 = vpop.xlane.xlu1 %231 }
 0x24a   :  { %v235_v36 = vmul.f32 0.03125, %v232_v35  ;;  %v238_v37 = vmul.f32 %v236_v34, %v236_v34 }
 0x24c   :  { %v237_v38 = vsub.f32 %v223_v30, %v235_v36  ;;  %v240_v39 = vsel %vm5990_vm3, %v238_v37, 0.0 }
 0x24d   :  { %241 = vadd.xlane.f32.xlu0 %v240_v39 }
 0x24e   :  { %v239_v40 = vmul.f32 %v237_v38, %v237_v38 }
 0x250   :  { %v243_v41 = vsel %vm5990_vm3, %v239_v40, 0.0 }
 0x251   :  { %244 = vadd.xlane.f32.xlu1 %v243_v41 }
 0x2da   :  { %v242_v48 = vpop.xlane.xlu0 %241 }
 0x2db   :  { %v246_v49 = vmul.f32 0.03125, %v242_v48 }
 0x2dd   :  { %v248_v50 = vadd.f32 1e-12, %v246_v49 }
 0x2de   :  { %v245_v51 = vpop.xlane.xlu1 %244 }
 0x2df   :  { %4666 = vrsqrt.f32 %v248_v50  ;;  %v247_v52 = vmul.f32 0.03125, %v245_v51 }
 0x2e1   :  { %v249_v53 = vadd.f32 1e-12, %v247_v52 }
 0x2e3   :  { %4668 = vrsqrt.f32 %v249_v53 }
 0x2e9   :  { %v4667_v54 = vpop.eup %4666 }
 0x2ea   :  { %v252_v56 = vmul.f32 %v4667_v54, %v236_v34 }
 0x2ec   :  { %v260_v58 = vmul.f32 %v3474_v55, %v252_v56 }
 0x2ed   :  { %v4669_v59 = vpop.eup %4668 }
 0x2ee   :  { %v253_v60 = vmul.f32 %v4669_v59, %v237_v38  ;;  %v5170_v61 = vadd.f32 %v3475_v57, %v260_v58  ;;  %v270_v38 = vld [vmem:[%s6011_s30] sm:$0x3] }
 0x2ef   :  { %v271_v39 = vcvt.s32.f32 %v270_v38 }
 0x2f0   :  { %v261_v62 = vmul.f32 %v3474_v55, %v253_v60  ;;  %3927 = vmatprep.mubr.msk.f32.mxu0 %vm5990_vm3, %v5170_v61 }
 0x2f1   :  { %v282_v40 = vrot.slane %v271_v39, 1 }
 0x2f2   :  { %v5174_v63 = vadd.f32 %v3475_v57, %v261_v62 }
 0x2f4   :  { %3928 = vmatmul.mubr.msk.f32.vlgmr.msra.gmra.mrb[2].mxu0 %vm5990_vm3, %v5174_v63  ;;  %vm325_vm3 = vcmp.ge.s32.totalorder %v316_v12, %v319_v6 }
 0x3c7   :  { %v3929_v1 = vpop.f32.mrb[2].mxu0 }
 0x3c8   :  { %v5181_v2 = vadd.f32 %v3929_v1, %v3492_v0  ;;  %v593_v3 = vpop.f32.mrb[3].mxu0 }
 0x3c9   :  { %v5183_v4 = vadd.f32 %v3492_v0, %v593_v3 }
 0x3ca   :  { %612 = vrot.lane.b32.xlu0 %v5181_v2, %s4940_s23 }
 0x3cb   :  { %603 = vrot.lane.b32.xlu1 %v5183_v4, %s4941_s4  ;;  %3946 = vmatprep.mubr.msk.f32.mxu0 %vm5991_vm4, %v5183_v4  ;;  %vm334_vm4 = vcmp.lt.s32.totalorder %v316_v12, %v328_v8 }
 0x3cc   :  { %vm342_vm8 = vmand %vm325_vm3, %vm334_vm4  ;;  %vm327_vm3 = vcmp.ge.s32.totalorder %v318_v25, %v319_v6  ;;  %vm335_vm4 = vcmp.lt.s32.totalorder %v317_v24, %v328_v8 }
 0x3cd   :  { %v350_v22 = vsel %vm342_vm8, 1.0, %v4939_v18  ;;  %vm343_vm10 = vmand %vm326_vm0, %vm335_vm4 }
 0x3ce   :  { %v4271_v23 = vpack.c.bf16 %v350_v22, %v349_v21  ;;  %vm344_vm11 = vmand %vm327_vm3, %vm336_vm9  ;;  %v351_v26 = vsel %vm343_vm10, 1.0, %v4939_v18  ;;  %273 = vrot.lane.b32.xlu0 %v271_v39, %s4944_s3 }
 0x3cf   :  { %605 = vrot.lane.b32.xlu1 %v5183_v4, %s4940_s23  ;;  %v352_v27 = vsel %vm344_vm11, 1.0, %v4939_v18  ;;  %vm6013_vm8 = vmmov %vm6008_vm1 }
 0x3d0   :  { %4273 = vmatprep.subr.msk.bf16.mxu1 %vm6003_vm7, %v4271_v23  ;;  %v4277_v28 = vpack.c.bf16 %v352_v27, %v351_v26  ;;  %vm6014_vm0 = vmmov %vm6008_vm1 }
 0x3d1   :  { %4276 = vmatpush3.bf16.xpose.msk.msra.mxu1 %vm6003_vm7, %v4271_v23  ;;  %vm6015_vm3 = vmmov %vm6014_vm0 }
 0x3d2   :  { %4279 = vmatprep.subr.msk.bf16.mxu1 %vm6003_vm7, %v4277_v28  ;;  %279 = vrot.lane.b32.xlu0 %v271_v39, %s4945_s27  ;;  %vm6016_vm4 = vmmov %vm6014_vm0 }
 0x3d3   :  { %607 = vrot.lane.b32.xlu1 %v5183_v4, %s4942_s21  ;;  %vm6017_vm9 = vmmov %vm6014_vm0 }
 0x3d4   :  { %vm6018_vm10 = vmmov %vm6014_vm0 }
 0x3d5   :  { %vm6019_vm11 = vmmov %vm6014_vm0 }
 0x3d6   :  { %286 = vrot.lane.b32.xlu0 %v282_v40, %s4947_s28 }
 0x3d7   :  { %610 = vrot.lane.b32.xlu1 %v5181_v2, %s4941_s4 }
 0x3d9   :  { %4282 = vmatpush3.bf16.xpose.msk.msra.mxu1 %vm6003_vm7, %v4277_v28 }
 0x3da   :  { %292 = vrot.lane.b32.xlu0 %v282_v40, %s4949_s0 }
 0x3db   :  { %614 = vrot.lane.b32.xlu1 %v5181_v2, %s4942_s21 }
 0x3e0   :  { %3908 = vmatmul.mubr.msk.f32.vlgmr.msra.gmra.mrb[0].mxu1 %vm6004_vm12, %v346_v15  ;;  %vm297_vm12 = vcmask 130048  }
 0x3e1   :  { %3910 = vmatprep.mubr.msk.f32.mxu1 %vm6005_vm13, %v347_v17  ;;  %vm299_vm13 = vcmask 195584  }
 0x3e4   :  { %3911 = vmatmul.mubr.msk.f32.gmra.mrb[2].mxu1 %vm6006_vm14, %v348_v19  ;;  %vm6020_vm14 = vcmask 261120  }
 0x3e5   :  { %3913 = vmatprep.mubr.msk.f32.mxu1 %vm6007_vm15, %v349_v21  ;;  %vm302_vm15 = vcmask 326656  }
 0x3e8   :  { %3914 = vmatmul.mubr.msk.f32.gmra.mrb[4].mxu1 %vm6008_vm1, %v350_v22  ;;  %vm304_vm1 = vcmask 392192   ;;  %v500_v22 = vsub.s32 0, %v5192_v5 }
 0x3e9   :  { %3916 = vmatprep.mubr.msk.f32.mxu1 %vm6009_vm2, %v351_v26  ;;  %vm306_vm2 = vcmask 457728  }
 0x3ec   :  { %3917 = vmatmul.mubr.msk.f32.gmra.mrb[6].mxu1 %vm6010_vm5, %v352_v27  ;;  %vm6021_vm5 = vcmask 523264  }
 0x43c   :  { %v613_v35 = vpop.permute.xlu0 %612 }
 0x43d   :  { %v604_v29 = vpop.permute.xlu1 %603 }
 0x43e   :  { %v5244_v30 = vpack.i.bf16 %v604_v29, %v5183_v4 }
 0x440   :  { %4547 = vrot.lane.b32.xlu1 %v5244_v30, %s4943_s24  ;;  %v274_v4 = vpop.permute.xlu0 %273 }
 0x441   :  { %v606_v31 = vpop.permute.xlu1 %605  ;;  %v296_v6 = vsel %vm6019_vm11, %v271_v39, %v274_v4 }
 0x444   :  { %v280_v8 = vpop.permute.xlu0 %279 }
 0x445   :  { %v608_v18 = vpop.permute.xlu1 %607 }
 0x446   :  { %v5250_v32 = vpack.i.bf16 %v608_v18, %v606_v31 }
 0x448   :  { %4552 = vrot.lane.b32.xlu1 %v5250_v32, %s4943_s24  ;;  %v287_v12 = vpop.permute.xlu0 %286 }
 0x449   :  { %v611_v33 = vpop.permute.xlu1 %610 }
 0x44a   :  { %v5257_v34 = vpack.i.bf16 %v611_v33, %v5181_v2 }
 0x44c   :  { %4557 = vrot.lane.b32.xlu1 %v5257_v34, %s4943_s24  ;;  %v293_v17 = vpop.permute.xlu0 %292 }
 0x44d   :  { %v615_v36 = vpop.permute.xlu1 %614 }
 0x44e   :  { %v5263_v37 = vpack.i.bf16 %v615_v36, %v613_v35 }
 0x450   :  { %4562 = vrot.lane.b32.xlu1 %v5263_v37, %s4943_s24 }
 0x454   :  { %276 = vrot.lane.b32.xlu1 %v271_v39, %s4936_s26 }
 0x458   :  { %283 = vrot.lane.b32.xlu1 %v282_v40, %s4946_s18 }
 0x45c   :  { %289 = vrot.lane.b32.xlu1 %v282_v40, %s4948_s29 }
 0x4b2   :  { %v4548_v41 = vpop.permute.xlu1 %4547 }
 0x4b3   :  { %v4550_v42 = vunpack.i.h.bf16 %v4548_v41  ;;  %v4549_v43 = vunpack.i.l.bf16 %v4548_v41  ;;  %v3909_v57 = vpop.f32.mrb[0].mxu1 }
 0x4b4   :  { %v443_v58 = vpop.f32.mrb[1].mxu1  ;;  %v483_v21 = vsub.f32 1.0, %v3909_v57 }
 0x4b5   :  { %v4291_v44 = vpack.c.bf16 %v4550_v42, %v4549_v43  ;;  %v482_v24 = vsub.f32 1.0, %v443_v58 }
 0x4b6   :  { %v491_v25 = vmul.f32 -1e+09, %v483_v21 }
 0x4b7   :  { %4293 = vmatprep.subr.msk.bf16.mxu0 %vm6003_vm7, %v4291_v44  ;;  %v3912_v59 = vpop.f32.mrb[2].mxu1  ;;  %v490_v28 = vmul.f32 -1e+09, %v482_v24 }
 0x4b8   :  { %4296 = vmatpush3.bf16.xpose.msk.msra.mxu0 %vm6003_vm7, %v4291_v44  ;;  %v453_v60 = vpop.f32.mrb[3].mxu1  ;;  %v485_v26 = vsub.f32 1.0, %v3912_v59 }
 0x4ba   :  { %v4553_v45 = vpop.permute.xlu1 %4552 }
 0x4bb   :  { %v4555_v46 = vunpack.i.h.bf16 %v4553_v45  ;;  %v4554_v47 = vunpack.i.l.bf16 %v4553_v45  ;;  %v3915_v62 = vpop.f32.mrb[4].mxu1 }
 0x4bc   :  { %v463_v0 = vpop.f32.mrb[5].mxu1 }
 0x4bd   :  { %v4297_v48 = vpack.c.bf16 %v4555_v46, %v4554_v47 }
 0x4be   :  { %v4558_v49 = vpop.permute.xlu1 %4557 }
 0x4bf   :  { %v4560_v50 = vunpack.i.h.bf16 %v4558_v49  ;;  %v4559_v51 = vunpack.i.l.bf16 %v4558_v49  ;;  %4299 = vmatprep.subr.msk.bf16.mxu0 %vm6003_vm7, %v4297_v48  ;;  %v3918_v1 = vpop.f32.mrb[6].mxu1 }
 0x4c0   :  { %4302 = vmatpush3.bf16.xpose.msk.msra.mxu0 %vm6003_vm7, %v4297_v48  ;;  %v5298_v3 = vpop.f32.mrb[7].mxu1  ;;  %v489_v47 = vsub.f32 1.0, %v3918_v1 }
 0x4c1   :  { %v4303_v52 = vpack.c.bf16 %v4560_v50, %v4559_v51 }
 0x4c2   :  { %v4563_v53 = vpop.permute.xlu1 %4562  ;;  %v497_v59 = vmul.f32 -1e+09, %v489_v47 }
 0x4c3   :  { %v4565_v54 = vunpack.i.h.bf16 %v4563_v53  ;;  %v4564_v55 = vunpack.i.l.bf16 %v4563_v53  ;;  %4305 = vmatprep.subr.msk.bf16.mxu0 %vm6003_vm7, %v4303_v52 }
 0x4c5   :  { %v4309_v56 = vpack.c.bf16 %v4565_v54, %v4564_v55 }
 0x4c8   :  { %4308 = vmatpush3.bf16.xpose.msk.msra.mxu0 %vm6003_vm7, %v4303_v52  ;;  %v488_v52 = vsub.f32 1.0, %v5298_v3 }
 0x4c9   :  { %4311 = vmatprep.subr.msk.bf16.mxu0 %vm6003_vm7, %v4309_v56 }
 0x4ca   :  { %v496_v4 = vmul.f32 -1e+09, %v488_v52 }
 0x4d0   :  { %4314 = vmatpush3.bf16.xpose.msk.msra.mxu0 %vm6003_vm7, %v4309_v56 }
 0x4d7   :  { %3947 = vmatmul.mubr.msk.f32.vlgmr.msra.gmra.mrb[4].mxu0 %vm6012_vm6, %v604_v29  ;;  %v484_v29 = vsub.f32 1.0, %v453_v60  ;;  %vm6022_vm6 = vmmov %vm6021_vm5 }
 0x4d8   :  { %3949 = vmatprep.mubr.msk.f32.mxu0 %vm6013_vm8, %v606_v31  ;;  %v487_v31 = vsub.f32 1.0, %v3915_v62  ;;  %vm6023_vm8 = vmmov %vm6021_vm5 }
 0x4d9   :  { %v492_v40 = vmul.f32 -1e+09, %v484_v29 }
 0x4da   :  { %v495_v43 = vmul.f32 -1e+09, %v487_v31 }
 0x4db   :  { %3950 = vmatmul.mubr.msk.f32.gmra.mrb[6].mxu0 %vm6014_vm0, %v608_v18  ;;  %v486_v18 = vsub.f32 1.0, %v463_v0  ;;  %vm6024_vm0 = vmmov %vm6021_vm5 }
 0x4dc   :  { %3952 = vmatprep.mubr.msk.f32.mxu0 %vm6015_vm3, %v5181_v2  ;;  %v277_v2 = vpop.permute.xlu1 %276  ;;  %vm6025_vm3 = vmmov %vm6024_vm0 }
 0x4dd   :  { %v298_v7 = vsel %vm297_vm12, %v296_v6, %v277_v2  ;;  %v494_v44 = vmul.f32 -1e+09, %v486_v18  ;;  %vm6029_vm11 = vmmov %vm6024_vm0 }
 0x4de   :  { %v300_v9 = vsel %vm299_vm13, %v298_v7, %v280_v8 }
 0x4df   :  { %3953 = vmatmul.mubr.msk.f32.gmra.mrb[8].mxu0 %vm6016_vm4, %v611_v33  ;;  %vm6026_vm4 = vmmov %vm6024_vm0 }
 0x4e0   :  { %3955 = vmatprep.mubr.msk.f32.mxu0 %vm6017_vm9, %v613_v35  ;;  %v284_v10 = vpop.permute.xlu1 %283  ;;  %v493_v35 = vmul.f32 -1e+09, %v485_v26  ;;  %vm6027_vm9 = vmmov %vm6024_vm0 }
 0x4e1   :  { %v301_v11 = vsel %vm6020_vm14, %v300_v9, %v284_v10  ;;  %vm6030_vm14 = vmmov %vm6024_vm0 }
 0x4e2   :  { %v303_v14 = vsel %vm302_vm15, %v301_v11, %v287_v12  ;;  %vm6031_vm15 = vmmov %vm6024_vm0 }
 0x4e3   :  { %3956 = vmatmul.mubr.msk.f32.gmra.mrb[10].mxu0 %vm6018_vm10, %v615_v36  ;;  %vm6028_vm10 = vmmov %vm6024_vm0 }
 0x4e4   :  { %v290_v15 = vpop.permute.xlu1 %289 }
 0x4e5   :  { %v305_v16 = vsel %vm304_vm1, %v303_v14, %v290_v15  ;;  %vm6032_vm1 = vmmov %vm6024_vm0 }
 0x4e6   :  { %v307_v19 = vsel %vm306_vm2, %v305_v16, %v293_v17  ;;  %vm6033_vm2 = vmmov %vm6024_vm0 }
 0x4e7   :  { %v308_v20 = vsub.f32 1.0, %v307_v19 }
 0x4e9   :  { %v309_v23 = vmul.f32 -10000.0, %v308_v20 }
 0x4eb   :  { %v501_v27 = vrot.slane %v309_v23, %v500_v22 }
 0x4ed   :  { %v5305_v39 = vadd.f32 %v501_v27, %v491_v25  ;;  %v5307_v42 = vadd.f32 %v501_v27, %v490_v28  ;;  %v5312_v51 = vadd.f32 %v501_v27, %v493_v35  ;;  %v5316_v55 = vadd.f32 %v501_v27, %v492_v40 }
 0x4ee   :  { %v5321_v1 = vadd.f32 %v501_v27, %v495_v43  ;;  %v5323_v3 = vadd.f32 %v501_v27, %v494_v44  ;;  %v5328_v10 = vadd.f32 %v501_v27, %v497_v59  ;;  %v5331_v15 = vadd.f32 %v501_v27, %v496_v4 }
 0x5aa   :  { %v3948_v33 = vpop.f32.mrb[4].mxu0 }
 0x5ab   :  { %v770_v36 = vmul.f32 0.35355338, %v3948_v33  ;;  %v730_v38 = vpop.f32.mrb[5].mxu0 }
 0x5ac   :  { %v769_v41 = vmul.f32 0.35355338, %v730_v38 }
 0x5ad   :  { %v778_v5 = vadd.f32 %v770_v36, %v5305_v39 }
 0x5ae   :  { %v3951_v45 = vpop.f32.mrb[6].mxu0  ;;  %v777_v46 = vadd.f32 %v769_v41, %v5307_v42 }
 0x5af   :  { %v772_v48 = vmul.f32 0.35355338, %v3951_v45  ;;  %v740_v49 = vpop.f32.mrb[7].mxu0  ;;  %v788_v50 = vsel %vm6021_vm5, %v778_v5, -inf  ;;  %vm6034_vm5 = vmmov %vm6024_vm0 }
 0x5b0   :  { %v771_v53 = vmul.f32 0.35355338, %v740_v49  ;;  %789 = vmax.xlane.f32.xlu0 %v788_v50  ;;  %v785_v54 = vsel %vm6022_vm6, %v777_v46, -inf  ;;  %vm6035_vm6 = vmmov %vm6024_vm0 }
 0x5b1   :  { %786 = vmax.xlane.f32.xlu1 %v785_v54  ;;  %v780_v56 = vadd.f32 %v772_v48, %v5312_v51 }
 0x5b2   :  { %v3954_v57 = vpop.f32.mrb[8].mxu0  ;;  %v779_v58 = vadd.f32 %v771_v53, %v5316_v55 }
 0x5b3   :  { %v774_v60 = vmul.f32 0.35355338, %v3954_v57  ;;  %v750_v62 = vpop.f32.mrb[9].mxu0  ;;  %v794_v0 = vsel %vm6023_vm8, %v780_v56, -inf  ;;  %vm6036_vm8 = vmmov %vm6024_vm0 }
 0x5b4   :  { %v773_v6 = vmul.f32 0.35355338, %v750_v62  ;;  %v791_v2 = vsel %vm6024_vm0, %v779_v58, -inf }
 0x5b5   :  { %795 = vmax.xlane.f32.xlu1 %v794_v0  ;;  %792 = vmax.xlane.f32.xlu0 %v791_v2  ;;  %v782_v7 = vadd.f32 %v774_v60, %v5321_v1 }
 0x5b6   :  { %v3957_v8 = vpop.f32.mrb[10].mxu0  ;;  %v781_v9 = vadd.f32 %v773_v6, %v5323_v3 }
 0x5b7   :  { %v776_v11 = vmul.f32 0.35355338, %v3957_v8  ;;  %v760_v12 = vpop.f32.mrb[11].mxu0  ;;  %v800_v14 = vsel %vm6025_vm3, %v782_v7, -inf  ;;  %vm6037_vm3 = vmmov %vm6024_vm0 }
 0x5b8   :  { %v775_v16 = vmul.f32 0.35355338, %v760_v12  ;;  %v797_v17 = vsel %vm6026_vm4, %v781_v9, -inf  ;;  %vm6038_vm4 = vmmov %vm6024_vm0 }
 0x5b9   :  { %801 = vmax.xlane.f32.xlu1 %v800_v14  ;;  %798 = vmax.xlane.f32.xlu0 %v797_v17  ;;  %v784_v19 = vadd.f32 %v776_v11, %v5328_v10 }
 0x5ba   :  { %v783_v20 = vadd.f32 %v775_v16, %v5331_v15 }
 0x5bb   :  { %v806_v21 = vsel %vm6027_vm9, %v784_v19, -inf  ;;  %vm6039_vm9 = vmmov %vm6024_vm0 }
 0x5bc   :  { %v803_v22 = vsel %vm6028_vm10, %v783_v20, -inf  ;;  %vm6040_vm10 = vmmov %vm6024_vm0 }
 0x5bd   :  { %807 = vmax.xlane.f32.xlu1 %v806_v21  ;;  %804 = vmax.xlane.f32.xlu0 %v803_v22 }
 0x5d3   :  { %4567 = vrot.lane.b32.xlu0 %v5244_v30, %s4950_s20 }
 0x63d   :  { %v790_v23 = vpop.xlane.xlu0 %789 }
 0x63e   :  { %v810_v24 = vsub.f32 %v778_v5, %v790_v23  ;;  %v787_v25 = vpop.xlane.xlu1 %786 }
 0x63f   :  { %v809_v26 = vsub.f32 %v777_v46, %v787_v25 }
 0x640   :  { %v819_v27 = vmul.f32 1.442695, %v810_v24 }
 0x641   :  { %v817_v28 = vmul.f32 1.442695, %v809_v26 }
 0x642   :  { %4670 = vpow2.f32 %v819_v27  ;;  %v796_v29 = vpop.xlane.xlu1 %795  ;;  %v793_v31 = vpop.xlane.xlu0 %792 }
 0x643   :  { %4672 = vpow2.f32 %v817_v28  ;;  %v812_v18 = vsub.f32 %v780_v56, %v796_v29  ;;  %v811_v33 = vsub.f32 %v779_v58, %v793_v31 }
 0x645   :  { %v823_v35 = vmul.f32 1.442695, %v812_v18  ;;  %v821_v36 = vmul.f32 1.442695, %v811_v33 }
 0x646   :  { %v802_v38 = vpop.xlane.xlu1 %801  ;;  %v799_v40 = vpop.xlane.xlu0 %798 }
 0x647   :  { %4674 = vpow2.f32 %v823_v35  ;;  %v814_v41 = vsub.f32 %v782_v7, %v802_v38  ;;  %v813_v43 = vsub.f32 %v781_v9, %v799_v40 }
 0x648   :  { %4676 = vpow2.f32 %v821_v36 }
 0x649   :  { %v827_v30 = vmul.f32 1.442695, %v814_v41  ;;  %v825_v5 = vmul.f32 1.442695, %v813_v43 }
 0x64a   :  { %v808_v44 = vpop.xlane.xlu1 %807  ;;  %v805_v45 = vpop.xlane.xlu0 %804 }
 0x64b   :  { %4678 = vpow2.f32 %v827_v30  ;;  %v816_v46 = vsub.f32 %v784_v19, %v808_v44  ;;  %v815_v47 = vsub.f32 %v783_v20, %v805_v45 }
 0x64c   :  { %v5340_v48 = vpop.eup %4670  ;;  %4680 = vpow2.f32 %v825_v5 }
 0x64d   :  { %v4673_v49 = vpop.eup %4672  ;;  %v831_v50 = vmul.f32 1.442695, %v816_v46  ;;  %v829_v52 = vmul.f32 1.442695, %v815_v47  ;;  %v836_v53 = vsel %vm6029_vm11, %v5340_v48, 0.0  ;;  %vm6041_vm11 = vmmov %vm6024_vm0 }
 0x64e   :  { %837 = vadd.xlane.f32.xlu1 %v836_v53  ;;  %v4568_v54 = vpop.permute.xlu0 %4567  ;;  %v833_v56 = vsel %vm6030_vm14, %v4673_v49, 0.0  ;;  %vm6042_vm14 = vmmov %vm6024_vm0 }
 0x64f   :  { %4682 = vpow2.f32 %v831_v50  ;;  %v4570_v57 = vunpack.i.h.bf16 %v4568_v54  ;;  %v4569_v58 = vunpack.i.l.bf16 %v4568_v54  ;;  %834 = vadd.xlane.f32.xlu0 %v833_v56  ;;  %v1056_v54 = vld [vmem:[%s5976_s9] sm:$0xff]  ;;  %v1057_v56 = vld [vmem:[%s5976_s9 + $0x8] sm:$0xff] }
 0x650   :  { %4684 = vpow2.f32 %v829_v52 }
 0x651   :  { %v5345_v59 = vpop.eup %4674  ;;  %v4315_v60 = vpack.c.bf16 %v4570_v57, %v4569_v58  ;;  %v4331_v57 = vpack.c.bf16 %v1057_v56, %v1056_v54  ;;  %v1058_v58 = vld [vmem:[%s5976_s9 + $0x10] sm:$0xff] }
 0x652   :  { %v5347_v62 = vpop.eup %4676  ;;  %v842_v0 = vsel %vm6031_vm15, %v5345_v59, 0.0  ;;  %vm6043_vm15 = vmmov %vm6024_vm0 }
 0x653   :  { %843 = vadd.xlane.f32.xlu1 %v842_v0  ;;  %v839_v4 = vsel %vm6032_vm1, %v5347_v62, 0.0  ;;  %4316 = vmatprep.subr.bf16.mxu1 %v4315_v60  ;;  %vm6044_vm1 = vcmask 64512  }
 0x654   :  { %840 = vadd.xlane.f32.xlu0 %v839_v4  ;;  %4318 = vmatpush3.bf16.msra.mxu1 %v4315_v60 }
 0x655   :  { %v5353_v6 = vpop.eup %4678 }
 0x656   :  { %v4681_v2 = vpop.eup %4680  ;;  %v848_v7 = vsel %vm6033_vm2, %v5353_v6, 0.0  ;;  %vm6045_vm2 = vcmask 261120  }
 0x657   :  { %849 = vadd.xlane.f32.xlu1 %v848_v7  ;;  %v845_v8 = vsel %vm6034_vm5, %v4681_v2, 0.0  ;;  %vm6046_vm5 = vmmov %vm6044_vm1 }
 0x658   :  { %846 = vadd.xlane.f32.xlu0 %v845_v8 }
 0x659   :  { %v5358_v9 = vpop.eup %4682 }
 0x65a   :  { %v854_v11 = vsel %vm6035_vm6, %v5358_v9, 0.0  ;;  %v4685_v12 = vpop.eup %4684  ;;  %vm6047_vm6 = vmmov %vm6045_vm2 }
 0x65b   :  { %855 = vadd.xlane.f32.xlu1 %v854_v11  ;;  %v851_v14 = vsel %vm6036_vm8, %v4685_v12, 0.0  ;;  %vm6048_vm8 = vmmov %vm6045_vm2 }
 0x65f   :  { %852 = vadd.xlane.f32.xlu1 %v851_v14 }
 0x66e   :  { %4577 = vrot.lane.b32.xlu0 %v5257_v34, %s4950_s20 }
 0x670   :  { %4572 = vrot.lane.b32.xlu1 %v5250_v32, %s4950_s20 }
 0x672   :  { %4582 = vrot.lane.b32.xlu0 %v5263_v37, %s4950_s20 }
 0x6db   :  { %v838_v16 = vpop.xlane.xlu1 %837 }
 0x6dc   :  { %v835_v17 = vpop.xlane.xlu0 %834 }
 0x6dd   :  { %4686 = vrcp.f32 %v835_v17 }
 0x6de   :  { %4688 = vrcp.f32 %v838_v16 }
 0x6e0   :  { %v844_v19 = vpop.xlane.xlu1 %843 }
 0x6e1   :  { %v841_v20 = vpop.xlane.xlu0 %840 }
 0x6e2   :  { %4690 = vrcp.f32 %v841_v20 }
 0x6e3   :  { %4692 = vrcp.f32 %v844_v19 }
 0x6e4   :  { %v850_v21 = vpop.xlane.xlu1 %849 }
 0x6e5   :  { %v847_v22 = vpop.xlane.xlu0 %846 }
 0x6e6   :  { %4694 = vrcp.f32 %v847_v22 }
 0x6e7   :  { %v4687_v23 = vpop.eup %4686  ;;  %4696 = vrcp.f32 %v850_v21 }
 0x6e8   :  { %v856_v24 = vpop.xlane.xlu1 %855  ;;  %v858_v25 = vmul.f32 %v4687_v23, %v4673_v49  ;;  %v4689_v40 = vpop.eup %4688 }
 0x6e9   :  { %v4578_v26 = vpop.permute.xlu0 %4577  ;;  %v860_v43 = vmul.f32 %v4689_v40, %v5340_v48 }
 0x6ea   :  { %3974 = vmatprep.mubr.msk.f32.mxu1 %vm6024_vm0, %v858_v25  ;;  %v4580_v28 = vunpack.i.h.bf16 %v4578_v26  ;;  %v4579_v32 = vunpack.i.l.bf16 %v4578_v26  ;;  %v3519_v26 = vld [vmem:[%s5977_s10] ss:$0 sm:$0xff]  ;;  %vm6049_vm0 = vmmov %vm6045_vm2 }
 0x6ec   :  { %v853_v34 = vpop.xlane.xlu1 %852  ;;  %v4323_v36 = vpack.c.bf16 %v4580_v28, %v4579_v32  ;;  %v4691_v41 = vpop.eup %4690 }
 0x6ed   :  { %v4583_v37 = vpop.permute.xlu0 %4582  ;;  %4698 = vrcp.f32 %v853_v34  ;;  %v4693_v30 = vpop.eup %4692  ;;  %v862_v5 = vmul.f32 %v4691_v41, %v5347_v62 }
 0x6ee   :  { %v4585_v33 = vunpack.i.h.bf16 %v4583_v37  ;;  %v4584_v35 = vunpack.i.l.bf16 %v4583_v37  ;;  %4700 = vrcp.f32 %v856_v24  ;;  %v864_v45 = vmul.f32 %v4693_v30, %v5345_v59  ;;  %v1059_v59 = vld [vmem:[%s5976_s9 + $0x18] sm:$0xff] }
 0x6ef   :  { %v4335_v60 = vpack.c.bf16 %v1059_v59, %v1058_v58  ;;  %v3522_v58 = vld [vmem:[%s5978_s11] ss:$0 sm:$0xff] }
 0x6f0   :  { %v4573_v27 = vpop.permute.xlu1 %4572  ;;  %v4327_v38 = vpack.c.bf16 %v4585_v33, %v4584_v35  ;;  %v4695_v44 = vpop.eup %4694 }
 0x6f1   :  { %v4575_v29 = vunpack.i.h.bf16 %v4573_v27  ;;  %v4574_v31 = vunpack.i.l.bf16 %v4573_v27  ;;  %v4697_v46 = vpop.eup %4696  ;;  %v866_v47 = vmul.f32 %v4695_v44, %v4681_v2  ;;  %v1195_v44 = vld [vmem:[%s5980_s13 + $0x8] sm:$0xff] }
 0x6f2   :  { %v868_v50 = vmul.f32 %v4697_v46, %v5353_v6  ;;  %v1196_v46 = vld [vmem:[%s5980_s13 + $0x10] sm:$0xff] }
 0x6f3   :  { %v4319_v18 = vpack.c.bf16 %v4575_v29, %v4574_v31 }
 0x6f5   :  { %4320 = vmatprep.subr.bf16.mxu1 %v4319_v18 }
 0x6f6   :  { %4322 = vmatpush3.bf16.msra.mxu1 %v4319_v18 }
 0x6f7   :  { %4324 = vmatprep.subr.bf16.mxu1 %v4323_v36  ;;  %v4699_v49 = vpop.eup %4698 }
 0x6f8   :  { %v4701_v48 = vpop.eup %4700  ;;  %v870_v52 = vmul.f32 %v4699_v49, %v4685_v12 }
 0x6f9   :  { %v872_v53 = vmul.f32 %v4701_v48, %v5358_v9 }
 0x6fa   :  { %4326 = vmatpush3.bf16.msra.mxu1 %v4323_v36 }
 0x6fb   :  { %4328 = vmatprep.subr.bf16.mxu1 %v4327_v38 }
 0x6fe   :  { %4330 = vmatpush3.bf16.msra.mxu1 %v4327_v38 }
 0x6ff   :  { %4332 = vmatprep.subr.bf16.mxu1 %v4331_v57 }
 0x701   :  { %3975 = vmatmul.mubr.msk.f32.vlgmr.msra.gmra.mrb[8].mxu1 %vm6037_vm3, %v860_v43  ;;  %vm6050_vm3 = vmmov %vm6049_vm0 }
 0x702   :  { %3977 = vmatprep.mubr.msk.f32.mxu1 %vm6038_vm4, %v862_v5  ;;  %4334 = vmatpush3.bf16.msra.mxu1 %v4331_v57  ;;  %vm6051_vm4 = vmmov %vm6049_vm0 }
 0x703   :  { %4336 = vmatprep.subr.bf16.mxu1 %v4335_v60 }
 0x705   :  { %3978 = vmatmul.mubr.msk.f32.gmra.mrb[10].mxu1 %vm6039_vm9, %v864_v45  ;;  %vm6052_vm9 = vmmov %vm6049_vm0 }
 0x706   :  { %3980 = vmatprep.mubr.msk.f32.mxu1 %vm6040_vm10, %v866_v47  ;;  %4338 = vmatpush3.bf16.msra.mxu1 %v4335_v60  ;;  %v1197_v47 = vld [vmem:[%s5980_s13 + $0x18] sm:$0xff]  ;;  %vm6053_vm10 = vmmov %vm6049_vm0 }
 0x707   :  { %v4343_v49 = vpack.c.bf16 %v1197_v47, %v1196_v46 }
 0x709   :  { %3981 = vmatmul.mubr.msk.f32.gmra.mrb[12].mxu1 %vm6041_vm11, %v868_v50 }
 0x70a   :  { %3983 = vmatprep.mubr.msk.f32.mxu1 %vm6042_vm14, %v870_v52 }
 0x70d   :  { %3984 = vmatmul.mubr.msk.f32.gmra.mrb[14].mxu1 %vm6043_vm15, %v872_v53 }
 0x7d4   :  { %v3976_v62 = vpop.f32.mrb[8].mxu1 }
 0x7d5   :  { %1027 = vrot.lane.b32.xlu1 %v3976_v62, %s4944_s3  ;;  %v987_v0 = vpop.f32.mrb[9].mxu1 }
 0x7d8   :  { %v3979_v4 = vpop.f32.mrb[10].mxu1 }
 0x7d9   :  { %1035 = vrot.lane.b32.xlu0 %v3979_v4, %s4945_s27  ;;  %v997_v6 = vpop.f32.mrb[11].mxu1 }
 0x7dc   :  { %v3982_v2 = vpop.f32.mrb[12].mxu1 }
 0x7dd   :  { %1031 = vrot.lane.b32.xlu0 %v997_v6, %s4936_s26  ;;  %1042 = vrot.lane.b32.xlu1 %v3982_v2, %s4944_s3  ;;  %v1007_v7 = vpop.f32.mrb[13].mxu1 }
 0x7e0   :  { %v3985_v8 = vpop.f32.mrb[14].mxu1 }
 0x7e1   :  { %1050 = vrot.lane.b32.xlu0 %v3985_v8, %s4945_s27  ;;  %v1017_v9 = vpop.f32.mrb[15].mxu1  ;;  %v1340_v8 = vld [vmem:[%s5982_s15] sm:$0xff] }
 0x7e2   :  { %1046 = vrot.lane.b32.xlu1 %v1017_v9, %s4936_s26  ;;  %v1341_v9 = vld [vmem:[%s5982_s15 + $0x8] sm:$0xff] }
 0x847   :  { %v1028_v11 = vpop.permute.xlu1 %1027 }
 0x848   :  { %v1038_v14 = vsel %vm6044_vm1, %v987_v0, %v1028_v11  ;;  %v3523_v0 = vld [vmem:[%s5979_s12] ss:$0 sm:$0xff]  ;;  %v4347_v11 = vpack.c.bf16 %v1341_v9, %v1340_v8  ;;  %vm6054_vm1 = vmmov %vm6043_vm15 }
 0x84a   :  { %4348 = vmatprep.subr.bf16.mxu1 %v4347_v11 }
 0x84b   :  { %v1036_v12 = vpop.permute.xlu0 %1035 }
 0x84f   :  { %v1032_v16 = vpop.permute.xlu0 %1031  ;;  %v1043_v17 = vpop.permute.xlu1 %1042 }
 0x850   :  { %v1039_v19 = vsel %vm297_vm12, %v1038_v14, %v1032_v16  ;;  %v1053_v21 = vsel %vm6046_vm5, %v1007_v7, %v1043_v17  ;;  %v1343_v14 = vld [vmem:[%s5982_s15 + $0x18] sm:$0xff]  ;;  %v1344_v17 = vld [vmem:[%s5982_s15 + $0x20] sm:$0xff]  ;;  %vm6056_vm5 = vmmov %vm6049_vm0 }
 0x851   :  { %v1040_v20 = vsel %vm299_vm13, %v1039_v19, %v1036_v12  ;;  %v1342_v12 = vld [vmem:[%s5982_s15 + $0x10] sm:$0xff]  ;;  %v1345_v19 = vld [vmem:[%s5982_s15 + $0x28] sm:$0xff] }
 0x852   :  { %3994 = vmatprep.mubr.msk.f32.mxu1 %vm6045_vm2, %v1040_v20  ;;  %v4351_v16 = vpack.c.bf16 %v1343_v14, %v1342_v12  ;;  %v4355_v20 = vpack.c.bf16 %v1345_v19, %v1344_v17  ;;  %v4951_v12 = vmov -1.0   ;;  %vm6055_vm2 = vmmov %vm6049_vm0 }
 0x853   :  { %v1051_v23 = vpop.permute.xlu0 %1050 }
 0x854   :  { %v1047_v22 = vpop.permute.xlu1 %1046 }
 0x855   :  { %v1054_v24 = vsel %vm297_vm12, %v1053_v21, %v1047_v22  ;;  %v1346_v21 = vld [vmem:[%s5982_s15 + $0x30] sm:$0xff]  ;;  %v1347_v22 = vld [vmem:[%s5982_s15 + $0x38] sm:$0xff] }
 0x856   :  { %v1055_v25 = vsel %vm299_vm13, %v1054_v24, %v1051_v23  ;;  %v4359_v23 = vpack.c.bf16 %v1347_v22, %v1346_v21  ;;  %v3524_v24 = vld [vmem:[%s5981_s14] ss:$0 sm:$0xff] }
 0x857   :  { %3995 = vmatmul.mubr.msk.f32.vlgmr.msra.gmra.mrb[16].mxu1 %vm6047_vm6, %v1055_v25  ;;  %vm6057_vm6 = vmmov %vm6049_vm0 }
 0x858   :  { %4350 = vmatpush3.bf16.msra.mxu1 %v4347_v11 }
 0x859   :  { %4352 = vmatprep.subr.bf16.mxu1 %v4351_v16 }
 0x85c   :  { %4354 = vmatpush3.bf16.msra.mxu1 %v4351_v16 }
 0x85d   :  { %4356 = vmatprep.subr.bf16.mxu1 %v4355_v20 }
 0x860   :  { %4358 = vmatpush3.bf16.msra.mxu1 %v4355_v20 }
 0x861   :  { %4360 = vmatprep.subr.bf16.mxu1 %v4359_v23 }
 0x864   :  { %4362 = vmatpush3.bf16.msra.mxu1 %v4359_v23 }
 0x92a   :  { %v3996_v34 = vpop.f32.mrb[16].mxu1 }
 0x92b   :  { %v1145_v27 = vadd.f32 %v3996_v34, %v3519_v26  ;;  %v1139_v28 = vpop.f32.mrb[17].mxu1 }
 0x92c   :  { %v1140_v32 = vadd.f32 %v3519_v26, %v1139_v28 }
 0x92d   :  { %v1149_v29 = vadd.f32 %v1145_v27, %v5174_v63 }
 0x92e   :  { %v1148_v31 = vadd.f32 %v1140_v32, %v5170_v61  ;;  %v1194_v61 = vld [vmem:[%s5980_s13] sm:$0xff] }
 0x92f   :  { %v1155_v37 = vsel %vm6048_vm8, %v1149_v29, 0.0  ;;  %v4339_v45 = vpack.c.bf16 %v1195_v44, %v1194_v61  ;;  %vm6058_vm8 = vmmov %vm6049_vm0 }
 0x930   :  { %1156 = vadd.xlane.f32.xlu0 %v1155_v37  ;;  %v1152_v18 = vsel %vm6049_vm0, %v1148_v31, 0.0 }
 0x931   :  { %1153 = vadd.xlane.f32.xlu1 %v1152_v18  ;;  %4340 = vmatprep.subr.bf16.mxu0 %v4339_v45 }
 0x932   :  { %4342 = vmatpush3.bf16.msra.mxu0 %v4339_v45 }
 0x933   :  { %4344 = vmatprep.subr.bf16.mxu0 %v4343_v49 }
 0x936   :  { %4346 = vmatpush3.bf16.msra.mxu0 %v4343_v49 }
 0x9bd   :  { %v1157_v33 = vpop.xlane.xlu0 %1156 }
 0x9be   :  { %v1159_v35 = vmul.f32 0.03125, %v1157_v33  ;;  %v1154_v36 = vpop.xlane.xlu1 %1153 }
 0x9bf   :  { %v1158_v38 = vmul.f32 0.03125, %v1154_v36 }
 0x9c0   :  { %v1161_v40 = vsub.f32 %v1149_v29, %v1159_v35 }
 0x9c1   :  { %v1160_v41 = vsub.f32 %v1148_v31, %v1158_v38 }
 0x9c2   :  { %v1163_v43 = vmul.f32 %v1161_v40, %v1161_v40 }
 0x9c3   :  { %v1162_v30 = vmul.f32 %v1160_v41, %v1160_v41 }
 0x9c4   :  { %v1167_v5 = vsel %vm6050_vm3, %v1163_v43, 0.0  ;;  %vm6059_vm3 = vmmov %vm6049_vm0 }
 0x9c5   :  { %1168 = vadd.xlane.f32.xlu1 %v1167_v5  ;;  %v1164_v63 = vsel %vm6051_vm4, %v1162_v30, 0.0  ;;  %vm6060_vm4 = vcmask 64512  }
 0x9c6   :  { %1165 = vadd.xlane.f32.xlu0 %v1164_v63 }
 0xa52   :  { %v1169_v50 = vpop.xlane.xlu1 %1168 }
 0xa53   :  { %v1171_v48 = vmul.f32 0.03125, %v1169_v50  ;;  %v1166_v52 = vpop.xlane.xlu0 %1165 }
 0xa54   :  { %v1170_v53 = vmul.f32 0.03125, %v1166_v52 }
 0xa55   :  { %v1173_v54 = vadd.f32 1e-12, %v1171_v48 }
 0xa56   :  { %v1172_v56 = vadd.f32 1e-12, %v1170_v53 }
 0xa57   :  { %4702 = vrsqrt.f32 %v1173_v54 }
 0xa58   :  { %4704 = vrsqrt.f32 %v1172_v56 }
 0xa61   :  { %v4703_v57 = vpop.eup %4702 }
 0xa62   :  { %v4705_v59 = vpop.eup %4704  ;;  %v1177_v60 = vmul.f32 %v4703_v57, %v1161_v40 }
 0xa63   :  { %v1176_v62 = vmul.f32 %v4705_v59, %v1160_v41 }
 0xa64   :  { %v1185_v4 = vmul.f32 %v3522_v58, %v1177_v60 }
 0xa65   :  { %v1184_v6 = vmul.f32 %v3522_v58, %v1176_v62 }
 0xa66   :  { %v5437_v7 = vadd.f32 %v3523_v0, %v1185_v4 }
 0xa67   :  { %v5435_v2 = vadd.f32 %v3523_v0, %v1184_v6 }
 0xa69   :  { %4005 = vmatprep.mubr.msk.f32.mxu0 %vm6052_vm9, %v5435_v2  ;;  %vm6061_vm9 = vmmov %vm6060_vm4 }
 0xa6a   :  { %4006 = vmatmul.mubr.msk.f32.vlgmr.msra.gmra.mrb[12].mxu0 %vm6053_vm10, %v5437_v7  ;;  %vm6062_vm10 = vmmov %vm6060_vm4 }
 0xb3d   :  { %v4007_v25 = vpop.f32.mrb[12].mxu0 }
 0xb3e   :  { %v1283_v26 = vadd.f32 %v4007_v25, %v3524_v24  ;;  %v1277_v34 = vpop.f32.mrb[13].mxu0 }
 0xb3f   :  { %v1278_v27 = vadd.f32 %v3524_v24, %v1277_v34 }
 0xb40   :  { %v1289_v28 = vmul.f32 0.70710677, %v1283_v26  ;;  %v1287_v24 = vmul.f32 0.5, %v1283_v26 }
 0xb41   :  { %v1288_v32 = vmul.f32 0.70710677, %v1278_v27  ;;  %v1286_v22 = vmul.f32 0.5, %v1278_v27 }
 0xb42   :  { %v1295_v29 = vand.u32 2147483647, %v1289_v28  ;;  %vm1291_vm11 = vcmp.ge.f32.partialorder %v1289_v28, 0.0  ;;  %v3527_v28 = vld [vmem:[%s5983_s16] ss:$0 sm:$0xff] }
 0xb43   :  { %v1294_v31 = vand.u32 2147483647, %v1288_v32  ;;  %vm1290_vm14 = vcmp.ge.f32.partialorder %v1288_v32, 0.0  ;;  %v1293_v14 = vsel %vm1291_vm11, 1.0, %v4951_v12  ;;  %vm6063_vm11 = vmmov %vm6060_vm4 }
 0xb44   :  { %v1297_v37 = vmul.f32 0.3275911, %v1295_v29  ;;  %v1323_v36 = vsub.f32 0.0, %v1295_v29  ;;  %v1292_v19 = vsel %vm1290_vm14, 1.0, %v4951_v12  ;;  %vm6064_vm14 = vmmov %vm6060_vm4 }
 0xb45   :  { %v1296_v18 = vmul.f32 0.3275911, %v1294_v31  ;;  %v1322_v38 = vsub.f32 0.0, %v1294_v31 }
 0xb46   :  { %v1299_v33 = vadd.f32 1.0, %v1297_v37  ;;  %v1325_v41 = vmul.f32 %v1323_v36, %v1295_v29 }
 0xb47   :  { %v1298_v35 = vadd.f32 1.0, %v1296_v18  ;;  %v1324_v5 = vmul.f32 %v1322_v38, %v1294_v31 }
 0xb48   :  { %4706 = vrcp.f32 %v1299_v33  ;;  %v1328_v44 = vmul.f32 1.442695, %v1325_v41 }
 0xb49   :  { %4708 = vrcp.f32 %v1298_v35  ;;  %v1326_v47 = vmul.f32 1.442695, %v1324_v5 }
 0xb4a   :  { %4710 = vpow2.f32 %v1328_v44 }
 0xb4b   :  { %4712 = vpow2.f32 %v1326_v47 }
 0xb52   :  { %v4707_v40 = vpop.eup %4706 }
 0xb53   :  { %v4709_v43 = vpop.eup %4708  ;;  %v1305_v30 = vmul.f32 1.0614054, %v4707_v40 }
 0xb54   :  { %v1304_v63 = vmul.f32 1.0614054, %v4709_v43  ;;  %v4711_v0 = vpop.eup %4710 }
 0xb55   :  { %v1307_v61 = vadd.f32 -1.4531521, %v1305_v30  ;;  %v4713_v6 = vpop.eup %4712 }
 0xb56   :  { %v1306_v45 = vadd.f32 -1.4531521, %v1304_v63 }
 0xb57   :  { %v1309_v46 = vmul.f32 %v4707_v40, %v1307_v61  ;;  %v3533_v61 = vld [vmem:[%s5974_s7 + $0x28] sm:$0xff] }
 0xb58   :  { %v1308_v49 = vmul.f32 %v4709_v43, %v1306_v45  ;;  %v3534_v45 = vld [vmem:[%s5974_s7 + $0x30] sm:$0xff] }
 0xb59   :  { %v1311_v50 = vadd.f32 1.4214138, %v1309_v46  ;;  %v3535_v46 = vld [vmem:[%s5974_s7 + $0x38] sm:$0xff] }
 0xb5a   :  { %v1310_v48 = vadd.f32 1.4214138, %v1308_v49  ;;  %v4367_v47 = vpack.c.bf16 %v3535_v46, %v3534_v45 }
 0xb5b   :  { %v1313_v52 = vmul.f32 %v4707_v40, %v1311_v50 }
 0xb5c   :  { %v1312_v53 = vmul.f32 %v4709_v43, %v1310_v48 }
 0xb5d   :  { %v1315_v54 = vadd.f32 -0.28449672, %v1313_v52 }
 0xb5e   :  { %v1314_v56 = vadd.f32 -0.28449672, %v1312_v53 }
 0xb5f   :  { %v1317_v57 = vmul.f32 %v4707_v40, %v1315_v54 }
 0xb60   :  { %v1316_v58 = vmul.f32 %v4709_v43, %v1314_v56 }
 0xb61   :  { %v1319_v59 = vadd.f32 0.2548296, %v1317_v57  ;;  %v3530_v57 = vld [vmem:[%s5984_s17] ss:$0 sm:$0xff] }
 0xb62   :  { %v1318_v60 = vadd.f32 0.2548296, %v1316_v58 }
 0xb63   :  { %v1321_v62 = vmul.f32 %v4707_v40, %v1319_v59 }
 0xb64   :  { %v1320_v4 = vmul.f32 %v4709_v43, %v1318_v60 }
 0xb65   :  { %v1331_v8 = vmul.f32 %v4711_v0, %v1321_v62  ;;  %v3531_v62 = vld [vmem:[#allocation8] ss:$0 sm:$0xff] }
 0xb66   :  { %v1330_v9 = vmul.f32 %v4713_v6, %v1320_v4 }
 0xb67   :  { %v1333_v11 = vsub.f32 1.0, %v1331_v8 }
 0xb68   :  { %v1332_v16 = vsub.f32 1.0, %v1330_v9  ;;  %v3537_v9 = vld [vmem:[%s5975_s8 + $0x1] ss:$0 sm:$0xff] }
 0xb69   :  { %v1335_v17 = vmul.f32 %v1333_v11, %v1293_v14 }
 0xb6a   :  { %v1334_v20 = vmul.f32 %v1332_v16, %v1292_v19 }
 0xb6b   :  { %v1337_v21 = vadd.f32 1.0, %v1335_v17 }
 0xb6c   :  { %v1336_v23 = vadd.f32 1.0, %v1334_v20 }
 0xb6d   :  { %v1339_v34 = vmul.f32 %v1337_v21, %v1287_v24 }
 0xb6e   :  { %v1338_v25 = vmul.f32 %v1336_v23, %v1286_v22 }
 0xb70   :  { %4024 = vmatprep.mubr.msk.f32.mxu1 %vm6043_vm15, %v1338_v25  ;;  %vm6065_vm15 = vmmov %vm6060_vm4 }
 0xb71   :  { %4025 = vmatmul.mubr.msk.f32.vlgmr.msra.gmra.mrb[18].mxu1 %vm6054_vm1, %v1339_v34  ;;  %vm6066_vm1 = vmmov %vm6060_vm4 }
 0xc44   :  { %v4026_v32 = vpop.f32.mrb[18].mxu1 }
 0xc45   :  { %v1433_v29 = vadd.f32 %v4026_v32, %v3527_v28  ;;  %v1427_v31 = vpop.f32.mrb[19].mxu1 }
 0xc46   :  { %v1428_v37 = vadd.f32 %v3527_v28, %v1427_v31 }
 0xc47   :  { %v1437_v18 = vadd.f32 %v1433_v29, %v5437_v7 }
 0xc48   :  { %v1436_v27 = vadd.f32 %v1428_v37, %v5435_v2  ;;  %v3532_v2 = vld [vmem:[%s5974_s7 + $0x20] sm:$0xff] }
 0xc49   :  { %v1443_v26 = vsel %vm6055_vm2, %v1437_v18, 0.0  ;;  %v4363_v44 = vpack.c.bf16 %v3533_v61, %v3532_v2  ;;  %vm6067_vm2 = vmmov %vm6066_vm1 }
 0xc4a   :  { %1444 = vadd.xlane.f32.xlu1 %v1443_v26  ;;  %v1440_v33 = vsel %vm6056_vm5, %v1436_v27, 0.0  ;;  %vm6068_vm5 = vcmask 523264  }
 0xc4b   :  { %1441 = vadd.xlane.f32.xlu0 %v1440_v33  ;;  %4364 = vmatprep.subr.bf16.mxu0 %v4363_v44 }
 0xc4c   :  { %4366 = vmatpush3.bf16.msra.mxu0 %v4363_v44 }
 0xc4d   :  { %4368 = vmatprep.subr.bf16.mxu0 %v4367_v47 }
 0xc50   :  { %4370 = vmatpush3.bf16.msra.mxu0 %v4367_v47 }
 0xcd7   :  { %v1445_v35 = vpop.xlane.xlu1 %1444 }
 0xcd8   :  { %v1447_v36 = vmul.f32 0.03125, %v1445_v35  ;;  %v1442_v38 = vpop.xlane.xlu0 %1441 }
 0xcd9   :  { %v1446_v40 = vmul.f32 0.03125, %v1442_v38 }
 0xcda   :  { %v1449_v41 = vsub.f32 %v1437_v18, %v1447_v36 }
 0xcdb   :  { %v1448_v43 = vsub.f32 %v1436_v27, %v1446_v40 }
 0xcdc   :  { %v1451_v30 = vmul.f32 %v1449_v41, %v1449_v41 }
 0xcdd   :  { %v1450_v5 = vmul.f32 %v1448_v43, %v1448_v43 }
 0xcde   :  { %v1455_v63 = vsel %vm6057_vm6, %v1451_v30, 0.0  ;;  %vm6069_vm6 = vmmov %vm6068_vm5 }
 0xcdf   :  { %1456 = vadd.xlane.f32.xlu1 %v1455_v63  ;;  %v1452_v7 = vsel %vm6058_vm8, %v1450_v5, 0.0  ;;  %vm6070_vm8 = vmmov %vm6068_vm5 }
 0xce0   :  { %1453 = vadd.xlane.f32.xlu0 %v1452_v7 }
 0xd6c   :  { %v1457_v49 = vpop.xlane.xlu1 %1456 }
 0xd6d   :  { %v1459_v50 = vmul.f32 0.03125, %v1457_v49  ;;  %v1454_v48 = vpop.xlane.xlu0 %1453 }
 0xd6e   :  { %v1458_v52 = vmul.f32 0.03125, %v1454_v48 }
 0xd6f   :  { %v1461_v53 = vadd.f32 1e-12, %v1459_v50 }
 0xd70   :  { %v1460_v54 = vadd.f32 1e-12, %v1458_v52 }
 0xd71   :  { %4714 = vrsqrt.f32 %v1461_v53 }
 0xd72   :  { %4716 = vrsqrt.f32 %v1460_v54 }
 0xd7b   :  { %v4715_v56 = vpop.eup %4714 }
 0xd7c   :  { %v4717_v58 = vpop.eup %4716  ;;  %v1465_v59 = vmul.f32 %v4715_v56, %v1449_v41 }
 0xd7d   :  { %v1464_v60 = vmul.f32 %v4717_v58, %v1448_v43 }
 0xd7e   :  { %v1473_v0 = vmul.f32 %v3530_v57, %v1465_v59 }
 0xd7f   :  { %v1472_v4 = vmul.f32 %v3530_v57, %v1464_v60 }
 0xd80   :  { %v5500_v8 = vadd.f32 %v3531_v62, %v1473_v0 }
 0xd81   :  { %v5498_v6 = vadd.f32 %v3531_v62, %v1472_v4 }
 0xd83   :  { %4035 = vmatprep.mubr.msk.f32.mxu0 %vm6049_vm0, %v5498_v6  ;;  %vm6071_vm0 = vmmov %vm6068_vm5 }
 0xd84   :  { %4036 = vmatmul.mubr.msk.f32.vlgmr.msra.gmra.mrb[14].mxu0 %vm6059_vm3, %v5500_v8  ;;  %vm6072_vm3 = vmmov %vm6071_vm0 }
 0xe57   :  { %v4037_v11 = vpop.f32.mrb[14].mxu0 }
 0xe58   :  { %v1567_v14 = vpop.f32.mrb[15].mxu0  ;;  %v1573_v17 = vadd.f32 %v4037_v11, %v3537_v9 }
 0xe59   :  { %v1568_v16 = vadd.f32 %v3537_v9, %v1567_v14 }
 0xe5b   :  { %1579 = vrot.lane.b32.xlu1 %v1568_v16, %s4940_s23  ;;  %1577 = vrot.lane.b32.xlu0 %v1568_v16, %s4941_s4 }
 0xe5c   :  { %4054 = vmatprep.mubr.msk.f32.mxu0 %vm6060_vm4, %v1568_v16  ;;  %vm6073_vm4 = vmmov %vm6071_vm0 }
 0xe5f   :  { %1581 = vrot.lane.b32.xlu1 %v1568_v16, %s4942_s21  ;;  %1584 = vrot.lane.b32.xlu0 %v1573_v17, %s4941_s4 }
 0xe63   :  { %1586 = vrot.lane.b32.xlu1 %v1573_v17, %s4940_s23  ;;  %1588 = vrot.lane.b32.xlu0 %v1573_v17, %s4942_s21 }
 0xecd   :  { %v1580_v19 = vpop.permute.xlu1 %1579  ;;  %v1578_v20 = vpop.permute.xlu0 %1577 }
 0xece   :  { %v5516_v21 = vpack.i.bf16 %v1578_v20, %v1568_v16 }
 0xed0   :  { %4587 = vrot.lane.b32.xlu1 %v5516_v21, %s4943_s24 }
 0xed1   :  { %v1582_v22 = vpop.permute.xlu1 %1581  ;;  %v1585_v23 = vpop.permute.xlu0 %1584 }
 0xed2   :  { %v5520_v24 = vpack.i.bf16 %v1582_v22, %v1580_v19  ;;  %v5522_v25 = vpack.i.bf16 %v1585_v23, %v1573_v17 }
 0xed4   :  { %4592 = vrot.lane.b32.xlu0 %v5520_v24, %s4943_s24  ;;  %4597 = vrot.lane.b32.xlu1 %v5522_v25, %s4943_s24 }
 0xed5   :  { %v1587_v34 = vpop.permute.xlu1 %1586  ;;  %v1589_v28 = vpop.permute.xlu0 %1588 }
 0xed6   :  { %v5528_v32 = vpack.i.bf16 %v1589_v28, %v1587_v34 }
 0xed8   :  { %4602 = vrot.lane.b32.xlu0 %v5528_v32, %s4943_s24 }
 0xf42   :  { %v4588_v29 = vpop.permute.xlu1 %4587 }
 0xf43   :  { %v4590_v31 = vunpack.i.h.bf16 %v4588_v29  ;;  %v4589_v37 = vunpack.i.l.bf16 %v4588_v29 }
 0xf45   :  { %v4371_v18 = vpack.c.bf16 %v4590_v31, %v4589_v37 }
 0xf46   :  { %v4593_v27 = vpop.permute.xlu0 %4592  ;;  %v4598_v35 = vpop.permute.xlu1 %4597 }
 0xf47   :  { %v4595_v26 = vunpack.i.h.bf16 %v4593_v27  ;;  %v4594_v33 = vunpack.i.l.bf16 %v4593_v27  ;;  %4373 = vmatprep.subr.msk.bf16.mxu0 %vm6003_vm7, %v4371_v18  ;;  %v4600_v38 = vunpack.i.h.bf16 %v4598_v35  ;;  %v4599_v40 = vunpack.i.l.bf16 %v4598_v35 }
 0xf48   :  { %4376 = vmatpush3.bf16.xpose.msk.msra.mxu0 %vm6003_vm7, %v4371_v18 }
 0xf49   :  { %v4377_v36 = vpack.c.bf16 %v4595_v26, %v4594_v33  ;;  %v4383_v41 = vpack.c.bf16 %v4600_v38, %v4599_v40 }
 0xf4a   :  { %v4603_v43 = vpop.permute.xlu0 %4602 }
 0xf4b   :  { %4379 = vmatprep.subr.msk.bf16.mxu0 %vm6003_vm7, %v4377_v36  ;;  %v4605_v30 = vunpack.i.h.bf16 %v4603_v43  ;;  %v4604_v5 = vunpack.i.l.bf16 %v4603_v43 }
 0xf4d   :  { %v4389_v63 = vpack.c.bf16 %v4605_v30, %v4604_v5 }
 0xf50   :  { %4382 = vmatpush3.bf16.xpose.msk.msra.mxu0 %vm6003_vm7, %v4377_v36 }
 0xf51   :  { %4385 = vmatprep.subr.msk.bf16.mxu0 %vm6003_vm7, %v4383_v41 }
 0xf58   :  { %4388 = vmatpush3.bf16.xpose.msk.msra.mxu0 %vm6003_vm7, %v4383_v41 }
 0xf59   :  { %4391 = vmatprep.subr.msk.bf16.mxu0 %vm6003_vm7, %v4389_v63 }
 0xf60   :  { %4394 = vmatpush3.bf16.xpose.msk.msra.mxu0 %vm6003_vm7, %v4389_v63 }
 0xf67   :  { %4055 = vmatmul.mubr.msk.f32.vlgmr.msra.gmra.mrb[16].mxu0 %vm6061_vm9, %v1578_v20  ;;  %vm6074_vm9 = vmmov %vm6071_vm0 }
 0xf68   :  { %4057 = vmatprep.mubr.msk.f32.mxu0 %vm6062_vm10, %v1580_v19  ;;  %vm6075_vm10 = vmmov %vm6071_vm0 }
 0xf6b   :  { %4058 = vmatmul.mubr.msk.f32.gmra.mrb[18].mxu0 %vm6063_vm11, %v1582_v22  ;;  %vm6076_vm11 = vmmov %vm6071_vm0 }
 0xf6c   :  { %4060 = vmatprep.mubr.msk.f32.mxu0 %vm6064_vm14, %v1573_v17  ;;  %vm6077_vm14 = vmmov %vm6071_vm0 }
 0xf6f   :  { %4061 = vmatmul.mubr.msk.f32.gmra.mrb[20].mxu0 %vm6065_vm15, %v1585_v23  ;;  %vm6078_vm15 = vmmov %vm6071_vm0 }
 0xf70   :  { %4063 = vmatprep.mubr.msk.f32.mxu0 %vm6066_vm1, %v1587_v34  ;;  %vm6079_vm1 = vmmov %vm6071_vm0 }
 0xf73   :  { %4064 = vmatmul.mubr.msk.f32.gmra.mrb[22].mxu0 %vm6067_vm2, %v1589_v28  ;;  %vm6080_vm2 = vmmov %vm6071_vm0 }
0x103a   :  { %v4056_v7 = vpop.f32.mrb[16].mxu0 }
0x103b   :  { %v1744_v2 = vmul.f32 0.35355338, %v4056_v7  ;;  %v1704_v61 = vpop.f32.mrb[17].mxu0 }
0x103c   :  { %v1743_v44 = vmul.f32 0.35355338, %v1704_v61 }
0x103d   :  { %v1752_v45 = vadd.f32 %v1744_v2, %v5305_v39 }
0x103e   :  { %v4059_v46 = vpop.f32.mrb[18].mxu0  ;;  %v1751_v47 = vadd.f32 %v1743_v44, %v5307_v42 }
0x103f   :  { %v1746_v49 = vmul.f32 0.35355338, %v4059_v46  ;;  %v1714_v50 = vpop.f32.mrb[19].mxu0  ;;  %v1762_v48 = vsel %vm6068_vm5, %v1752_v45, -inf  ;;  %vm6081_vm5 = vmmov %vm6071_vm0 }
0x1040   :  { %v1745_v52 = vmul.f32 0.35355338, %v1714_v50  ;;  %1763 = vmax.xlane.f32.xlu0 %v1762_v48  ;;  %v1759_v53 = vsel %vm6069_vm6, %v1751_v47, -inf  ;;  %vm6082_vm6 = vmmov %vm6071_vm0 }
0x1041   :  { %1760 = vmax.xlane.f32.xlu1 %v1759_v53  ;;  %v1754_v54 = vadd.f32 %v1746_v49, %v5312_v51 }
0x1042   :  { %v4062_v56 = vpop.f32.mrb[20].mxu0  ;;  %v1753_v57 = vadd.f32 %v1745_v52, %v5316_v55 }
0x1043   :  { %v1748_v58 = vmul.f32 0.35355338, %v4062_v56  ;;  %v1724_v59 = vpop.f32.mrb[21].mxu0  ;;  %v1768_v60 = vsel %vm6070_vm8, %v1754_v54, -inf  ;;  %vm6083_vm8 = vmmov %vm6071_vm0 }
0x1044   :  { %v1747_v62 = vmul.f32 0.35355338, %v1724_v59  ;;  %v1765_v0 = vsel %vm6071_vm0, %v1753_v57, -inf }
0x1045   :  { %1769 = vmax.xlane.f32.xlu1 %v1768_v60  ;;  %1766 = vmax.xlane.f32.xlu0 %v1765_v0  ;;  %v1756_v4 = vadd.f32 %v1748_v58, %v5321_v1 }
0x1046   :  { %v4065_v9 = vpop.f32.mrb[22].mxu0  ;;  %v1755_v11 = vadd.f32 %v1747_v62, %v5323_v3 }
0x1047   :  { %v1750_v14 = vmul.f32 0.35355338, %v4065_v9  ;;  %v1734_v16 = vpop.f32.mrb[23].mxu0  ;;  %v1774_v17 = vsel %vm6072_vm3, %v1756_v4, -inf  ;;  %vm6084_vm3 = vmmov %vm6071_vm0 }
0x1048   :  { %v1749_v19 = vmul.f32 0.35355338, %v1734_v16  ;;  %v1771_v20 = vsel %vm6073_vm4, %v1755_v11, -inf  ;;  %vm6085_vm4 = vmmov %vm6071_vm0 }
0x1049   :  { %1775 = vmax.xlane.f32.xlu1 %v1774_v17  ;;  %1772 = vmax.xlane.f32.xlu0 %v1771_v20  ;;  %v1758_v22 = vadd.f32 %v1750_v14, %v5328_v10 }
0x104a   :  { %v1757_v23 = vadd.f32 %v1749_v19, %v5331_v15 }
0x104b   :  { %v1780_v34 = vsel %vm6074_vm9, %v1758_v22, -inf  ;;  %vm6086_vm9 = vmmov %vm6071_vm0 }
0x104c   :  { %v1777_v28 = vsel %vm6075_vm10, %v1757_v23, -inf  ;;  %vm6087_vm10 = vmmov %vm6071_vm0 }
0x104d   :  { %1781 = vmax.xlane.f32.xlu1 %v1780_v34  ;;  %1778 = vmax.xlane.f32.xlu0 %v1777_v28 }
0x1063   :  { %4607 = vrot.lane.b32.xlu0 %v5516_v21, %s4950_s20 }
0x10cd   :  { %v1764_v29 = vpop.xlane.xlu0 %1763 }
0x10ce   :  { %v1784_v31 = vsub.f32 %v1752_v45, %v1764_v29  ;;  %v1761_v37 = vpop.xlane.xlu1 %1760 }
0x10cf   :  { %v1783_v18 = vsub.f32 %v1751_v47, %v1761_v37 }
0x10d0   :  { %v1793_v27 = vmul.f32 1.442695, %v1784_v31 }
0x10d1   :  { %v1791_v26 = vmul.f32 1.442695, %v1783_v18 }
0x10d2   :  { %4718 = vpow2.f32 %v1793_v27  ;;  %v1770_v33 = vpop.xlane.xlu1 %1769  ;;  %v1767_v35 = vpop.xlane.xlu0 %1766 }
0x10d3   :  { %4720 = vpow2.f32 %v1791_v26  ;;  %v1786_v36 = vsub.f32 %v1754_v54, %v1770_v33  ;;  %v1785_v38 = vsub.f32 %v1753_v57, %v1767_v35 }
0x10d5   :  { %v1797_v40 = vmul.f32 1.442695, %v1786_v36  ;;  %v1795_v41 = vmul.f32 1.442695, %v1785_v38 }
0x10d6   :  { %v1776_v43 = vpop.xlane.xlu1 %1775  ;;  %v1773_v30 = vpop.xlane.xlu0 %1772 }
0x10d7   :  { %4722 = vpow2.f32 %v1797_v40  ;;  %v1788_v5 = vsub.f32 %v1756_v4, %v1776_v43  ;;  %v1787_v63 = vsub.f32 %v1755_v11, %v1773_v30 }
0x10d8   :  { %4724 = vpow2.f32 %v1795_v41 }
0x10d9   :  { %v1801_v21 = vmul.f32 1.442695, %v1788_v5  ;;  %v1799_v7 = vmul.f32 1.442695, %v1787_v63 }
0x10da   :  { %v1782_v2 = vpop.xlane.xlu1 %1781  ;;  %v1779_v61 = vpop.xlane.xlu0 %1778 }
0x10db   :  { %4726 = vpow2.f32 %v1801_v21  ;;  %v1790_v44 = vsub.f32 %v1758_v22, %v1782_v2  ;;  %v1789_v45 = vsub.f32 %v1757_v23, %v1779_v61 }
0x10dc   :  { %v5573_v46 = vpop.eup %4718  ;;  %4728 = vpow2.f32 %v1799_v7 }
0x10dd   :  { %v4721_v47 = vpop.eup %4720  ;;  %v1805_v49 = vmul.f32 1.442695, %v1790_v44  ;;  %v1803_v50 = vmul.f32 1.442695, %v1789_v45  ;;  %v1810_v48 = vsel %vm6076_vm11, %v5573_v46, 0.0  ;;  %vm6088_vm11 = vmmov %vm6071_vm0 }
0x10de   :  { %1811 = vadd.xlane.f32.xlu1 %v1810_v48  ;;  %v4608_v52 = vpop.permute.xlu0 %4607  ;;  %v1807_v53 = vsel %vm6077_vm14, %v4721_v47, 0.0  ;;  %vm6089_vm14 = vmmov %vm6071_vm0 }
0x10df   :  { %4730 = vpow2.f32 %v1805_v49  ;;  %v4610_v54 = vunpack.i.h.bf16 %v4608_v52  ;;  %v4609_v56 = vunpack.i.l.bf16 %v4608_v52  ;;  %1808 = vadd.xlane.f32.xlu0 %v1807_v53  ;;  %v3564_v53 = vld [vmem:[%s5976_s9 + $0x20] sm:$0xff] }
0x10e0   :  { %4732 = vpow2.f32 %v1803_v50 }
0x10e1   :  { %v5578_v57 = vpop.eup %4722  ;;  %v4395_v58 = vpack.c.bf16 %v4610_v54, %v4609_v56  ;;  %v3565_v54 = vld [vmem:[%s5976_s9 + $0x28] sm:$0xff] }
0x10e2   :  { %v5580_v59 = vpop.eup %4724  ;;  %v1816_v60 = vsel %vm6078_vm15, %v5578_v57, 0.0  ;;  %vm6090_vm15 = vmmov %vm6071_vm0  ;;  %v4411_v56 = vpack.c.bf16 %v3565_v54, %v3564_v53 }
0x10e3   :  { %1817 = vadd.xlane.f32.xlu1 %v1816_v60  ;;  %v1813_v62 = vsel %vm6079_vm1, %v5580_v59, 0.0  ;;  %4396 = vmatprep.subr.bf16.mxu1 %v4395_v58  ;;  %vm6091_vm1 = vcmask 64512  }
0x10e4   :  { %1814 = vadd.xlane.f32.xlu0 %v1813_v62  ;;  %4398 = vmatpush3.bf16.msra.mxu1 %v4395_v58  ;;  %v3567_v58 = vld [vmem:[%s5976_s9 + $0x38] sm:$0xff] }
0x10e5   :  { %v5586_v0 = vpop.eup %4726 }
0x10e6   :  { %v4729_v4 = vpop.eup %4728  ;;  %v1822_v9 = vsel %vm6080_vm2, %v5586_v0, 0.0  ;;  %vm6092_vm2 = vcmask 261120  }
0x10e7   :  { %1823 = vadd.xlane.f32.xlu1 %v1822_v9  ;;  %v1819_v11 = vsel %vm6081_vm5, %v4729_v4, 0.0  ;;  %vm6093_vm5 = vmmov %vm6091_vm1 }
0x10e8   :  { %1820 = vadd.xlane.f32.xlu0 %v1819_v11 }
0x10e9   :  { %v5591_v14 = vpop.eup %4730 }
0x10ea   :  { %v1828_v16 = vsel %vm6082_vm6, %v5591_v14, 0.0  ;;  %v4733_v17 = vpop.eup %4732  ;;  %vm6094_vm6 = vmmov %vm6092_vm2 }
0x10eb   :  { %1829 = vadd.xlane.f32.xlu1 %v1828_v16  ;;  %v1825_v19 = vsel %vm6083_vm8, %v4733_v17, 0.0  ;;  %vm6095_vm8 = vmmov %vm6092_vm2 }
0x10ef   :  { %1826 = vadd.xlane.f32.xlu1 %v1825_v19 }
0x10fe   :  { %4617 = vrot.lane.b32.xlu0 %v5522_v25, %s4950_s20 }
0x1100   :  { %4612 = vrot.lane.b32.xlu1 %v5520_v24, %s4950_s20 }
0x1102   :  { %4622 = vrot.lane.b32.xlu0 %v5528_v32, %s4950_s20 }
0x116b   :  { %v1812_v20 = vpop.xlane.xlu1 %1811 }
0x116c   :  { %v1809_v22 = vpop.xlane.xlu0 %1808 }
0x116d   :  { %4734 = vrcp.f32 %v1809_v22 }
0x116e   :  { %4736 = vrcp.f32 %v1812_v20 }
0x1170   :  { %v1818_v23 = vpop.xlane.xlu1 %1817 }
0x1171   :  { %v1815_v34 = vpop.xlane.xlu0 %1814 }
0x1172   :  { %4738 = vrcp.f32 %v1815_v34 }
0x1173   :  { %4740 = vrcp.f32 %v1818_v23 }
0x1174   :  { %v1824_v28 = vpop.xlane.xlu1 %1823 }
0x1175   :  { %v1821_v29 = vpop.xlane.xlu0 %1820 }
0x1176   :  { %4742 = vrcp.f32 %v1821_v29 }
0x1177   :  { %v4735_v31 = vpop.eup %4734  ;;  %4744 = vrcp.f32 %v1824_v28 }
0x1178   :  { %v1830_v37 = vpop.xlane.xlu1 %1829  ;;  %v1832_v18 = vmul.f32 %v4735_v31, %v4721_v47  ;;  %v4737_v5 = vpop.eup %4736 }
0x1179   :  { %v4618_v27 = vpop.permute.xlu0 %4617  ;;  %v1834_v21 = vmul.f32 %v4737_v5, %v5573_v46 }
0x117a   :  { %4082 = vmatprep.mubr.msk.f32.mxu1 %vm6071_vm0, %v1832_v18  ;;  %v4620_v33 = vunpack.i.h.bf16 %v4618_v27  ;;  %v4619_v24 = vunpack.i.l.bf16 %v4618_v27  ;;  %vm6096_vm0 = vmmov %vm6092_vm2 }
0x117c   :  { %v1827_v25 = vpop.xlane.xlu1 %1826  ;;  %v4403_v40 = vpack.c.bf16 %v4620_v33, %v4619_v24  ;;  %v4739_v63 = vpop.eup %4738 }
0x117d   :  { %v4623_v32 = vpop.permute.xlu0 %4622  ;;  %4746 = vrcp.f32 %v1827_v25  ;;  %v4741_v7 = vpop.eup %4740  ;;  %v1836_v2 = vmul.f32 %v4739_v63, %v5580_v59  ;;  %v3569_v25 = vld [vmem:[%s5977_s10 + $0x1] ss:$0 sm:$0xff] }
0x117e   :  { %v4625_v41 = vunpack.i.h.bf16 %v4623_v32  ;;  %v4624_v43 = vunpack.i.l.bf16 %v4623_v32  ;;  %4748 = vrcp.f32 %v1830_v37  ;;  %v1838_v44 = vmul.f32 %v4741_v7, %v5578_v57  ;;  %v3566_v57 = vld [vmem:[%s5976_s9 + $0x30] sm:$0xff] }
0x117f   :  { %v4415_v59 = vpack.c.bf16 %v3567_v58, %v3566_v57  ;;  %v3574_v58 = vld [vmem:[%s5978_s11 + $0x1] ss:$0 sm:$0xff] }
0x1180   :  { %v4613_v26 = vpop.permute.xlu1 %4612  ;;  %v4407_v30 = vpack.c.bf16 %v4625_v41, %v4624_v43  ;;  %v4743_v61 = vpop.eup %4742 }
0x1181   :  { %v4615_v35 = vunpack.i.h.bf16 %v4613_v26  ;;  %v4614_v36 = vunpack.i.l.bf16 %v4613_v26  ;;  %v4745_v45 = vpop.eup %4744  ;;  %v1840_v47 = vmul.f32 %v4743_v61, %v4729_v4 }
0x1182   :  { %v1842_v50 = vmul.f32 %v4745_v45, %v5586_v0 }
0x1183   :  { %v4399_v38 = vpack.c.bf16 %v4615_v35, %v4614_v36 }
0x1185   :  { %4400 = vmatprep.subr.bf16.mxu1 %v4399_v38 }
0x1186   :  { %4402 = vmatpush3.bf16.msra.mxu1 %v4399_v38 }
0x1187   :  { %4404 = vmatprep.subr.bf16.mxu1 %v4403_v40  ;;  %v4747_v49 = vpop.eup %4746 }
0x1188   :  { %v4749_v46 = vpop.eup %4748  ;;  %v1844_v48 = vmul.f32 %v4747_v49, %v4733_v17  ;;  %v3579_v49 = vld [vmem:[%s5980_s13 + $0x38] sm:$0xff] }
0x1189   :  { %v1846_v52 = vmul.f32 %v4749_v46, %v5591_v14 }
0x118a   :  { %4406 = vmatpush3.bf16.msra.mxu1 %v4403_v40 }
0x118b   :  { %4408 = vmatprep.subr.bf16.mxu1 %v4407_v30 }
0x118e   :  { %4410 = vmatpush3.bf16.msra.mxu1 %v4407_v30 }
0x118f   :  { %4412 = vmatprep.subr.bf16.mxu1 %v4411_v56 }
0x1191   :  { %4083 = vmatmul.mubr.msk.f32.vlgmr.msra.gmra.mrb[20].mxu1 %vm6084_vm3, %v1834_v21  ;;  %vm6097_vm3 = vmmov %vm6096_vm0 }
0x1192   :  { %4085 = vmatprep.mubr.msk.f32.mxu1 %vm6085_vm4, %v1836_v2  ;;  %4414 = vmatpush3.bf16.msra.mxu1 %v4411_v56  ;;  %vm6098_vm4 = vmmov %vm6096_vm0 }
0x1193   :  { %4416 = vmatprep.subr.bf16.mxu1 %v4415_v59 }
0x1195   :  { %4086 = vmatmul.mubr.msk.f32.gmra.mrb[22].mxu1 %vm6086_vm9, %v1838_v44  ;;  %v3577_v44 = vld [vmem:[%s5980_s13 + $0x28] sm:$0xff]  ;;  %vm6099_vm9 = vmmov %vm6096_vm0 }
0x1196   :  { %4088 = vmatprep.mubr.msk.f32.mxu1 %vm6087_vm10, %v1840_v47  ;;  %4418 = vmatpush3.bf16.msra.mxu1 %v4415_v59  ;;  %v3578_v47 = vld [vmem:[%s5980_s13 + $0x30] sm:$0xff]  ;;  %vm6100_vm10 = vmmov %vm6096_vm0 }
0x1199   :  { %4089 = vmatmul.mubr.msk.f32.gmra.mrb[24].mxu1 %vm6088_vm11, %v1842_v50  ;;  %v4423_v50 = vpack.c.bf16 %v3579_v49, %v3578_v47 }
0x119a   :  { %4091 = vmatprep.mubr.msk.f32.mxu1 %vm6089_vm14, %v1844_v48 }
0x119d   :  { %4092 = vmatmul.mubr.msk.f32.gmra.mrb[26].mxu1 %vm6090_vm15, %v1846_v52 }
0x1264   :  { %v4084_v60 = vpop.f32.mrb[20].mxu1 }
0x1265   :  { %2001 = vrot.lane.b32.xlu1 %v4084_v60, %s4944_s3  ;;  %v1961_v62 = vpop.f32.mrb[21].mxu1 }
0x1268   :  { %v4087_v0 = vpop.f32.mrb[22].mxu1 }
0x1269   :  { %2009 = vrot.lane.b32.xlu0 %v4087_v0, %s4945_s27  ;;  %v1971_v4 = vpop.f32.mrb[23].mxu1  ;;  %v3575_v0 = vld [vmem:[%s5979_s12 + $0x1] ss:$0 sm:$0xff] }
0x126c   :  { %v4090_v9 = vpop.f32.mrb[24].mxu1 }
0x126d   :  { %2005 = vrot.lane.b32.xlu0 %v1971_v4, %s4936_s26  ;;  %2016 = vrot.lane.b32.xlu1 %v4090_v9, %s4944_s3  ;;  %v1981_v11 = vpop.f32.mrb[25].mxu1 }
0x1270   :  { %v4093_v14 = vpop.f32.mrb[26].mxu1 }
0x1271   :  { %2024 = vrot.lane.b32.xlu0 %v4093_v14, %s4945_s27  ;;  %v1991_v16 = vpop.f32.mrb[27].mxu1 }
0x1272   :  { %2020 = vrot.lane.b32.xlu1 %v1991_v16, %s4936_s26  ;;  %v3584_v16 = vld [vmem:[%s5982_s15 + $0x40] sm:$0xff] }
0x12d7   :  { %v2002_v17 = vpop.permute.xlu1 %2001 }
0x12d8   :  { %v2012_v20 = vsel %vm6091_vm1, %v1961_v62, %v2002_v17  ;;  %v3585_v17 = vld [vmem:[%s5982_s15 + $0x48] sm:$0xff]  ;;  %vm6101_vm1 = vmmov %vm6090_vm15 }
0x12db   :  { %v2010_v19 = vpop.permute.xlu0 %2009 }
0x12df   :  { %v2006_v22 = vpop.permute.xlu0 %2005  ;;  %v2017_v23 = vpop.permute.xlu1 %2016 }
0x12e0   :  { %v2013_v34 = vsel %vm297_vm12, %v2012_v20, %v2006_v22  ;;  %v2027_v29 = vsel %vm6093_vm5, %v1981_v11, %v2017_v23  ;;  %v3586_v20 = vld [vmem:[%s5982_s15 + $0x50] sm:$0xff]  ;;  %v3587_v22 = vld [vmem:[%s5982_s15 + $0x58] sm:$0xff]  ;;  %vm6103_vm5 = vmmov %vm6096_vm0 }
0x12e1   :  { %v2014_v28 = vsel %vm299_vm13, %v2013_v34, %v2010_v19  ;;  %v4427_v19 = vpack.c.bf16 %v3585_v17, %v3584_v16  ;;  %v4431_v23 = vpack.c.bf16 %v3587_v22, %v3586_v20  ;;  %v3588_v34 = vld [vmem:[%s5982_s15 + $0x60] sm:$0xff] }
0x12e2   :  { %4102 = vmatprep.mubr.msk.f32.mxu1 %vm6092_vm2, %v2014_v28  ;;  %v3589_v28 = vld [vmem:[%s5982_s15 + $0x68] sm:$0xff]  ;;  %vm6102_vm2 = vmmov %vm6096_vm0 }
0x12e3   :  { %v2025_v37 = vpop.permute.xlu0 %2024  ;;  %4428 = vmatprep.subr.bf16.mxu0 %v4427_v19 }
0x12e4   :  { %v2021_v31 = vpop.permute.xlu1 %2020  ;;  %4430 = vmatpush3.bf16.msra.mxu0 %v4427_v19 }
0x12e5   :  { %v2028_v18 = vsel %vm297_vm12, %v2027_v29, %v2021_v31  ;;  %4432 = vmatprep.subr.bf16.mxu0 %v4431_v23  ;;  %v4435_v29 = vpack.c.bf16 %v3589_v28, %v3588_v34  ;;  %v3590_v31 = vld [vmem:[%s5982_s15 + $0x70] sm:$0xff] }
0x12e6   :  { %v2029_v27 = vsel %vm299_vm13, %v2028_v18, %v2025_v37  ;;  %v3591_v37 = vld [vmem:[%s5982_s15 + $0x78] sm:$0xff] }
0x12e7   :  { %4103 = vmatmul.mubr.msk.f32.vlgmr.msra.gmra.mrb[28].mxu1 %vm6094_vm6, %v2029_v27  ;;  %v4439_v18 = vpack.c.bf16 %v3591_v37, %v3590_v31  ;;  %v3581_v27 = vld [vmem:[%s5981_s14 + $0x1] ss:$0 sm:$0xff]  ;;  %vm6104_vm6 = vmmov %vm6096_vm0 }
0x12e8   :  { %4434 = vmatpush3.bf16.msra.mxu0 %v4431_v23 }
0x12e9   :  { %4436 = vmatprep.subr.bf16.mxu0 %v4435_v29 }
0x12ec   :  { %4438 = vmatpush3.bf16.msra.mxu0 %v4435_v29 }
0x12ed   :  { %4440 = vmatprep.subr.bf16.mxu0 %v4439_v18 }
0x12f0   :  { %4442 = vmatpush3.bf16.msra.mxu0 %v4439_v18 }
0x13ba   :  { %v4104_v26 = vpop.f32.mrb[28].mxu1 }
0x13bb   :  { %v2121_v33 = vadd.f32 %v4104_v26, %v3569_v25  ;;  %v2115_v24 = vpop.f32.mrb[29].mxu1 }
0x13bc   :  { %v2116_v35 = vadd.f32 %v3569_v25, %v2115_v24 }
0x13bd   :  { %v2125_v36 = vadd.f32 %v2121_v33, %v5500_v8 }
0x13be   :  { %v2124_v32 = vadd.f32 %v2116_v35, %v5498_v6  ;;  %v3576_v6 = vld [vmem:[%s5980_s13 + $0x20] sm:$0xff] }
0x13bf   :  { %v2133_v38 = vsel %vm6095_vm8, %v2125_v36, 0.0  ;;  %v4419_v45 = vpack.c.bf16 %v3577_v44, %v3576_v6  ;;  %vm6105_vm8 = vmmov %vm6096_vm0 }
0x13c0   :  { %2134 = vadd.xlane.f32.xlu0 %v2133_v38  ;;  %v2130_v40 = vsel %vm6096_vm0, %v2124_v32, 0.0 }
0x13c1   :  { %2131 = vadd.xlane.f32.xlu1 %v2130_v40  ;;  %4420 = vmatprep.subr.bf16.mxu1 %v4419_v45 }
0x13c2   :  { %4422 = vmatpush3.bf16.msra.mxu1 %v4419_v45 }
0x13c3   :  { %4424 = vmatprep.subr.bf16.mxu1 %v4423_v50 }
0x13c6   :  { %4426 = vmatpush3.bf16.msra.mxu1 %v4423_v50 }
0x144d   :  { %v2135_v41 = vpop.xlane.xlu0 %2134 }
0x144e   :  { %v2137_v43 = vmul.f32 0.03125, %v2135_v41  ;;  %v2132_v30 = vpop.xlane.xlu1 %2131 }
0x144f   :  { %v2136_v5 = vmul.f32 0.03125, %v2132_v30 }
0x1450   :  { %v2139_v63 = vsub.f32 %v2125_v36, %v2137_v43 }
0x1451   :  { %v2138_v21 = vsub.f32 %v2124_v32, %v2136_v5 }
0x1452   :  { %v2141_v7 = vmul.f32 %v2139_v63, %v2139_v63 }
0x1453   :  { %v2140_v2 = vmul.f32 %v2138_v21, %v2138_v21 }
0x1454   :  { %v2145_v61 = vsel %vm6097_vm3, %v2141_v7, 0.0  ;;  %vm6106_vm3 = vmmov %vm6096_vm0 }
0x1455   :  { %2146 = vadd.xlane.f32.xlu1 %v2145_v61  ;;  %v2142_v8 = vsel %vm6098_vm4, %v2140_v2, 0.0  ;;  %vm6107_vm4 = vcmask 64512  }
0x1456   :  { %2143 = vadd.xlane.f32.xlu0 %v2142_v8 }
0x14e2   :  { %v2147_v46 = vpop.xlane.xlu1 %2146 }
0x14e3   :  { %v2149_v48 = vmul.f32 0.03125, %v2147_v46  ;;  %v2144_v52 = vpop.xlane.xlu0 %2143 }
0x14e4   :  { %v2148_v53 = vmul.f32 0.03125, %v2144_v52 }
0x14e5   :  { %v2151_v54 = vadd.f32 1e-12, %v2149_v48 }
0x14e6   :  { %v2150_v56 = vadd.f32 1e-12, %v2148_v53 }
0x14e7   :  { %4750 = vrsqrt.f32 %v2151_v54 }
0x14e8   :  { %4752 = vrsqrt.f32 %v2150_v56 }
0x14f1   :  { %v4751_v57 = vpop.eup %4750 }
0x14f2   :  { %v4753_v59 = vpop.eup %4752  ;;  %v2155_v60 = vmul.f32 %v4751_v57, %v2139_v63 }
0x14f3   :  { %v2154_v62 = vmul.f32 %v4753_v59, %v2138_v21 }
0x14f4   :  { %v2163_v4 = vmul.f32 %v3574_v58, %v2155_v60 }
0x14f5   :  { %v2162_v9 = vmul.f32 %v3574_v58, %v2154_v62 }
0x14f6   :  { %v5670_v14 = vadd.f32 %v3575_v0, %v2163_v4 }
0x14f7   :  { %v5668_v11 = vadd.f32 %v3575_v0, %v2162_v9 }
0x14f9   :  { %4113 = vmatprep.mubr.msk.f32.mxu1 %vm6099_vm9, %v5668_v11  ;;  %vm6108_vm9 = vmmov %vm6107_vm4 }
0x14fa   :  { %4114 = vmatmul.mubr.msk.f32.vlgmr.msra.gmra.mrb[30].mxu1 %vm6100_vm10, %v5670_v14  ;;  %vm6109_vm10 = vmmov %vm6107_vm4 }
0x15cd   :  { %v4115_v25 = vpop.f32.mrb[30].mxu1 }
0x15ce   :  { %v2263_v26 = vadd.f32 %v4115_v25, %v3581_v27  ;;  %v2257_v33 = vpop.f32.mrb[31].mxu1 }
0x15cf   :  { %v2258_v24 = vadd.f32 %v3581_v27, %v2257_v33 }
0x15d0   :  { %v2269_v35 = vmul.f32 0.70710677, %v2263_v26  ;;  %v2267_v27 = vmul.f32 0.5, %v2263_v26 }
0x15d1   :  { %v2268_v36 = vmul.f32 0.70710677, %v2258_v24  ;;  %v2266_v37 = vmul.f32 0.5, %v2258_v24 }
0x15d2   :  { %v2275_v32 = vand.u32 2147483647, %v2269_v35  ;;  %vm2271_vm11 = vcmp.ge.f32.partialorder %v2269_v35, 0.0  ;;  %v3593_v35 = vld [vmem:[%s5983_s16 + $0x1] ss:$0 sm:$0xff] }
0x15d3   :  { %v2274_v38 = vand.u32 2147483647, %v2268_v36  ;;  %vm2270_vm14 = vcmp.ge.f32.partialorder %v2268_v36, 0.0  ;;  %v2273_v22 = vsel %vm2271_vm11, 1.0, %v4951_v12  ;;  %vm6110_vm11 = vmmov %vm6107_vm4 }
0x15d4   :  { %v2277_v40 = vmul.f32 0.3275911, %v2275_v32  ;;  %v2303_v5 = vsub.f32 0.0, %v2275_v32  ;;  %v2272_v28 = vsel %vm2270_vm14, 1.0, %v4951_v12  ;;  %vm6111_vm14 = vmmov %vm6107_vm4 }
0x15d5   :  { %v2276_v41 = vmul.f32 0.3275911, %v2274_v38  ;;  %v2302_v63 = vsub.f32 0.0, %v2274_v38 }
0x15d6   :  { %v2279_v43 = vadd.f32 1.0, %v2277_v40  ;;  %v2305_v7 = vmul.f32 %v2303_v5, %v2275_v32 }
0x15d7   :  { %v2278_v30 = vadd.f32 1.0, %v2276_v41  ;;  %v2304_v8 = vmul.f32 %v2302_v63, %v2274_v38 }
0x15d8   :  { %4754 = vrcp.f32 %v2279_v43  ;;  %v2308_v45 = vmul.f32 1.442695, %v2305_v7 }
0x15d9   :  { %4756 = vrcp.f32 %v2278_v30  ;;  %v2306_v50 = vmul.f32 1.442695, %v2304_v8 }
0x15da   :  { %4758 = vpow2.f32 %v2308_v45 }
0x15db   :  { %4760 = vpow2.f32 %v2306_v50 }
0x15e2   :  { %v4755_v21 = vpop.eup %4754 }
0x15e3   :  { %v4757_v2 = vpop.eup %4756  ;;  %v2285_v61 = vmul.f32 1.0614054, %v4755_v21 }
0x15e4   :  { %v2284_v6 = vmul.f32 1.0614054, %v4757_v2  ;;  %v4759_v4 = vpop.eup %4758 }
0x15e5   :  { %v2287_v44 = vadd.f32 -1.4531521, %v2285_v61  ;;  %v4761_v16 = vpop.eup %4760 }
0x15e6   :  { %v2286_v47 = vadd.f32 -1.4531521, %v2284_v6 }
0x15e7   :  { %v2289_v49 = vmul.f32 %v4755_v21, %v2287_v44  ;;  %v3600_v44 = vld [vmem:[%s5974_s7 + $0x48] sm:$0xff] }
0x15e8   :  { %v2288_v46 = vmul.f32 %v4757_v2, %v2286_v47  ;;  %v3601_v47 = vld [vmem:[%s5974_s7 + $0x50] sm:$0xff] }
0x15e9   :  { %v2291_v48 = vadd.f32 1.4214138, %v2289_v49  ;;  %v3602_v49 = vld [vmem:[%s5974_s7 + $0x58] sm:$0xff] }
0x15ea   :  { %v2290_v52 = vadd.f32 1.4214138, %v2288_v46  ;;  %v4447_v50 = vpack.c.bf16 %v3602_v49, %v3601_v47 }
0x15eb   :  { %v2293_v53 = vmul.f32 %v4755_v21, %v2291_v48 }
0x15ec   :  { %v2292_v54 = vmul.f32 %v4757_v2, %v2290_v52 }
0x15ed   :  { %v2295_v56 = vadd.f32 -0.28449672, %v2293_v53 }
0x15ee   :  { %v2294_v57 = vadd.f32 -0.28449672, %v2292_v54 }
0x15ef   :  { %v2297_v58 = vmul.f32 %v4755_v21, %v2295_v56 }
0x15f0   :  { %v2296_v59 = vmul.f32 %v4757_v2, %v2294_v57 }
0x15f1   :  { %v2299_v60 = vadd.f32 0.2548296, %v2297_v58  ;;  %v3597_v58 = vld [vmem:[%s5984_s17 + $0x1] ss:$0 sm:$0xff] }
0x15f2   :  { %v2298_v62 = vadd.f32 0.2548296, %v2296_v59 }
0x15f3   :  { %v2301_v0 = vmul.f32 %v4755_v21, %v2299_v60 }
0x15f4   :  { %v2300_v9 = vmul.f32 %v4757_v2, %v2298_v62 }
0x15f5   :  { %v2311_v17 = vmul.f32 %v4759_v4, %v2301_v0  ;;  %v3598_v0 = vld [vmem:[#allocation8 + $0x1] ss:$0 sm:$0xff] }
0x15f6   :  { %v2310_v19 = vmul.f32 %v4761_v16, %v2300_v9 }
0x15f7   :  { %v2313_v20 = vsub.f32 1.0, %v2311_v17 }
0x15f8   :  { %v2312_v23 = vsub.f32 1.0, %v2310_v19  ;;  %v3604_v19 = vld [vmem:[%s5975_s8 + $0x2] ss:$0 sm:$0xff] }
0x15f9   :  { %v2315_v34 = vmul.f32 %v2313_v20, %v2273_v22 }
0x15fa   :  { %v2314_v29 = vmul.f32 %v2312_v23, %v2272_v28 }
0x15fb   :  { %v2317_v31 = vadd.f32 1.0, %v2315_v34 }
0x15fc   :  { %v2316_v18 = vadd.f32 1.0, %v2314_v29 }
0x15fd   :  { %v2319_v33 = vmul.f32 %v2317_v31, %v2267_v27 }
0x15fe   :  { %v2318_v25 = vmul.f32 %v2316_v18, %v2266_v37 }
0x1600   :  { %4132 = vmatprep.mubr.msk.f32.mxu0 %vm6090_vm15, %v2318_v25  ;;  %vm6112_vm15 = vmmov %vm6107_vm4 }
0x1601   :  { %4133 = vmatmul.mubr.msk.f32.vlgmr.msra.gmra.mrb[24].mxu0 %vm6101_vm1, %v2319_v33  ;;  %vm6113_vm1 = vmmov %vm6107_vm4 }
0x16d4   :  { %v4134_v36 = vpop.f32.mrb[24].mxu0 }
0x16d5   :  { %v2415_v32 = vadd.f32 %v4134_v36, %v3593_v35  ;;  %v2409_v38 = vpop.f32.mrb[25].mxu0 }
0x16d6   :  { %v2410_v40 = vadd.f32 %v3593_v35, %v2409_v38 }
0x16d7   :  { %v2419_v41 = vadd.f32 %v2415_v32, %v5670_v14 }
0x16d8   :  { %v2418_v24 = vadd.f32 %v2410_v40, %v5668_v11  ;;  %v3599_v11 = vld [vmem:[%s5974_s7 + $0x40] sm:$0xff] }
0x16d9   :  { %v2427_v26 = vsel %vm6102_vm2, %v2419_v41, 0.0  ;;  %v4443_v45 = vpack.c.bf16 %v3600_v44, %v3599_v11  ;;  %vm6114_vm2 = vmmov %vm6113_vm1 }
0x16da   :  { %2428 = vadd.xlane.f32.xlu1 %v2427_v26  ;;  %v2424_v43 = vsel %vm6103_vm5, %v2418_v24, 0.0 }
0x16db   :  { %2425 = vadd.xlane.f32.xlu0 %v2424_v43  ;;  %4444 = vmatprep.subr.bf16.mxu1 %v4443_v45 }
0x16dc   :  { %4446 = vmatpush3.bf16.msra.mxu1 %v4443_v45 }
0x16dd   :  { %4448 = vmatprep.subr.bf16.mxu1 %v4447_v50 }
0x16e0   :  { %4450 = vmatpush3.bf16.msra.mxu1 %v4447_v50 }
0x1767   :  { %v2429_v30 = vpop.xlane.xlu1 %2428 }
0x1768   :  { %v2431_v5 = vmul.f32 0.03125, %v2429_v30  ;;  %v2426_v63 = vpop.xlane.xlu0 %2425 }
0x1769   :  { %v2430_v21 = vmul.f32 0.03125, %v2426_v63 }
0x176a   :  { %v2433_v7 = vsub.f32 %v2419_v41, %v2431_v5 }
0x176b   :  { %v2432_v2 = vsub.f32 %v2418_v24, %v2430_v21 }
0x176c   :  { %v2435_v61 = vmul.f32 %v2433_v7, %v2433_v7 }
0x176d   :  { %v2434_v8 = vmul.f32 %v2432_v2, %v2432_v2 }
0x176e   :  { %v2439_v6 = vsel %vm6104_vm6, %v2435_v61, 0.0 }
0x176f   :  { %2440 = vadd.xlane.f32.xlu1 %v2439_v6  ;;  %v2436_v14 = vsel %vm6105_vm8, %v2434_v8, 0.0 }
0x1770   :  { %2437 = vadd.xlane.f32.xlu0 %v2436_v14 }
0x17fc   :  { %v2441_v46 = vpop.xlane.xlu1 %2440 }
0x17fd   :  { %v2443_v48 = vmul.f32 0.03125, %v2441_v46  ;;  %v2438_v52 = vpop.xlane.xlu0 %2437 }
0x17fe   :  { %v2442_v53 = vmul.f32 0.03125, %v2438_v52 }
0x17ff   :  { %v2445_v54 = vadd.f32 1e-12, %v2443_v48 }
0x1800   :  { %v2444_v56 = vadd.f32 1e-12, %v2442_v53 }
0x1801   :  { %4762 = vrsqrt.f32 %v2445_v54 }
0x1802   :  { %4764 = vrsqrt.f32 %v2444_v56 }
0x180b   :  { %v4763_v57 = vpop.eup %4762 }
0x180c   :  { %v4765_v59 = vpop.eup %4764  ;;  %v2449_v60 = vmul.f32 %v4763_v57, %v2433_v7 }
0x180d   :  { %v2448_v62 = vmul.f32 %v4765_v59, %v2432_v2 }
0x180e   :  { %v2457_v4 = vmul.f32 %v3597_v58, %v2449_v60 }
0x180f   :  { %v2456_v9 = vmul.f32 %v3597_v58, %v2448_v62 }
0x1810   :  { %v5733_v17 = vadd.f32 %v3598_v0, %v2457_v4 }
0x1811   :  { %v5731_v16 = vadd.f32 %v3598_v0, %v2456_v9 }
0x1813   :  { %4143 = vmatprep.mubr.msk.f32.mxu1 %vm6096_vm0, %v5731_v16 }
0x1814   :  { %4144 = vmatmul.mubr.msk.f32.vlgmr.msra.gmra.mrb[32].mxu1 %vm6106_vm3, %v5733_v17 }
0x18e7   :  { %v4145_v20 = vpop.f32.mrb[32].mxu1 }
0x18e8   :  { %v2551_v22 = vpop.f32.mrb[33].mxu1  ;;  %v2557_v34 = vadd.f32 %v4145_v20, %v3604_v19 }
0x18e9   :  { %v2552_v23 = vadd.f32 %v3604_v19, %v2551_v22 }
0x18eb   :  { %2563 = vrot.lane.b32.xlu1 %v2552_v23, %s4940_s23  ;;  %2561 = vrot.lane.b32.xlu0 %v2552_v23, %s4941_s4 }
0x18ec   :  { %4162 = vmatprep.mubr.msk.f32.mxu0 %vm6107_vm4, %v2552_v23 }
0x18ef   :  { %2565 = vrot.lane.b32.xlu1 %v2552_v23, %s4942_s21  ;;  %2568 = vrot.lane.b32.xlu0 %v2557_v34, %s4941_s4 }
0x18f3   :  { %2570 = vrot.lane.b32.xlu1 %v2557_v34, %s4940_s23  ;;  %2572 = vrot.lane.b32.xlu0 %v2557_v34, %s4942_s21 }
0x195d   :  { %v2564_v28 = vpop.permute.xlu1 %2563  ;;  %v2562_v29 = vpop.permute.xlu0 %2561 }
0x195e   :  { %v5749_v31 = vpack.i.bf16 %v2562_v29, %v2552_v23 }
0x1960   :  { %4627 = vrot.lane.b32.xlu1 %v5749_v31, %s4943_s24 }
0x1961   :  { %v2566_v37 = vpop.permute.xlu1 %2565  ;;  %v2569_v18 = vpop.permute.xlu0 %2568 }
0x1962   :  { %v5753_v27 = vpack.i.bf16 %v2566_v37, %v2564_v28  ;;  %v5755_v25 = vpack.i.bf16 %v2569_v18, %v2557_v34 }
0x1964   :  { %4632 = vrot.lane.b32.xlu0 %v5753_v27, %s4943_s24  ;;  %4637 = vrot.lane.b32.xlu1 %v5755_v25, %s4943_s24 }
0x1965   :  { %v2571_v33 = vpop.permute.xlu1 %2570  ;;  %v2573_v35 = vpop.permute.xlu0 %2572 }
0x1966   :  { %v5761_v36 = vpack.i.bf16 %v2573_v35, %v2571_v33 }
0x1968   :  { %4642 = vrot.lane.b32.xlu0 %v5761_v36, %s4943_s24 }
0x19d2   :  { %v4628_v32 = vpop.permute.xlu1 %4627 }
0x19d3   :  { %v4630_v38 = vunpack.i.h.bf16 %v4628_v32  ;;  %v4629_v40 = vunpack.i.l.bf16 %v4628_v32 }
0x19d5   :  { %v4451_v41 = vpack.c.bf16 %v4630_v38, %v4629_v40 }
0x19d6   :  { %v4633_v24 = vpop.permute.xlu0 %4632  ;;  %v4638_v30 = vpop.permute.xlu1 %4637 }
0x19d7   :  { %v4635_v26 = vunpack.i.h.bf16 %v4633_v24  ;;  %v4634_v43 = vunpack.i.l.bf16 %v4633_v24  ;;  %4453 = vmatprep.subr.msk.bf16.mxu0 %vm6003_vm7, %v4451_v41  ;;  %v4640_v63 = vunpack.i.h.bf16 %v4638_v30  ;;  %v4639_v21 = vunpack.i.l.bf16 %v4638_v30 }
0x19d8   :  { %4456 = vmatpush3.bf16.xpose.msk.msra.mxu0 %vm6003_vm7, %v4451_v41 }
0x19d9   :  { %v4457_v5 = vpack.c.bf16 %v4635_v26, %v4634_v43  ;;  %v4463_v7 = vpack.c.bf16 %v4640_v63, %v4639_v21 }
0x19da   :  { %v4643_v2 = vpop.permute.xlu0 %4642 }
0x19db   :  { %4459 = vmatprep.subr.msk.bf16.mxu0 %vm6003_vm7, %v4457_v5  ;;  %v4645_v61 = vunpack.i.h.bf16 %v4643_v2  ;;  %v4644_v8 = vunpack.i.l.bf16 %v4643_v2 }
0x19dd   :  { %v4469_v6 = vpack.c.bf16 %v4645_v61, %v4644_v8 }
0x19e0   :  { %4462 = vmatpush3.bf16.xpose.msk.msra.mxu0 %vm6003_vm7, %v4457_v5 }
0x19e1   :  { %4465 = vmatprep.subr.msk.bf16.mxu0 %vm6003_vm7, %v4463_v7 }
0x19e8   :  { %4468 = vmatpush3.bf16.xpose.msk.msra.mxu0 %vm6003_vm7, %v4463_v7 }
0x19e9   :  { %4471 = vmatprep.subr.msk.bf16.mxu0 %vm6003_vm7, %v4469_v6 }
0x19f0   :  { %4474 = vmatpush3.bf16.xpose.msk.msra.mxu0 %vm6003_vm7, %v4469_v6  ;;  %vm6115_vm7 = vcmask 523264  }
0x19f1   :  { %vm6116_vm5 = vmmov %vm6115_vm7 }
0x19f2   :  { %vm6117_vm6 = vmmov %vm6116_vm5 }
0x19f3   :  { %vm6118_vm8 = vmmov %vm6116_vm5 }
0x19f4   :  { %vm6119_vm0 = vmmov %vm6116_vm5 }
0x19f5   :  { %vm6120_vm3 = vmmov %vm6119_vm0 }
0x19f6   :  { %vm6121_vm4 = vmmov %vm6119_vm0 }
0x19f7   :  { %4163 = vmatmul.mubr.msk.f32.vlgmr.msra.gmra.mrb[26].mxu0 %vm6108_vm9, %v2562_v29  ;;  %vm6122_vm9 = vmmov %vm6119_vm0 }
0x19f8   :  { %4165 = vmatprep.mubr.msk.f32.mxu0 %vm6109_vm10, %v2564_v28  ;;  %vm6123_vm10 = vmmov %vm6119_vm0 }
0x19fb   :  { %4166 = vmatmul.mubr.msk.f32.gmra.mrb[28].mxu0 %vm6110_vm11, %v2566_v37  ;;  %vm6124_vm11 = vmmov %vm6119_vm0 }
0x19fc   :  { %4168 = vmatprep.mubr.msk.f32.mxu0 %vm6111_vm14, %v2557_v34  ;;  %vm6125_vm14 = vmmov %vm6119_vm0 }
0x19ff   :  { %4169 = vmatmul.mubr.msk.f32.gmra.mrb[30].mxu0 %vm6112_vm15, %v2569_v18  ;;  %vm6126_vm15 = vmmov %vm6119_vm0 }
0x1a00   :  { %4171 = vmatprep.mubr.msk.f32.mxu0 %vm6113_vm1, %v2571_v33  ;;  %vm6127_vm1 = vmmov %vm6119_vm0 }
0x1a03   :  { %4172 = vmatmul.mubr.msk.f32.gmra.mrb[32].mxu0 %vm6114_vm2, %v2573_v35  ;;  %vm6128_vm2 = vmmov %vm6119_vm0 }
0x1aca   :  { %v4164_v14 = vpop.f32.mrb[26].mxu0 }
0x1acb   :  { %v2728_v11 = vmul.f32 0.35355338, %v4164_v14  ;;  %v2688_v44 = vpop.f32.mrb[27].mxu0 }
0x1acc   :  { %v2727_v45 = vmul.f32 0.35355338, %v2688_v44 }
0x1acd   :  { %v2736_v13 = vadd.f32 %v2728_v11, %v5305_v39 }
0x1ace   :  { %v2735_v47 = vadd.f32 %v2727_v45, %v5307_v42  ;;  %v4167_v49 = vpop.f32.mrb[28].mxu0 }
0x1acf   :  { %v2730_v50 = vmul.f32 0.35355338, %v4167_v49  ;;  %v2698_v46 = vpop.f32.mrb[29].mxu0  ;;  %v2746_v48 = vsel %vm6115_vm7, %v2736_v13, -inf  ;;  %vm6129_vm7 = vmmov %vm6119_vm0 }
0x1ad0   :  { %v2729_v52 = vmul.f32 0.35355338, %v2698_v46  ;;  %2747 = vmax.xlane.f32.xlu0 %v2746_v48  ;;  %v2743_v53 = vsel %vm6116_vm5, %v2735_v47, -inf  ;;  %vm6130_vm5 = vmmov %vm6119_vm0 }
0x1ad1   :  { %v2738_v54 = vadd.f32 %v2730_v50, %v5312_v51  ;;  %2744 = vmax.xlane.f32.xlu1 %v2743_v53 }
0x1ad2   :  { %v2737_v56 = vadd.f32 %v2729_v52, %v5316_v55  ;;  %v4170_v57 = vpop.f32.mrb[30].mxu0 }
0x1ad3   :  { %v2732_v58 = vmul.f32 0.35355338, %v4170_v57  ;;  %v2708_v59 = vpop.f32.mrb[31].mxu0  ;;  %v2752_v39 = vsel %vm6117_vm6, %v2738_v54, -inf  ;;  %vm6131_vm6 = vmmov %vm6119_vm0 }
0x1ad4   :  { %v2731_v42 = vmul.f32 0.35355338, %v2708_v59  ;;  %v2749_v60 = vsel %vm6118_vm8, %v2737_v56, -inf  ;;  %vm6132_vm8 = vmmov %vm6119_vm0 }
0x1ad5   :  { %v2740_v62 = vadd.f32 %v2732_v58, %v5321_v1  ;;  %2753 = vmax.xlane.f32.xlu1 %v2752_v39  ;;  %2750 = vmax.xlane.f32.xlu0 %v2749_v60 }
0x1ad6   :  { %v2739_v0 = vadd.f32 %v2731_v42, %v5323_v3  ;;  %v4173_v4 = vpop.f32.mrb[32].mxu0 }
0x1ad7   :  { %v2734_v9 = vmul.f32 0.35355338, %v4173_v4  ;;  %v2718_v51 = vpop.f32.mrb[33].mxu0  ;;  %v2758_v19 = vsel %vm6119_vm0, %v2740_v62, -inf }
0x1ad8   :  { %v2733_v55 = vmul.f32 0.35355338, %v2718_v51  ;;  %v2755_v20 = vsel %vm6120_vm3, %v2739_v0, -inf  ;;  %vm6133_vm3 = vmmov %vm6119_vm0 }
0x1ad9   :  { %v2742_v22 = vadd.f32 %v2734_v9, %v5328_v10  ;;  %2759 = vmax.xlane.f32.xlu1 %v2758_v19  ;;  %2756 = vmax.xlane.f32.xlu0 %v2755_v20 }
0x1ada   :  { %v2741_v23 = vadd.f32 %v2733_v55, %v5331_v15 }
0x1adb   :  { %v2764_v1 = vsel %vm6121_vm4, %v2742_v22, -inf  ;;  %vm6134_vm4 = vmmov %vm6119_vm0 }
0x1adc   :  { %v2761_v34 = vsel %vm6122_vm9, %v2741_v23, -inf  ;;  %vm6135_vm9 = vmmov %vm6119_vm0 }
0x1add   :  { %2765 = vmax.xlane.f32.xlu1 %v2764_v1  ;;  %2762 = vmax.xlane.f32.xlu0 %v2761_v34 }
0x1af3   :  { %4647 = vrot.lane.b32.xlu0 %v5749_v31, %s4950_s20 }
0x1b5d   :  { %v2748_v3 = vpop.xlane.xlu0 %2747 }
0x1b5e   :  { %v2768_v28 = vsub.f32 %v2736_v13, %v2748_v3  ;;  %v2745_v29 = vpop.xlane.xlu1 %2744 }
0x1b5f   :  { %v2767_v37 = vsub.f32 %v2735_v47, %v2745_v29 }
0x1b60   :  { %v2777_v18 = vmul.f32 1.442695, %v2768_v28 }
0x1b61   :  { %v2775_v33 = vmul.f32 1.442695, %v2767_v37 }
0x1b62   :  { %4766 = vpow2.f32 %v2777_v18  ;;  %v2754_v10 = vpop.xlane.xlu1 %2753  ;;  %v2751_v35 = vpop.xlane.xlu0 %2750 }
0x1b63   :  { %4768 = vpow2.f32 %v2775_v33  ;;  %v2770_v15 = vsub.f32 %v2738_v54, %v2754_v10  ;;  %v2769_v32 = vsub.f32 %v2737_v56, %v2751_v35 }
0x1b65   :  { %v2781_v38 = vmul.f32 1.442695, %v2770_v15  ;;  %v2779_v40 = vmul.f32 1.442695, %v2769_v32 }
0x1b66   :  { %v2760_v41 = vpop.xlane.xlu1 %2759  ;;  %v2757_v24 = vpop.xlane.xlu0 %2756 }
0x1b67   :  { %4770 = vpow2.f32 %v2781_v38  ;;  %v2772_v26 = vsub.f32 %v2740_v62, %v2760_v41  ;;  %v2771_v43 = vsub.f32 %v2739_v0, %v2757_v24 }
0x1b68   :  { %4772 = vpow2.f32 %v2779_v40 }
0x1b69   :  { %v2785_v31 = vmul.f32 1.442695, %v2772_v26  ;;  %v2783_v30 = vmul.f32 1.442695, %v2771_v43 }
0x1b6a   :  { %v2766_v5 = vpop.xlane.xlu1 %2765  ;;  %v2763_v63 = vpop.xlane.xlu0 %2762 }
0x1b6b   :  { %4774 = vpow2.f32 %v2785_v31  ;;  %v2774_v21 = vsub.f32 %v2742_v22, %v2766_v5  ;;  %v2773_v7 = vsub.f32 %v2741_v23, %v2763_v63  ;;  %v3631_v63 = vld [vmem:[%s5976_s9 + $0x40] sm:$0xff] }
0x1b6c   :  { %v5806_v2 = vpop.eup %4766  ;;  %4776 = vpow2.f32 %v2783_v30 }
0x1b6d   :  { %v4769_v61 = vpop.eup %4768  ;;  %v2789_v8 = vmul.f32 1.442695, %v2774_v21  ;;  %v2787_v6 = vmul.f32 1.442695, %v2773_v7  ;;  %v2794_v14 = vsel %vm6123_vm10, %v5806_v2, 0.0  ;;  %vm6136_vm10 = vmmov %vm6119_vm0  ;;  %v3632_v21 = vld [vmem:[%s5976_s9 + $0x48] sm:$0xff] }
0x1b6e   :  { %2795 = vadd.xlane.f32.xlu1 %v2794_v14  ;;  %v4648_v11 = vpop.permute.xlu0 %4647  ;;  %v2791_v44 = vsel %vm6124_vm11, %v4769_v61, 0.0  ;;  %vm6137_vm11 = vmmov %vm6119_vm0  ;;  %v4491_v7 = vpack.c.bf16 %v3632_v21, %v3631_v63 }
0x1b6f   :  { %4778 = vpow2.f32 %v2789_v8  ;;  %v4650_v45 = vunpack.i.h.bf16 %v4648_v11  ;;  %v4649_v13 = vunpack.i.l.bf16 %v4648_v11  ;;  %2792 = vadd.xlane.f32.xlu0 %v2791_v44 }
0x1b70   :  { %4780 = vpow2.f32 %v2787_v6 }
0x1b71   :  { %v5811_v47 = vpop.eup %4770  ;;  %v4475_v49 = vpack.c.bf16 %v4650_v45, %v4649_v13 }
0x1b72   :  { %v5813_v50 = vpop.eup %4772  ;;  %v2800_v46 = vsel %vm6125_vm14, %v5811_v47, 0.0  ;;  %vm6138_vm14 = vcmask 64512  }
0x1b73   :  { %2801 = vadd.xlane.f32.xlu1 %v2800_v46  ;;  %v2797_v48 = vsel %vm6126_vm15, %v5813_v50, 0.0  ;;  %4476 = vmatprep.subr.bf16.mxu1 %v4475_v49  ;;  %vm6139_vm15 = vcmask 261120  }
0x1b74   :  { %2798 = vadd.xlane.f32.xlu0 %v2797_v48  ;;  %4478 = vmatpush3.bf16.msra.mxu1 %v4475_v49 }
0x1b75   :  { %v5819_v52 = vpop.eup %4774 }
0x1b76   :  { %v4777_v53 = vpop.eup %4776  ;;  %v2806_v54 = vsel %vm6127_vm1, %v5819_v52, 0.0  ;;  %vm6140_vm1 = vmmov %vm6138_vm14 }
0x1b77   :  { %2807 = vadd.xlane.f32.xlu1 %v2806_v54  ;;  %v2803_v56 = vsel %vm6128_vm2, %v4777_v53, 0.0  ;;  %vm6141_vm2 = vmmov %vm6139_vm15 }
0x1b78   :  { %2804 = vadd.xlane.f32.xlu0 %v2803_v56 }
0x1b79   :  { %v5824_v57 = vpop.eup %4778 }
0x1b7a   :  { %v2812_v58 = vsel %vm6129_vm7, %v5824_v57, 0.0  ;;  %v4781_v59 = vpop.eup %4780  ;;  %vm6142_vm7 = vmmov %vm6141_vm2 }
0x1b7b   :  { %2813 = vadd.xlane.f32.xlu1 %v2812_v58  ;;  %v2809_v39 = vsel %vm6130_vm5, %v4781_v59, 0.0  ;;  %vm6145_vm5 = vmmov %vm6141_vm2 }
0x1b7f   :  { %2810 = vadd.xlane.f32.xlu1 %v2809_v39 }
0x1b8e   :  { %4657 = vrot.lane.b32.xlu0 %v5755_v25, %s4950_s20 }
0x1b90   :  { %4652 = vrot.lane.b32.xlu1 %v5753_v27, %s4950_s20 }
0x1b92   :  { %4662 = vrot.lane.b32.xlu0 %v5761_v36, %s4950_s20 }
0x1bfb   :  { %v2796_v42 = vpop.xlane.xlu1 %2795 }
0x1bfc   :  { %v2793_v60 = vpop.xlane.xlu0 %2792 }
0x1bfd   :  { %4782 = vrcp.f32 %v2793_v60  ;;  %v3636_v60 = vld [vmem:[%s5977_s10 + $0x2] ss:$0 sm:$0xff] }
0x1bfe   :  { %4784 = vrcp.f32 %v2796_v42 }
0x1c00   :  { %v2802_v62 = vpop.xlane.xlu1 %2801 }
0x1c01   :  { %v2799_v0 = vpop.xlane.xlu0 %2798 }
0x1c02   :  { %4786 = vrcp.f32 %v2799_v0 }
0x1c03   :  { %4788 = vrcp.f32 %v2802_v62 }
0x1c04   :  { %v2808_v4 = vpop.xlane.xlu1 %2807 }
0x1c05   :  { %v2805_v9 = vpop.xlane.xlu0 %2804 }
0x1c06   :  { %4790 = vrcp.f32 %v2805_v9 }
0x1c07   :  { %v4783_v51 = vpop.eup %4782  ;;  %4792 = vrcp.f32 %v2808_v4 }
0x1c08   :  { %v2814_v19 = vpop.xlane.xlu1 %2813  ;;  %v2816_v55 = vmul.f32 %v4783_v51, %v4769_v61  ;;  %v4785_v33 = vpop.eup %4784  ;;  %v3634_v61 = vld [vmem:[%s5976_s9 + $0x58] sm:$0xff] }
0x1c09   :  { %v4658_v20 = vpop.permute.xlu0 %4657  ;;  %v2818_v35 = vmul.f32 %v4785_v33, %v5806_v2  ;;  %v3633_v2 = vld [vmem:[%s5976_s9 + $0x50] sm:$0xff]  ;;  %v3646_v33 = vld [vmem:[%s5980_s13 + $0x58] sm:$0xff] }
0x1c0a   :  { %4190 = vmatprep.mubr.msk.f32.mxu1 %vm6131_vm6, %v2816_v55  ;;  %v4660_v23 = vunpack.i.h.bf16 %v4658_v20  ;;  %v4659_v27 = vunpack.i.l.bf16 %v4658_v20  ;;  %v4495_v8 = vpack.c.bf16 %v3634_v61, %v3633_v2  ;;  %vm6146_vm6 = vmmov %vm6141_vm2  ;;  %v3651_v61 = vld [vmem:[%s5982_s15 + $0x80] sm:$0xff] }
0x1c0c   :  { %v2811_v25 = vpop.xlane.xlu1 %2810  ;;  %v4483_v28 = vpack.c.bf16 %v4660_v23, %v4659_v27  ;;  %v4787_v10 = vpop.eup %4786 }
0x1c0d   :  { %v4663_v36 = vpop.permute.xlu0 %4662  ;;  %4794 = vrcp.f32 %v2811_v25  ;;  %v4789_v15 = vpop.eup %4788  ;;  %v2820_v32 = vmul.f32 %v4787_v10, %v5813_v50 }
0x1c0e   :  { %v4665_v29 = vunpack.i.h.bf16 %v4663_v36  ;;  %v4664_v37 = vunpack.i.l.bf16 %v4663_v36  ;;  %4796 = vrcp.f32 %v2814_v19  ;;  %v2822_v40 = vmul.f32 %v4789_v15, %v5811_v47 }
0x1c10   :  { %v4653_v22 = vpop.permute.xlu1 %4652  ;;  %v4487_v18 = vpack.c.bf16 %v4665_v29, %v4664_v37  ;;  %v4791_v38 = vpop.eup %4790  ;;  %v3644_v29 = vld [vmem:[%s5980_s13 + $0x48] sm:$0xff] }
0x1c11   :  { %v4655_v1 = vunpack.i.h.bf16 %v4653_v22  ;;  %v4654_v34 = vunpack.i.l.bf16 %v4653_v22  ;;  %v4793_v41 = vpop.eup %4792  ;;  %v2824_v24 = vmul.f32 %v4791_v38, %v4777_v53 }
0x1c12   :  { %v2826_v43 = vmul.f32 %v4793_v41, %v5819_v52 }
0x1c13   :  { %v4479_v3 = vpack.c.bf16 %v4655_v1, %v4654_v34 }
0x1c15   :  { %4480 = vmatprep.subr.bf16.mxu1 %v4479_v3 }
0x1c16   :  { %4482 = vmatpush3.bf16.msra.mxu1 %v4479_v3 }
0x1c17   :  { %4484 = vmatprep.subr.bf16.mxu1 %v4483_v28  ;;  %v4795_v26 = vpop.eup %4794 }
0x1c18   :  { %v4797_v31 = vpop.eup %4796  ;;  %v2828_v30 = vmul.f32 %v4795_v26, %v4781_v59  ;;  %v3641_v26 = vld [vmem:[%s5978_s11 + $0x2] ss:$0 sm:$0xff] }
0x1c19   :  { %v2830_v5 = vmul.f32 %v4797_v31, %v5824_v57 }
0x1c1a   :  { %4486 = vmatpush3.bf16.msra.mxu1 %v4483_v28 }
0x1c1b   :  { %4488 = vmatprep.subr.bf16.mxu1 %v4487_v18 }
0x1c1e   :  { %4490 = vmatpush3.bf16.msra.mxu1 %v4487_v18  ;;  %v3645_v18 = vld [vmem:[%s5980_s13 + $0x50] sm:$0xff] }
0x1c1f   :  { %4492 = vmatprep.subr.bf16.mxu1 %v4491_v7  ;;  %v4503_v10 = vpack.c.bf16 %v3646_v33, %v3645_v18 }
0x1c21   :  { %4191 = vmatmul.mubr.msk.f32.vlgmr.msra.gmra.mrb[34].mxu1 %vm6132_vm8, %v2818_v35  ;;  %vm6147_vm8 = vmmov %vm6141_vm2 }
0x1c22   :  { %4193 = vmatprep.mubr.msk.f32.mxu1 %vm6119_vm0, %v2820_v32  ;;  %4494 = vmatpush3.bf16.msra.mxu1 %v4491_v7 }
0x1c23   :  { %4496 = vmatprep.subr.bf16.mxu1 %v4495_v8 }
0x1c25   :  { %4194 = vmatmul.mubr.msk.f32.gmra.mrb[36].mxu1 %vm6133_vm3, %v2822_v40 }
0x1c26   :  { %4196 = vmatprep.mubr.msk.f32.mxu1 %vm6134_vm4, %v2824_v24  ;;  %4498 = vmatpush3.bf16.msra.mxu1 %v4495_v8  ;;  %v3652_v8 = vld [vmem:[%s5982_s15 + $0x88] sm:$0xff] }
0x1c29   :  { %4197 = vmatmul.mubr.msk.f32.gmra.mrb[38].mxu1 %vm6135_vm9, %v2826_v43  ;;  %vm6148_vm9 = vmmov %vm6134_vm4 }
0x1c2a   :  { %4199 = vmatprep.mubr.msk.f32.mxu1 %vm6136_vm10, %v2828_v30  ;;  %vm6149_vm10 = vmmov %vm6141_vm2 }
0x1c2d   :  { %4200 = vmatmul.mubr.msk.f32.gmra.mrb[40].mxu1 %vm6137_vm11, %v2830_v5  ;;  %v3642_v5 = vld [vmem:[%s5979_s12 + $0x2] ss:$0 sm:$0xff]  ;;  %vm6150_vm11 = vmmov %vm6141_vm2 }
0x1cf4   :  { %v4192_v6 = vpop.f32.mrb[34].mxu1 }
0x1cf5   :  { %2985 = vrot.lane.b32.xlu1 %v4192_v6, %s4944_s3  ;;  %v2945_v14 = vpop.f32.mrb[35].mxu1  ;;  %v4507_v6 = vpack.c.bf16 %v3652_v8, %v3651_v61 }
0x1cf7   :  { %4508 = vmatprep.subr.bf16.mxu0 %v4507_v6 }
0x1cf8   :  { %v4195_v11 = vpop.f32.mrb[36].mxu1  ;;  %4510 = vmatpush3.bf16.msra.mxu0 %v4507_v6 }
0x1cf9   :  { %2993 = vrot.lane.b32.xlu0 %v4195_v11, %s4945_s27  ;;  %v2955_v44 = vpop.f32.mrb[37].mxu1  ;;  %v3654_v11 = vld [vmem:[%s5982_s15 + $0x98] sm:$0xff] }
0x1cfc   :  { %v4198_v45 = vpop.f32.mrb[38].mxu1 }
0x1cfd   :  { %2989 = vrot.lane.b32.xlu0 %v2955_v44, %s4936_s26  ;;  %3000 = vrot.lane.b32.xlu1 %v4198_v45, %s4944_s3  ;;  %v2965_v13 = vpop.f32.mrb[39].mxu1  ;;  %v3655_v45 = vld [vmem:[%s5982_s15 + $0xa0] sm:$0xff] }
0x1d00   :  { %v4201_v47 = vpop.f32.mrb[40].mxu1 }
0x1d01   :  { %3008 = vrot.lane.b32.xlu0 %v4201_v47, %s4945_s27  ;;  %v2975_v49 = vpop.f32.mrb[41].mxu1 }
0x1d02   :  { %3004 = vrot.lane.b32.xlu1 %v2975_v49, %s4936_s26  ;;  %v3657_v49 = vld [vmem:[%s5982_s15 + $0xb0] sm:$0xff] }
0x1d67   :  { %v2986_v50 = vpop.permute.xlu1 %2985 }
0x1d68   :  { %v2996_v48 = vsel %vm6138_vm14, %v2945_v14, %v2986_v50  ;;  %v3653_v14 = vld [vmem:[%s5982_s15 + $0x90] sm:$0xff]  ;;  %v3658_v50 = vld [vmem:[%s5982_s15 + $0xb8] sm:$0xff]  ;;  %vm6151_vm14 = vmmov %vm6141_vm2 }
0x1d69   :  { %v4511_v44 = vpack.c.bf16 %v3654_v11, %v3653_v14 }
0x1d6b   :  { %v2994_v46 = vpop.permute.xlu0 %2993  ;;  %4512 = vmatprep.subr.bf16.mxu0 %v4511_v44 }
0x1d6c   :  { %4514 = vmatpush3.bf16.msra.mxu0 %v4511_v44 }
0x1d6f   :  { %v2990_v52 = vpop.permute.xlu0 %2989  ;;  %v3001_v53 = vpop.permute.xlu1 %3000 }
0x1d70   :  { %v2997_v54 = vsel %vm297_vm12, %v2996_v48, %v2990_v52  ;;  %v3011_v57 = vsel %vm6140_vm1, %v2965_v13, %v3001_v53  ;;  %v3656_v13 = vld [vmem:[%s5982_s15 + $0xa8] sm:$0xff]  ;;  %v3648_v48 = vld [vmem:[%s5981_s14 + $0x2] ss:$0 sm:$0xff]  ;;  %vm6153_vm1 = vmmov %vm6141_vm2 }
0x1d71   :  { %v2998_v56 = vsel %vm299_vm13, %v2997_v54, %v2994_v46  ;;  %v4515_v47 = vpack.c.bf16 %v3656_v13, %v3655_v45  ;;  %v4519_v46 = vpack.c.bf16 %v3658_v50, %v3657_v49  ;;  %v3660_v45 = vld [vmem:[%s5983_s16 + $0x2] ss:$0 sm:$0xff] }
0x1d72   :  { %4210 = vmatprep.mubr.msk.f32.mxu1 %vm6139_vm15, %v2998_v56  ;;  %vm6152_vm15 = vmmov %vm6141_vm2 }
0x1d73   :  { %v3009_v59 = vpop.permute.xlu0 %3008  ;;  %4516 = vmatprep.subr.bf16.mxu0 %v4515_v47 }
0x1d74   :  { %v3005_v58 = vpop.permute.xlu1 %3004  ;;  %4518 = vmatpush3.bf16.msra.mxu0 %v4515_v47 }
0x1d75   :  { %v3012_v39 = vsel %vm297_vm12, %v3011_v57, %v3005_v58  ;;  %vm6143_vm12 = vmmov %vm6141_vm2  ;;  %4520 = vmatprep.subr.bf16.mxu0 %v4519_v46 }
0x1d76   :  { %v3013_v42 = vsel %vm299_vm13, %v3012_v39, %v3009_v59  ;;  %vm6144_vm13 = vmmov %vm6141_vm2 }
0x1d77   :  { %4211 = vmatmul.mubr.msk.f32.vlgmr.msra.gmra.mrb[42].mxu1 %vm6141_vm2, %v3013_v42  ;;  %vm6154_vm2 = vmmov %vm6153_vm1 }
0x1d78   :  { %4522 = vmatpush3.bf16.msra.mxu0 %v4519_v46 }
0x1e4a   :  { %v4212_v62 = vpop.f32.mrb[42].mxu1 }
0x1e4b   :  { %v3105_v0 = vadd.f32 %v4212_v62, %v3636_v60  ;;  %v3099_v4 = vpop.f32.mrb[43].mxu1 }
0x1e4c   :  { %v3100_v9 = vadd.f32 %v3636_v60, %v3099_v4 }
0x1e4d   :  { %v3109_v51 = vadd.f32 %v3105_v0, %v5733_v17 }
0x1e4e   :  { %v3108_v19 = vadd.f32 %v3100_v9, %v5731_v16  ;;  %v3643_v16 = vld [vmem:[%s5980_s13 + $0x40] sm:$0xff] }
0x1e4f   :  { %v3117_v55 = vsel %vm6142_vm7, %v3109_v51, 0.0  ;;  %v4499_v37 = vpack.c.bf16 %v3644_v29, %v3643_v16 }
0x1e50   :  { %3118 = vadd.xlane.f32.xlu0 %v3117_v55  ;;  %v3114_v20 = vsel %vm6143_vm12, %v3108_v19, 0.0 }
0x1e51   :  { %3115 = vadd.xlane.f32.xlu1 %v3114_v20  ;;  %4500 = vmatprep.subr.bf16.mxu1 %v4499_v37 }
0x1e52   :  { %4502 = vmatpush3.bf16.msra.mxu1 %v4499_v37 }
0x1e53   :  { %4504 = vmatprep.subr.bf16.mxu1 %v4503_v10 }
0x1e56   :  { %4506 = vmatpush3.bf16.msra.mxu1 %v4503_v10 }
0x1edd   :  { %v3119_v25 = vpop.xlane.xlu0 %3118 }
0x1ede   :  { %v3121_v22 = vmul.f32 0.03125, %v3119_v25  ;;  %v3116_v23 = vpop.xlane.xlu1 %3115 }
0x1edf   :  { %v3120_v27 = vmul.f32 0.03125, %v3116_v23 }
0x1ee0   :  { %v3123_v1 = vsub.f32 %v3109_v51, %v3121_v22 }
0x1ee1   :  { %v3122_v34 = vsub.f32 %v3108_v19, %v3120_v27 }
0x1ee2   :  { %v3125_v36 = vmul.f32 %v3123_v1, %v3123_v1 }
0x1ee3   :  { %v3124_v3 = vmul.f32 %v3122_v34, %v3122_v34 }
0x1ee4   :  { %v3129_v28 = vsel %vm6144_vm13, %v3125_v36, 0.0 }
0x1ee5   :  { %3130 = vadd.xlane.f32.xlu1 %v3129_v28  ;;  %v3126_v17 = vsel %vm6145_vm5, %v3124_v3, 0.0 }
0x1ee6   :  { %3127 = vadd.xlane.f32.xlu0 %v3126_v17 }
0x1f72   :  { %v3131_v35 = vpop.xlane.xlu1 %3130 }
0x1f73   :  { %v3133_v15 = vmul.f32 0.03125, %v3131_v35  ;;  %v3128_v32 = vpop.xlane.xlu0 %3127 }
0x1f74   :  { %v3132_v38 = vmul.f32 0.03125, %v3128_v32 }
0x1f75   :  { %v3135_v40 = vadd.f32 1e-12, %v3133_v15 }
0x1f76   :  { %v3134_v41 = vadd.f32 1e-12, %v3132_v38 }
0x1f77   :  { %4798 = vrsqrt.f32 %v3135_v40 }
0x1f78   :  { %4800 = vrsqrt.f32 %v3134_v41 }
0x1f81   :  { %v4799_v24 = vpop.eup %4798 }
0x1f82   :  { %v4801_v43 = vpop.eup %4800  ;;  %v3139_v31 = vmul.f32 %v4799_v24, %v3123_v1 }
0x1f83   :  { %v3138_v30 = vmul.f32 %v4801_v43, %v3122_v34 }
0x1f84   :  { %v3147_v63 = vmul.f32 %v3641_v26, %v3139_v31 }
0x1f85   :  { %v3146_v21 = vmul.f32 %v3641_v26, %v3138_v30 }
0x1f86   :  { %v5903_v2 = vadd.f32 %v3642_v5, %v3147_v63 }
0x1f87   :  { %v5901_v7 = vadd.f32 %v3642_v5, %v3146_v21 }
0x1f89   :  { %4221 = vmatprep.mubr.msk.f32.mxu1 %vm6146_vm6, %v5901_v7 }
0x1f8a   :  { %4222 = vmatmul.mubr.msk.f32.vlgmr.msra.gmra.mrb[44].mxu1 %vm6147_vm8, %v5903_v2 }
0x205d   :  { %v4223_v52 = vpop.f32.mrb[44].mxu1 }
0x205e   :  { %v3247_v53 = vadd.f32 %v4223_v52, %v3648_v48  ;;  %v3241_v54 = vpop.f32.mrb[45].mxu1 }
0x205f   :  { %v3242_v56 = vadd.f32 %v3648_v48, %v3241_v54 }
0x2060   :  { %v3253_v57 = vmul.f32 0.70710677, %v3247_v53  ;;  %v3251_v14 = vmul.f32 0.5, %v3247_v53 }
0x2061   :  { %v3252_v58 = vmul.f32 0.70710677, %v3242_v56  ;;  %v3250_v8 = vmul.f32 0.5, %v3242_v56 }
0x2062   :  { %v3259_v59 = vand.u32 2147483647, %v3253_v57  ;;  %vm3255_vm0 = vcmp.ge.f32.partialorder %v3253_v57, 0.0 }
0x2063   :  { %v3258_v39 = vand.u32 2147483647, %v3252_v58  ;;  %vm3254_vm3 = vcmp.ge.f32.partialorder %v3252_v58, 0.0  ;;  %v3257_v31 = vsel %vm3255_vm0, 1.0, %v4951_v12 }
0x2064   :  { %v3261_v42 = vmul.f32 0.3275911, %v3259_v59  ;;  %v3287_v4 = vsub.f32 0.0, %v3259_v59  ;;  %v3256_v63 = vsel %vm3254_vm3, 1.0, %v4951_v12 }
0x2065   :  { %v3260_v60 = vmul.f32 0.3275911, %v3258_v39  ;;  %v3286_v9 = vsub.f32 0.0, %v3258_v39 }
0x2066   :  { %v3263_v62 = vadd.f32 1.0, %v3261_v42  ;;  %v3289_v19 = vmul.f32 %v3287_v4, %v3259_v59 }
0x2067   :  { %v3262_v0 = vadd.f32 1.0, %v3260_v60  ;;  %v3288_v25 = vmul.f32 %v3286_v9, %v3258_v39 }
0x2068   :  { %4802 = vrcp.f32 %v3263_v62  ;;  %v3292_v27 = vmul.f32 1.442695, %v3289_v19 }
0x2069   :  { %4804 = vrcp.f32 %v3262_v0  ;;  %v3290_v36 = vmul.f32 1.442695, %v3288_v25 }
0x206a   :  { %4806 = vpow2.f32 %v3292_v27 }
0x206b   :  { %4808 = vpow2.f32 %v3290_v36 }
0x2072   :  { %v4803_v51 = vpop.eup %4802 }
0x2073   :  { %v4805_v55 = vpop.eup %4804  ;;  %v3269_v20 = vmul.f32 1.0614054, %v4803_v51 }
0x2074   :  { %v3268_v22 = vmul.f32 1.0614054, %v4805_v55  ;;  %v4807_v38 = vpop.eup %4806 }
0x2075   :  { %v3271_v23 = vadd.f32 -1.4531521, %v3269_v20  ;;  %v4809_v41 = vpop.eup %4808 }
0x2076   :  { %v3270_v1 = vadd.f32 -1.4531521, %v3268_v22 }
0x2077   :  { %v3273_v34 = vmul.f32 %v4803_v51, %v3271_v23  ;;  %v3665_v23 = vld [vmem:[#allocation8 + $0x2] ss:$0 sm:$0xff] }
0x2078   :  { %v3272_v3 = vmul.f32 %v4805_v55, %v3270_v1 }
0x2079   :  { %v3275_v28 = vadd.f32 1.4214138, %v3273_v34 }
0x207a   :  { %v3274_v17 = vadd.f32 1.4214138, %v3272_v3 }
0x207b   :  { %v3277_v16 = vmul.f32 %v4803_v51, %v3275_v28 }
0x207c   :  { %v3276_v29 = vmul.f32 %v4805_v55, %v3274_v17 }
0x207d   :  { %v3279_v37 = vadd.f32 -0.28449672, %v3277_v16 }
0x207e   :  { %v3278_v18 = vadd.f32 -0.28449672, %v3276_v29 }
0x207f   :  { %v3281_v33 = vmul.f32 %v4803_v51, %v3279_v37 }
0x2080   :  { %v3280_v10 = vmul.f32 %v4805_v55, %v3278_v18 }
0x2081   :  { %v3283_v35 = vadd.f32 0.2548296, %v3281_v33 }
0x2082   :  { %v3282_v15 = vadd.f32 0.2548296, %v3280_v10 }
0x2083   :  { %v3285_v32 = vmul.f32 %v4803_v51, %v3283_v35 }
0x2084   :  { %v3284_v40 = vmul.f32 %v4805_v55, %v3282_v15  ;;  %v3664_v55 = vld [vmem:[%s5984_s17 + $0x2] ss:$0 sm:$0xff] }
0x2085   :  { %v3295_v24 = vmul.f32 %v4807_v38, %v3285_v32 }
0x2086   :  { %v3294_v26 = vmul.f32 %v4809_v41, %v3284_v40 }
0x2087   :  { %v3297_v43 = vsub.f32 1.0, %v3295_v24 }
0x2088   :  { %v3296_v30 = vsub.f32 1.0, %v3294_v26 }
0x2089   :  { %v3299_v5 = vmul.f32 %v3297_v43, %v3257_v31 }
0x208a   :  { %v3298_v21 = vmul.f32 %v3296_v30, %v3256_v63 }
0x208b   :  { %v3301_v61 = vadd.f32 1.0, %v3299_v5 }
0x208c   :  { %v3300_v6 = vadd.f32 1.0, %v3298_v21 }
0x208d   :  { %v3303_v44 = vmul.f32 %v3301_v61, %v3251_v14 }
0x208e   :  { %v3302_v11 = vmul.f32 %v3300_v6, %v3250_v8 }
0x2090   :  { %4240 = vmatprep.mubr.msk.f32.mxu0 %vm6134_vm4, %v3302_v11 }
0x2091   :  { %4241 = vmatmul.mubr.msk.f32.vlgmr.msra.gmra.mrb[34].mxu0 %vm6148_vm9, %v3303_v44 }
0x2164   :  { %v4242_v13 = vpop.f32.mrb[34].mxu0 }
0x2165   :  { %v3399_v47 = vadd.f32 %v4242_v13, %v3660_v45  ;;  %v3393_v49 = vpop.f32.mrb[35].mxu0 }
0x2166   :  { %v3394_v50 = vadd.f32 %v3660_v45, %v3393_v49 }
0x2167   :  { %v3403_v12 = vadd.f32 %v3399_v47, %v5903_v2 }
0x2168   :  { %v3402_v46 = vadd.f32 %v3394_v50, %v5901_v7 }
0x2169   :  { %v3411_v48 = vsel %vm6149_vm10, %v3403_v12, 0.0 }
0x216a   :  { %3412 = vadd.xlane.f32.xlu1 %v3411_v48  ;;  %v3408_v52 = vsel %vm6150_vm11, %v3402_v46, 0.0 }
0x216b   :  { %3409 = vadd.xlane.f32.xlu0 %v3408_v52 }
0x21f7   :  { %v3413_v53 = vpop.xlane.xlu1 %3412 }
0x21f8   :  { %v3415_v54 = vmul.f32 0.03125, %v3413_v53  ;;  %v3410_v56 = vpop.xlane.xlu0 %3409 }
0x21f9   :  { %v3414_v57 = vmul.f32 0.03125, %v3410_v56 }
0x21fa   :  { %v3417_v58 = vsub.f32 %v3403_v12, %v3415_v54 }
0x21fb   :  { %v3416_v59 = vsub.f32 %v3402_v46, %v3414_v57 }
0x21fc   :  { %v3419_v39 = vmul.f32 %v3417_v58, %v3417_v58 }
0x21fd   :  { %v3418_v42 = vmul.f32 %v3416_v59, %v3416_v59 }
0x21fe   :  { %v3423_v60 = vsel %vm6151_vm14, %v3419_v39, 0.0 }
0x21ff   :  { %3424 = vadd.xlane.f32.xlu1 %v3423_v60  ;;  %v3420_v2 = vsel %vm6152_vm15, %v3418_v42, 0.0 }
0x2200   :  { %3421 = vadd.xlane.f32.xlu0 %v3420_v2 }
0x228c   :  { %v3425_v7 = vpop.xlane.xlu1 %3424 }
0x228d   :  { %v3427_v62 = vmul.f32 0.03125, %v3425_v7  ;;  %v3422_v0 = vpop.xlane.xlu0 %3421 }
0x228e   :  { %v3426_v4 = vmul.f32 0.03125, %v3422_v0 }
0x228f   :  { %v3429_v9 = vadd.f32 1e-12, %v3427_v62 }
0x2290   :  { %v3428_v51 = vadd.f32 1e-12, %v3426_v4 }
0x2291   :  { %4810 = vrsqrt.f32 %v3429_v9 }
0x2292   :  { %4812 = vrsqrt.f32 %v3428_v51 }
0x229b   :  { %v4811_v19 = vpop.eup %4810 }
0x229c   :  { %v4813_v20 = vpop.eup %4812  ;;  %v3433_v25 = vmul.f32 %v4811_v19, %v3417_v58 }
0x229d   :  { %v3432_v22 = vmul.f32 %v4813_v20, %v3416_v59 }
0x229e   :  { %v3441_v27 = vmul.f32 %v3664_v55, %v3433_v25 }
0x229f   :  { %v3440_v1 = vmul.f32 %v3664_v55, %v3432_v22 }
0x22a0   :  { %v3449_v34 = vadd.f32 %v3665_v23, %v3441_v27 }
0x22a1   :  { %v3448_v36 = vadd.f32 %v3665_v23, %v3440_v1 }
0x22a2   :  { %3451 = vst.msk [vmem:[#allocation10 + $0x8] sm:$0xff] %vm6153_vm1, %v3449_v34 }
0x22a3   :  { %3450 = vst.msk [vmem:[#allocation10] sm:$0xff] %vm6154_vm2, %v3448_v36 }
0x22a4   :  { %4913 = shalt.err (!%p4910_p8)
}
0x22a5   :  { %s4914_s13 = scalar_lea.hbm %s5986_s19, 256 }
0x22a6   :  { %p4915_p9 = scmp.ne.s32.totalorder %s5986_s19, %s4914_s13  ;;  %p4918_p10 = scmp.lt.u32.totalorder %s4914_s13, %s5986_s19 }
0x22a8   :  { %p4920_p11 = pnand %p4918_p10, %p4915_p9 }
0x22aa   :  { %4923 = shalt.err (!%p4920_p11)
}
0x22ab   :  { %s4953_s23 = smov 128  }
0x22ac   :  { %3463 = dma.vmem_to_hbm [thread:$0]  %s3458_s25, 256, %s5986_s19, [#allocation4], %s4953_s23, %s4953_s23, %s4944_s3  }
0x22ad   :  { %4930 = dma.done.wait [#allocation4], 256  }
0x22ae   :  { %4931 = vsyncadd [#allocation4], 4294967040 }
0x22af   :  { %3467 = vsyncpa [#allocation3], 1 }
0x22b0   :  { %3468 = vsyncpa [#allocation6], 1 }
0x22b1   :  { %3469 = vsyncpa [#allocation9], 1 }
0x22b2   :  { %3470 = vsyncpa [#allocation4], 1 }

</bundles_post_ra>
